<compile_context>
chip_gen: v7x
topology: tpu7x:2x2x1
jax: 0.10.0
libtpu: 0.0.40
codegen_flags: <defaults>
</compile_context>

<pallas_src>
import jax
import jax.numpy as jnp
from jax import lax
from jax.experimental import pallas as pl
from jax.experimental.pallas import tpu as pltpu

_WDTYPE = jnp.bfloat16     # weight / streamed-activation dtype (MXU-native)


def _round_up(x, m):
    return (x + m - 1) // m * m


def _pick_tile(total, cap, mult):
    """Largest multiple of `mult` that divides `total` and is <= cap (total % mult == 0)."""
    best = mult
    t = mult
    cap = min(cap, total)
    while t <= cap:
        if total % t == 0:
            best = t
        t += mult
    return best


def _compiler_params(semantics, block_bytes):
    # Rough working set: double-buffered blocks + headroom; floor 32 MiB, cap 96 MiB.
    # TODO(synk): on v7x (64 MiB physical VMEM) lower this cap and shrink time_chunk / Bt.
    limit = int(min(max(2 * block_bytes + (8 << 20), 32 << 20), 96 << 20))
    return pltpu.CompilerParams(dimension_semantics=semantics, vmem_limit_bytes=limit)


def _sigmoid(x):
    # 1 EUP op (tanh) instead of exp + divide.
    return 0.5 * jnp.tanh(0.5 * x) + 0.5


# ---------------------- hoisted input-projection matmul -----------------------
def _proj_kernel(x_ref, w_ref, b_ref, g_ref):
    # G = x @ W_x + b   (bias already has b_ir+b_hr, b_iz+b_hz folded; n slot holds b_in)
    g_ref[...] = (jnp.dot(x_ref[...], w_ref[...], preferred_element_type=jnp.float32)
                  + b_ref[...]).astype(g_ref.dtype)


def _input_projection(x2d, wx, bx, *, tm, tn):
    M, K = x2d.shape
    N3 = wx.shape[1]
    block_bytes = (tm * K + K * tn + tm * tn) * 2 + tn * 4
    # TODO(synk): single-buffer (pipeline_mode=pl.Buffered(1)) the weight/bias blocks once
    # pipeline_mode support on top-level pallas_call is confirmed for the target jax version.
    return pl.pallas_call(
        _proj_kernel,
        out_shape=jax.ShapeDtypeStruct((M, N3), _WDTYPE),
        grid_spec=pltpu.PrefetchScalarGridSpec(
            num_scalar_prefetch=0,
            grid=(M // tm, N3 // tn),
            in_specs=[pl.BlockSpec((tm, K), lambda i, j: (i, 0)),
                      pl.BlockSpec((K, tn), lambda i, j: (0, j)),
                      pl.BlockSpec((1, tn), lambda i, j: (0, j))],
            out_specs=pl.BlockSpec((tm, tn), lambda i, j: (i, j)),
        ),
        compiler_params=_compiler_params(("parallel", "parallel"), block_bytes),
    )(x2d, wx, bx)


# ------------------------------ recurrent kernels ------------------------------
def _gru_step(g, h, u, bhn, Hp):
    """One GRU step. g = x@W_x + fused bias (bf16), h = current hidden (f32, in registers)."""
    hh = jnp.dot(h.astype(_WDTYPE), u, preferred_element_type=jnp.float32)
    r = _sigmoid(g[:, :Hp] + hh[:, :Hp])
    z = _sigmoid(g[:, Hp:2 * Hp] + hh[:, Hp:2 * Hp])
    n = jnp.tanh(g[:, 2 * Hp:] + r * (hh[:, 2 * Hp:] + bhn))
    return (1.0 - z) * n + z * h


def _gru_seq_kernel(g_ref, u_ref, bhn_ref, out_ref, h_ref):
    """Intermediate GRU layer: emits the (Tc, Bt, Hp) hidden sequence for the next layer.
    Hidden state lives in the fori_loop carry; h_ref is touched once per chunk."""
    c = pl.program_id(1)
    Tc = g_ref.shape[0]
    Hp = h_ref.shape[-1]

    @pl.when(c == 0)
    def _():
        h_ref[...] = jnp.zeros_like(h_ref)

    u = u_ref[...]
    bhn = bhn_ref[...]

    def step(i, h):
        h_new = _gru_step(g_ref[i], h, u, bhn, Hp)
        out_ref[i] = h_new.astype(out_ref.dtype)
        return h_new

    h_ref[...] = lax.fori_loop(0, Tc, step, h_ref[...], unroll=min(Tc, 8))


def _gru_last_kernel(g_ref, u_ref, bhn_ref, len_ref, wd_ref, bd_ref, out_ref, h_ref):
    """Last GRU layer fused with the dense head.  h is frozen once t >= len (equivalent to
    selecting h at t == len-1, since frozen rows are never consumed); only (Bt, Lp) logits
    are emitted — no (T, B, H) HBM writeback and no separate hlast scratch."""
    c = pl.program_id(1)
    Tc = g_ref.shape[0]
    Hp = h_ref.shape[-1]

    @pl.when(c == 0)
    def _():
        h_ref[...] = jnp.zeros_like(h_ref)

    u = u_ref[...]
    bhn = bhn_ref[...]
    lens = len_ref[...]                # (Bt, 1) int32
    t0 = c * Tc

    def step(i, h):
        h_new = _gru_step(g_ref[i], h, u, bhn, Hp)
        # update only while t < len; afterwards keep h frozen at its t == len-1 value
        return jnp.where(lens > t0 + i, h_new, h)

    h_final = lax.fori_loop(0, Tc, step, h_ref[...], unroll=min(Tc, 8))
    h_ref[...] = h_final

    @pl.when(c == pl.num_programs(1) - 1)
    def _():
        out_ref[...] = (jnp.dot(h_final.astype(_WDTYPE), wd_ref[...],
                                preferred_element_type=jnp.float32) + bd_ref[...])


def _gru_recurrent_seq(g, wh, bhn, *, Tc, Bt):
    Tp, Bp, N3 = g.shape
    Hp = wh.shape[0]
    nb, nc = Bp // Bt, Tp // Tc
    block_bytes = (Tc * Bt * N3 + Hp * N3 + Tc * Bt * Hp) * 2 + Hp * 4 + Bt * Hp * 4
    return pl.pallas_call(
        _gru_seq_kernel,
        out_shape=jax.ShapeDtypeStruct((Tp, Bp, Hp), _WDTYPE),
        grid_spec=pltpu.PrefetchScalarGridSpec(
            num_scalar_prefetch=0,
            grid=(nb, nc),
            in_specs=[pl.BlockSpec((Tc, Bt, N3), lambda b, c: (c, b, 0)),
                      pl.BlockSpec((Hp, N3), lambda b, c: (0, 0)),
                      pl.BlockSpec((1, Hp), lambda b, c: (0, 0))],
            out_specs=pl.BlockSpec((Tc, Bt, Hp), lambda b, c: (c, b, 0)),
            scratch_shapes=[pltpu.VMEM((Bt, Hp), jnp.float32)],
        ),
        compiler_params=_compiler_params(("parallel", "arbitrary"), block_bytes),
    )(g, wh, bhn)


def _gru_recurrent_last(g, wh, bhn, lens, wd, bd, *, Tc, Bt):
    Tp, Bp, N3 = g.shape
    Hp = wh.shape[0]
    Lp = wd.shape[1]
    nb, nc = Bp // Bt, Tp // Tc
    block_bytes = ((Tc * Bt * N3 + Hp * N3 + Hp * Lp) * 2 + (Hp + Lp) * 4
                   + Bt * 4 + Bt * Lp * 4 + Bt * Hp * 4)
    return pl.pallas_call(
        _gru_last_kernel,
        out_shape=jax.ShapeDtypeStruct((Bp, Lp), jnp.float32),
        grid_spec=pltpu.PrefetchScalarGridSpec(
            num_scalar_prefetch=0,
            grid=(nb, nc),                 # time-chunk axis MUST stay last (output residency)
            in_specs=[pl.BlockSpec((Tc, Bt, N3), lambda b, c: (c, b, 0)),
                      pl.BlockSpec((Hp, N3), lambda b, c: (0, 0)),
                      pl.BlockSpec((1, Hp), lambda b, c: (0, 0)),
                      pl.BlockSpec((Bt, 1), lambda b, c: (b, 0)),
                      pl.BlockSpec((Hp, Lp), lambda b, c: (0, 0)),
                      pl.BlockSpec((1, Lp), lambda b, c: (0, 0))],
            out_specs=pl.BlockSpec((Bt, Lp), lambda b, c: (b, 0)),
            scratch_shapes=[pltpu.VMEM((Bt, Hp), jnp.float32)],    # running / frozen h
        ),
        compiler_params=_compiler_params(("parallel", "arbitrary"), block_bytes),
    )(g, wh, bhn, lens, wd, bd)


# ------------------------------ parameter packing ------------------------------
def _fuse_gru_params(w_ih, w_hh, b_ih, b_hh, *, Kp, Hp):
    """Pack PyTorch-layout GRU params (gate order r,z,n) into fused, lane-padded operands.

    Returns wx (Kp, 3Hp) bf16, wh (Hp, 3Hp) bf16, bx (1, 3Hp) f32 with b_ir+b_hr / b_iz+b_hz
    folded and b_in in the n slot, and bhn (1, Hp) f32 (kept separate: it sits inside r*(...)).
    Gate layout along the 3Hp axis: [r | z | n], each gate padded to Hp lanes.
    """
    H = w_hh.shape[1]
    K = w_ih.shape[1]

    def pack_w(w, k_real, k_pad):
        out = jnp.zeros((k_pad, 3 * Hp), jnp.float32)
        out = out.at[:k_real, 0:H].set(w[:H].T)
        out = out.at[:k_real, Hp:Hp + H].set(w[H:2 * H].T)
        out = out.at[:k_real, 2 * Hp:2 * Hp + H].set(w[2 * H:].T)
        return out.astype(_WDTYPE)

    wx = pack_w(w_ih, K, Kp)
    wh = pack_w(w_hh, H, Hp)

    bx = jnp.zeros((1, 3 * Hp), jnp.float32)
    bx = bx.at[0, 0:H].set(b_ih[:H] + b_hh[:H])
    bx = bx.at[0, Hp:Hp + H].set(b_ih[H:2 * H] + b_hh[H:2 * H])
    bx = bx.at[0, 2 * Hp:2 * Hp + H].set(b_ih[2 * H:])
    bhn = jnp.zeros((1, Hp), jnp.float32).at[0, :H].set(b_hh[2 * H:])
    return wx, wh, bx, bhn


# --------------------------------- full forward ---------------------------------
def rnn_classifier_forward(entity_ids, seq_len, params, *, time_chunk=8):
    """time_chunk: steps per grid point. 8 is a safe default; 16-32 amortizes grid overhead
    better on v5e/v6e (128 MiB VMEM); keep 8-16 on v7x (64 MiB VMEM)."""
    T, B = entity_ids.shape
    E = params["embedding"].shape[1]
    H = params["gru"][0]["w_hh"].shape[1]
    L = params["dense_b"].shape[0]

    Hp = _round_up(H, 128)
    Ep = _round_up(E, 128)
    Lp = _round_up(L, 128)
    Tc = time_chunk
    Tp = _round_up(T, Tc)

    # Batch tiling: multiples of 16 (bf16 (16,128) tiling). Split into >=2 tiles when possible
    # so the "parallel" batch axis can occupy v7x's second TensorCore.
    # TODO(synk): on v6e with large VMEM, raising the 128 cap to 256 fills the 256-wide MXU.
    Bt_cap = 128
    Bp_min = _round_up(B, 16)
    if 2 * 16 <= Bp_min <= 2 * Bt_cap:
        Bt = _round_up((Bp_min + 1) // 2, 16)
    else:
        Bt = min(Bp_min, Bt_cap)
    Bp = _round_up(Bp_min, Bt)

    # Embedding gather (glue); padding_idx=0 rows are zero in the table itself.
    # TODO(synk): fuse the gather into the layer-0 projection (scalar-prefetch row gather)
    # to avoid materializing (T, B, E) in HBM (biggest relative win on v5e).
    x = jnp.take(params["embedding"].astype(_WDTYPE), entity_ids, axis=0)   # (T, B, E)
    x = jnp.pad(x, ((0, Tp - T), (0, Bp - B), (0, Ep - E)))

    # NOTE: a seq_len of 0 never updates h and yields logits == dense bias; PyTorch's
    # pack_padded_sequence would raise for zero lengths. seq_len > T is clamped to T.
    lens = jnp.minimum(seq_len.astype(jnp.int32), T)
    lens = jnp.pad(lens, (0, Bp - B)).reshape(Bp, 1)

    wd = jnp.zeros((Hp, Lp), jnp.float32).at[:H, :L].set(params["dense_w"].T).astype(_WDTYPE)
    bd = jnp.zeros((1, Lp), jnp.float32).at[0, :L].set(params["dense_b"])

    M = Tp * Bp
    tm = _pick_tile(M, 1024, 16)          # projection row tile, decoupled from Bp
    tn = _pick_tile(3 * Hp, 1024, 128)    # projection lane tile over the fused-gate axis

    nlayers = len(params["gru"])
    logits = None
    for li, layer in enumerate(params["gru"]):
        Kp = x.shape[-1]                   # Ep for layer 0, Hp afterwards
        wx, wh, bx, bhn = _fuse_gru_params(layer["w_ih"], layer["w_hh"],
                                           layer["b_ih"], layer["b_hh"], Kp=Kp, Hp=Hp)
        # Hoisted input projection: one big (Tp*Bp, Kp) x (Kp, 3Hp) MXU matmul, 2-D parallel grid.
        # TODO(synk): on v5e, fuse the NEXT layer's projection into _gru_seq_kernel to stream
        # x (Hp/elt) instead of g (3Hp/elt) through HBM.
        g = _input_projection(x.reshape(M, Kp), wx, bx, tm=tm, tn=tn)
        g = g.reshape(Tp, Bp, 3 * Hp)

        if li < nlayers - 1:
            # TODO(synk): inter-layer GRU dropout is training-only in PyTorch; omitted.
            x = _gru_recurrent_seq(g, wh, bhn, Tc=Tc, Bt=Bt)
        else:
            logits = _gru_recurrent_last(g, wh, bhn, lens, wd, bd, Tc=Tc, Bt=Bt)

    return logits[:B, :L]


# ------------------------------- pure-JAX reference ------------------------------
def reference_forward(entity_ids, seq_len, params):
    x = jnp.take(params["embedding"], entity_ids, axis=0).astype(jnp.float32)
    for layer in params["gru"]:
        H = layer["w_hh"].shape[1]
        w_ih, w_hh, b_ih, b_hh = layer["w_ih"], layer["w_hh"], layer["b_ih"], layer["b_hh"]

        def step(h, xt):
            gi = xt @ w_ih.T + b_ih
            gh = h @ w_hh.T + b_hh
            ir, iz, inn = gi[:, :H], gi[:, H:2 * H], gi[:, 2 * H:]
            hr, hz, hn = gh[:, :H], gh[:, H:2 * H], gh[:, 2 * H:]
            r = jax.nn.sigmoid(ir + hr)
            z = jax.nn.sigmoid(iz + hz)
            n = jnp.tanh(inn + r * hn)
            h2 = (1.0 - z) * n + z * h
            return h2, h2

        h0 = jnp.zeros((x.shape[1], H), jnp.float32)
        _, x = lax.scan(step, h0, x)
    last = x[seq_len - 1, jnp.arange(x.shape[1])]
    return last @ params["dense_w"].T + params["dense_b"]


# --------------------------------- parameter init ---------------------------------
def init_params(key, vocab_size, label_size, config):
    E, H, nlayers = config["nembedding"], config["nhidden"], config["nlayers"]
    keys = jax.random.split(key, 3 + 4 * nlayers)
    emb = jax.random.normal(keys[0], (vocab_size, E), jnp.float32) * 0.1
    emb = emb.at[0].set(0.0)   # padding_idx=0
    k = 1.0 / float(H) ** 0.5
    gru, ki, in_dim = [], 1, E
    for _ in range(nlayers):
        w_ih = jax.random.uniform(keys[ki], (3 * H, in_dim), jnp.float32, -k, k); ki += 1
        w_hh = jax.random.uniform(keys[ki], (3 * H, H), jnp.float32, -k, k); ki += 1
        b_ih = jax.random.uniform(keys[ki], (3 * H,), jnp.float32, -k, k); ki += 1
        b_hh = jax.random.uniform(keys[ki], (3 * H,), jnp.float32, -k, k); ki += 1
        gru.append(dict(w_ih=w_ih, w_hh=w_hh, b_ih=b_ih, b_hh=b_hh))
        in_dim = H
    dense_w = jax.random.uniform(keys[ki], (label_size, H), jnp.float32, -k, k)
    dense_b = jax.random.uniform(keys[ki + 1], (label_size,), jnp.float32, -k, k)
    return dict(embedding=emb, gru=gru, dense_w=dense_w, dense_b=dense_b)


if __name__ == "__main__":
    config = {"nembedding": 16, "nhidden": 32, "nlayers": 2, "dropout": 0.0}
    vocab_size, label_size = 50, 5
    T, B = 8, 4

    key = jax.random.PRNGKey(0)
    kp, kd = jax.random.split(key)
    params = init_params(kp, vocab_size, label_size, config)

    # lengths sorted descending (pack_padded_sequence convention)
    seq_len = jnp.array([8, 6, 5, 3], dtype=jnp.int32)
    ids = jax.random.randint(kd, (T, B), 1, vocab_size, dtype=jnp.int32)
    valid = lax.broadcasted_iota(jnp.int32, (T, B), 0) < seq_len[None, :]
    entity_ids = jnp.where(valid, ids, 0)   # id 0 == padding_idx

    forward = jax.jit(rnn_classifier_forward)
    logits = forward(entity_ids, seq_len, params)
    logits = jax.block_until_ready(logits)

    ref = reference_forward(entity_ids, seq_len, params)
    assert logits.shape == (B, label_size)
    # Kernel uses bf16 weights/activations on the MXU (f32 accumulation); reference is f32.
    assert jnp.allclose(logits, ref, atol=2e-2, rtol=2e-2), (logits, ref)
    print("KERNEL_OK")
</pallas_src>

<mosaic_0001>
module attributes {stable_mosaic.version = 11 : i64} {
  func.func @_proj_kernel(%arg0: i32, %arg1: i32, %arg2: memref<128x128xbf16, #tpu.memory_space<vmem>>, %arg3: memref<128x384xbf16, #tpu.memory_space<vmem>>, %arg4: memref<1x384xf32, #tpu.memory_space<vmem>>, %arg5: memref<128x384xbf16, #tpu.memory_space<vmem>>) attributes {dimension_semantics = [#tpu.dimension_semantics<parallel>, #tpu.dimension_semantics<parallel>], iteration_bounds = array<i64: 1, 1>, scalar_prefetch = 0 : i64, scratch_operands = 0 : i64, tpu.core_type = #tpu.core_type<tc>, window_params = [{transform_indices = @transform_0, window_bounds = array<i64: 128, 128>}, {transform_indices = @transform_1, window_bounds = array<i64: 128, 384>}, {transform_indices = @transform_2, window_bounds = array<i64: 1, 384>}, {transform_indices = @transform_3, window_bounds = array<i64: 128, 384>}]} {
    %c0 = arith.constant 0 : index
    %c0_0 = arith.constant 0 : index
    %0 = vector.load %arg2[%c0, %c0_0] : memref<128x128xbf16, #tpu.memory_space<vmem>>, vector<128x128xbf16>
    %c0_1 = arith.constant 0 : index
    %c0_2 = arith.constant 0 : index
    %1 = vector.load %arg3[%c0_1, %c0_2] : memref<128x384xbf16, #tpu.memory_space<vmem>>, vector<128x384xbf16>
    %cst = arith.constant dense<0.000000e+00> : vector<128x384xf32>
    %2 = tpu.matmul %0, %1, %cst {dimension_numbers = #tpu.dot_dimension_numbers<[1], [0], [0], [1], [0, 0, 1, 1], [], []>} : vector<128x128xbf16>, vector<128x384xbf16>, vector<128x384xf32> -> vector<128x384xf32>
    %c0_3 = arith.constant 0 : index
    %c0_4 = arith.constant 0 : index
    %3 = vector.load %arg4[%c0_3, %c0_4] : memref<1x384xf32, #tpu.memory_space<vmem>>, vector<1x384xf32>
    %4 = vector.broadcast %3 : vector<1x384xf32> to vector<128x384xf32>
    %5 = arith.addf %2, %4 : vector<128x384xf32>
    %6 = arith.truncf %5 : vector<128x384xf32> to vector<128x384xbf16>
    %c0_5 = arith.constant 0 : index
    %c0_6 = arith.constant 0 : index
    %7 = vector.load %arg5[%c0_5, %c0_6] : memref<128x384xbf16, #tpu.memory_space<vmem>>, vector<128x384xbf16>
    tpu.vector_store %arg5[%c0_5, %c0_6], %6 {strides = array<i32>} : memref<128x384xbf16, #tpu.memory_space<vmem>>, vector<128x384xbf16>,
    return
  }
  func.func @transform_0(%arg0: i32, %arg1: i32) -> (i32, i32) {
    %c0_i32 = arith.constant 0 : i32
    %c0_i32_0 = arith.constant 0 : i32
    return %arg0, %c0_i32 : i32, i32
  }
  func.func @transform_1(%arg0: i32, %arg1: i32) -> (i32, i32) {
    %c0_i32 = arith.constant 0 : i32
    %c0_i32_0 = arith.constant 0 : i32
    return %c0_i32, %arg1 : i32, i32
  }
  func.func @transform_2(%arg0: i32, %arg1: i32) -> (i32, i32) {
    %c0_i32 = arith.constant 0 : i32
    %c0_i32_0 = arith.constant 0 : i32
    return %c0_i32, %arg1 : i32, i32
  }
  func.func @transform_3(%arg0: i32, %arg1: i32) -> (i32, i32) {
    %c0_i32 = arith.constant 0 : i32
    return %arg0, %arg1 : i32, i32
  }
}

module attributes {stable_mosaic.version = 11 : i64} {
  func.func @_gru_seq_kernel(%arg0: i32, %arg1: i32, %arg2: memref<8x16x384xbf16, #tpu.memory_space<vmem>>, %arg3: memref<128x384xbf16, #tpu.memory_space<vmem>>, %arg4: memref<1x128xf32, #tpu.memory_space<vmem>>, %arg5: memref<8x16x128xbf16, #tpu.memory_space<vmem>>, %arg6: memref<16x128xf32, #tpu.memory_space<vmem>>) attributes {dimension_semantics = [#tpu.dimension_semantics<parallel>, #tpu.dimension_semantics<arbitrary>], iteration_bounds = array<i64: 1, 1>, scalar_prefetch = 0 : i64, scratch_operands = 1 : i64, tpu.core_type = #tpu.core_type<tc>, window_params = [{transform_indices = @transform_0, window_bounds = array<i64: 8, 16, 384>}, {pipeline_mode = #tpu.pipeline_mode<synchronous>, transform_indices = @transform_1, window_bounds = array<i64: 128, 384>}, {pipeline_mode = #tpu.pipeline_mode<synchronous>, transform_indices = @transform_2, window_bounds = array<i64: 1, 128>}, {transform_indices = @transform_3, window_bounds = array<i64: 8, 16, 128>}]} {
    %c0_i32 = arith.constant 0 : i32
    %0 = arith.cmpi eq, %arg1, %c0_i32 : i32
    %1 = arith.extui %0 : i1 to i32
    %c0_i32_0 = arith.constant 0 : i32
    %2 = arith.cmpi ne, %1, %c0_i32_0 : i32
    scf.if %2 {
      %cst_104 = arith.constant 0.000000e+00 : f32
      %367 = vector.broadcast %cst_104 : f32 to vector<16x128xf32>
      %c0_105 = arith.constant 0 : index
      %c0_106 = arith.constant 0 : index
      %368 = vector.load %arg6[%c0_105, %c0_106] : memref<16x128xf32, #tpu.memory_space<vmem>>, vector<16x128xf32>
      tpu.vector_store %arg6[%c0_105, %c0_106], %367 {strides = array<i32>} : memref<16x128xf32, #tpu.memory_space<vmem>>, vector<16x128xf32>,
    } else {
    }
    %c0 = arith.constant 0 : index
    %c0_1 = arith.constant 0 : index
    %3 = vector.load %arg3[%c0, %c0_1] : memref<128x384xbf16, #tpu.memory_space<vmem>>, vector<128x384xbf16>
    %c0_2 = arith.constant 0 : index
    %c0_3 = arith.constant 0 : index
    %4 = vector.load %arg4[%c0_2, %c0_3] : memref<1x128xf32, #tpu.memory_space<vmem>>, vector<1x128xf32>
    %c0_4 = arith.constant 0 : index
    %c0_5 = arith.constant 0 : index
    %5 = vector.load %arg6[%c0_4, %c0_5] : memref<16x128xf32, #tpu.memory_space<vmem>>, vector<16x128xf32>
    %c0_i32_6 = arith.constant 0 : i32
    %6 = arith.index_cast %c0_i32_6 : i32 to index
    %c0_7 = arith.constant 0 : index
    %c0_8 = arith.constant 0 : index
    %7 = vector.load %arg2[%6, %c0_7, %c0_8] : memref<8x16x384xbf16, #tpu.memory_space<vmem>>, vector<1x16x384xbf16>
    %8 = vector.shape_cast %7 : vector<1x16x384xbf16> to vector<16x384xbf16>
    %9 = arith.truncf %5 : vector<16x128xf32> to vector<16x128xbf16>
    %cst = arith.constant dense<0.000000e+00> : vector<16x384xf32>
    %10 = tpu.matmul %9, %3, %cst {dimension_numbers = #tpu.dot_dimension_numbers<[1], [0], [0], [1], [0, 0, 1, 1], [], []>} : vector<16x128xbf16>, vector<128x384xbf16>, vector<16x384xf32> -> vector<16x384xf32>
    %11 = vector.extract_strided_slice %8 {offsets = [0, 0], sizes = [16, 128], strides = [1, 1]} : vector<16x384xbf16> to vector<16x128xbf16>
    %12 = vector.extract_strided_slice %10 {offsets = [0, 0], sizes = [16, 128], strides = [1, 1]} : vector<16x384xf32> to vector<16x128xf32>
    %13 = arith.extf %11 : vector<16x128xbf16> to vector<16x128xf32>
    %14 = arith.addf %13, %12 : vector<16x128xf32>
    %cst_9 = arith.constant 5.000000e-01 : f32
    %15 = vector.broadcast %cst_9 : f32 to vector<16x128xf32>
    %16 = arith.mulf %15, %14 : vector<16x128xf32>
    %17 = math.tanh %16 : vector<16x128xf32>
    %cst_10 = arith.constant 5.000000e-01 : f32
    %18 = vector.broadcast %cst_10 : f32 to vector<16x128xf32>
    %19 = arith.mulf %18, %17 : vector<16x128xf32>
    %cst_11 = arith.constant 5.000000e-01 : f32
    %20 = vector.broadcast %cst_11 : f32 to vector<16x128xf32>
    %21 = arith.addf %19, %20 : vector<16x128xf32>
    %22 = vector.extract_strided_slice %8 {offsets = [0, 128], sizes = [16, 128], strides = [1, 1]} : vector<16x384xbf16> to vector<16x128xbf16>
    %23 = vector.extract_strided_slice %10 {offsets = [0, 128], sizes = [16, 128], strides = [1, 1]} : vector<16x384xf32> to vector<16x128xf32>
    %24 = arith.extf %22 : vector<16x128xbf16> to vector<16x128xf32>
    %25 = arith.addf %24, %23 : vector<16x128xf32>
    %cst_12 = arith.constant 5.000000e-01 : f32
    %26 = vector.broadcast %cst_12 : f32 to vector<16x128xf32>
    %27 = arith.mulf %26, %25 : vector<16x128xf32>
    %28 = math.tanh %27 : vector<16x128xf32>
    %cst_13 = arith.constant 5.000000e-01 : f32
    %29 = vector.broadcast %cst_13 : f32 to vector<16x128xf32>
    %30 = arith.mulf %29, %28 : vector<16x128xf32>
    %cst_14 = arith.constant 5.000000e-01 : f32
    %31 = vector.broadcast %cst_14 : f32 to vector<16x128xf32>
    %32 = arith.addf %30, %31 : vector<16x128xf32>
    %33 = vector.extract_strided_slice %8 {offsets = [0, 256], sizes = [16, 128], strides = [1, 1]} : vector<16x384xbf16> to vector<16x128xbf16>
    %34 = vector.extract_strided_slice %10 {offsets = [0, 256], sizes = [16, 128], strides = [1, 1]} : vector<16x384xf32> to vector<16x128xf32>
    %35 = vector.broadcast %4 : vector<1x128xf32> to vector<16x128xf32>
    %36 = arith.addf %34, %35 : vector<16x128xf32>
    %37 = arith.mulf %21, %36 : vector<16x128xf32>
    %38 = arith.extf %33 : vector<16x128xbf16> to vector<16x128xf32>
    %39 = arith.addf %38, %37 : vector<16x128xf32>
    %40 = math.tanh %39 : vector<16x128xf32>
    %cst_15 = arith.constant 1.000000e+00 : f32
    %41 = vector.broadcast %cst_15 : f32 to vector<16x128xf32>
    %42 = arith.subf %41, %32 : vector<16x128xf32>
    %43 = arith.mulf %42, %40 : vector<16x128xf32>
    %44 = arith.mulf %32, %5 : vector<16x128xf32>
    %45 = arith.addf %43, %44 : vector<16x128xf32>
    %46 = arith.truncf %45 : vector<16x128xf32> to vector<16x128xbf16>
    %47 = arith.index_cast %c0_i32_6 : i32 to index
    %c0_16 = arith.constant 0 : index
    %c0_17 = arith.constant 0 : index
    %48 = vector.load %arg5[%47, %c0_16, %c0_17] : memref<8x16x128xbf16, #tpu.memory_space<vmem>>, vector<1x16x128xbf16>
    %49 = vector.shape_cast %48 : vector<1x16x128xbf16> to vector<16x128xbf16>
    %50 = vector.shape_cast %46 : vector<16x128xbf16> to vector<1x16x128xbf16>
    tpu.vector_store %arg5[%47, %c0_16, %c0_17], %50 {strides = array<i32>} : memref<8x16x128xbf16, #tpu.memory_space<vmem>>, vector<1x16x128xbf16>,
    %c1_i32 = arith.constant 1 : i32
    %51 = arith.index_cast %c1_i32 : i32 to index
    %c0_18 = arith.constant 0 : index
    %c0_19 = arith.constant 0 : index
    %52 = vector.load %arg2[%51, %c0_18, %c0_19] : memref<8x16x384xbf16, #tpu.memory_space<vmem>>, vector<1x16x384xbf16>
    %53 = vector.shape_cast %52 : vector<1x16x384xbf16> to vector<16x384xbf16>
    %54 = arith.truncf %45 : vector<16x128xf32> to vector<16x128xbf16>
    %cst_20 = arith.constant dense<0.000000e+00> : vector<16x384xf32>
    %55 = tpu.matmul %54, %3, %cst_20 {dimension_numbers = #tpu.dot_dimension_numbers<[1], [0], [0], [1], [0, 0, 1, 1], [], []>} : vector<16x128xbf16>, vector<128x384xbf16>, vector<16x384xf32> -> vector<16x384xf32>
    %56 = vector.extract_strided_slice %53 {offsets = [0, 0], sizes = [16, 128], strides = [1, 1]} : vector<16x384xbf16> to vector<16x128xbf16>
    %57 = vector.extract_strided_slice %55 {offsets = [0, 0], sizes = [16, 128], strides = [1, 1]} : vector<16x384xf32> to vector<16x128xf32>
    %58 = arith.extf %56 : vector<16x128xbf16> to vector<16x128xf32>
    %59 = arith.addf %58, %57 : vector<16x128xf32>
    %cst_21 = arith.constant 5.000000e-01 : f32
    %60 = vector.broadcast %cst_21 : f32 to vector<16x128xf32>
    %61 = arith.mulf %60, %59 : vector<16x128xf32>
    %62 = math.tanh %61 : vector<16x128xf32>
    %cst_22 = arith.constant 5.000000e-01 : f32
    %63 = vector.broadcast %cst_22 : f32 to vector<16x128xf32>
    %64 = arith.mulf %63, %62 : vector<16x128xf32>
    %cst_23 = arith.constant 5.000000e-01 : f32
    %65 = vector.broadcast %cst_23 : f32 to vector<16x128xf32>
    %66 = arith.addf %64, %65 : vector<16x128xf32>
    %67 = vector.extract_strided_slice %53 {offsets = [0, 128], sizes = [16, 128], strides = [1, 1]} : vector<16x384xbf16> to vector<16x128xbf16>
    %68 = vector.extract_strided_slice %55 {offsets = [0, 128], sizes = [16, 128], strides = [1, 1]} : vector<16x384xf32> to vector<16x128xf32>
    %69 = arith.extf %67 : vector<16x128xbf16> to vector<16x128xf32>
    %70 = arith.addf %69, %68 : vector<16x128xf32>
    %cst_24 = arith.constant 5.000000e-01 : f32
    %71 = vector.broadcast %cst_24 : f32 to vector<16x128xf32>
    %72 = arith.mulf %71, %70 : vector<16x128xf32>
    %73 = math.tanh %72 : vector<16x128xf32>
    %cst_25 = arith.constant 5.000000e-01 : f32
    %74 = vector.broadcast %cst_25 : f32 to vector<16x128xf32>
    %75 = arith.mulf %74, %73 : vector<16x128xf32>
    %cst_26 = arith.constant 5.000000e-01 : f32
    %76 = vector.broadcast %cst_26 : f32 to vector<16x128xf32>
    %77 = arith.addf %75, %76 : vector<16x128xf32>
    %78 = vector.extract_strided_slice %53 {offsets = [0, 256], sizes = [16, 128], strides = [1, 1]} : vector<16x384xbf16> to vector<16x128xbf16>
    %79 = vector.extract_strided_slice %55 {offsets = [0, 256], sizes = [16, 128], strides = [1, 1]} : vector<16x384xf32> to vector<16x128xf32>
    %80 = vector.broadcast %4 : vector<1x128xf32> to vector<16x128xf32>
    %81 = arith.addf %79, %80 : vector<16x128xf32>
    %82 = arith.mulf %66, %81 : vector<16x128xf32>
    %83 = arith.extf %78 : vector<16x128xbf16> to vector<16x128xf32>
    %84 = arith.addf %83, %82 : vector<16x128xf32>
    %85 = math.tanh %84 : vector<16x128xf32>
    %cst_27 = arith.constant 1.000000e+00 : f32
    %86 = vector.broadcast %cst_27 : f32 to vector<16x128xf32>
    %87 = arith.subf %86, %77 : vector<16x128xf32>
    %88 = arith.mulf %87, %85 : vector<16x128xf32>
    %89 = arith.mulf %77, %45 : vector<16x128xf32>
    %90 = arith.addf %88, %89 : vector<16x128xf32>
    %91 = arith.truncf %90 : vector<16x128xf32> to vector<16x128xbf16>
    %92 = arith.index_cast %c1_i32 : i32 to index
    %c0_28 = arith.constant 0 : index
    %c0_29 = arith.constant 0 : index
    %93 = vector.load %arg5[%92, %c0_28, %c0_29] : memref<8x16x128xbf16, #tpu.memory_space<vmem>>, vector<1x16x128xbf16>
    %94 = vector.shape_cast %93 : vector<1x16x128xbf16> to vector<16x128xbf16>
    %95 = vector.shape_cast %91 : vector<16x128xbf16> to vector<1x16x128xbf16>
    tpu.vector_store %arg5[%92, %c0_28, %c0_29], %95 {strides = array<i32>} : memref<8x16x128xbf16, #tpu.memory_space<vmem>>, vector<1x16x128xbf16>,
    %c2_i32 = arith.constant 2 : i32
    %96 = arith.index_cast %c2_i32 : i32 to index
    %c0_30 = arith.constant 0 : index
    %c0_31 = arith.constant 0 : index
    %97 = vector.load %arg2[%96, %c0_30, %c0_31] : memref<8x16x384xbf16, #tpu.memory_space<vmem>>, vector<1x16x384xbf16>
    %98 = vector.shape_cast %97 : vector<1x16x384xbf16> to vector<16x384xbf16>
    %99 = arith.truncf %90 : vector<16x128xf32> to vector<16x128xbf16>
    %cst_32 = arith.constant dense<0.000000e+00> : vector<16x384xf32>
    %100 = tpu.matmul %99, %3, %cst_32 {dimension_numbers = #tpu.dot_dimension_numbers<[1], [0], [0], [1], [0, 0, 1, 1], [], []>} : vector<16x128xbf16>, vector<128x384xbf16>, vector<16x384xf32> -> vector<16x384xf32>
    %101 = vector.extract_strided_slice %98 {offsets = [0, 0], sizes = [16, 128], strides = [1, 1]} : vector<16x384xbf16> to vector<16x128xbf16>
    %102 = vector.extract_strided_slice %100 {offsets = [0, 0], sizes = [16, 128], strides = [1, 1]} : vector<16x384xf32> to vector<16x128xf32>
    %103 = arith.extf %101 : vector<16x128xbf16> to vector<16x128xf32>
    %104 = arith.addf %103, %102 : vector<16x128xf32>
    %cst_33 = arith.constant 5.000000e-01 : f32
    %105 = vector.broadcast %cst_33 : f32 to vector<16x128xf32>
    %106 = arith.mulf %105, %104 : vector<16x128xf32>
    %107 = math.tanh %106 : vector<16x128xf32>
    %cst_34 = arith.constant 5.000000e-01 : f32
    %108 = vector.broadcast %cst_34 : f32 to vector<16x128xf32>
    %109 = arith.mulf %108, %107 : vector<16x128xf32>
    %cst_35 = arith.constant 5.000000e-01 : f32
    %110 = vector.broadcast %cst_35 : f32 to vector<16x128xf32>
    %111 = arith.addf %109, %110 : vector<16x128xf32>
    %112 = vector.extract_strided_slice %98 {offsets = [0, 128], sizes = [16, 128], strides = [1, 1]} : vector<16x384xbf16> to vector<16x128xbf16>
    %113 = vector.extract_strided_slice %100 {offsets = [0, 128], sizes = [16, 128], strides = [1, 1]} : vector<16x384xf32> to vector<16x128xf32>
    %114 = arith.extf %112 : vector<16x128xbf16> to vector<16x128xf32>
    %115 = arith.addf %114, %113 : vector<16x128xf32>
    %cst_36 = arith.constant 5.000000e-01 : f32
    %116 = vector.broadcast %cst_36 : f32 to vector<16x128xf32>
    %117 = arith.mulf %116, %115 : vector<16x128xf32>
    %118 = math.tanh %117 : vector<16x128xf32>
    %cst_37 = arith.constant 5.000000e-01 : f32
    %119 = vector.broadcast %cst_37 : f32 to vector<16x128xf32>
    %120 = arith.mulf %119, %118 : vector<16x128xf32>
    %cst_38 = arith.constant 5.000000e-01 : f32
    %121 = vector.broadcast %cst_38 : f32 to vector<16x128xf32>
    %122 = arith.addf %120, %121 : vector<16x128xf32>
    %123 = vector.extract_strided_slice %98 {offsets = [0, 256], sizes = [16, 128], strides = [1, 1]} : vector<16x384xbf16> to vector<16x128xbf16>
    %124 = vector.extract_strided_slice %100 {offsets = [0, 256], sizes = [16, 128], strides = [1, 1]} : vector<16x384xf32> to vector<16x128xf32>
    %125 = vector.broadcast %4 : vector<1x128xf32> to vector<16x128xf32>
    %126 = arith.addf %124, %125 : vector<16x128xf32>
    %127 = arith.mulf %111, %126 : vector<16x128xf32>
    %128 = arith.extf %123 : vector<16x128xbf16> to vector<16x128xf32>
    %129 = arith.addf %128, %127 : vector<16x128xf32>
    %130 = math.tanh %129 : vector<16x128xf32>
    %cst_39 = arith.constant 1.000000e+00 : f32
    %131 = vector.broadcast %cst_39 : f32 to vector<16x128xf32>
    %132 = arith.subf %131, %122 : vector<16x128xf32>
    %133 = arith.mulf %132, %130 : vector<16x128xf32>
    %134 = arith.mulf %122, %90 : vector<16x128xf32>
    %135 = arith.addf %133, %134 : vector<16x128xf32>
    %136 = arith.truncf %135 : vector<16x128xf32> to vector<16x128xbf16>
    %137 = arith.index_cast %c2_i32 : i32 to index
    %c0_40 = arith.constant 0 : index
    %c0_41 = arith.constant 0 : index
    %138 = vector.load %arg5[%137, %c0_40, %c0_41] : memref<8x16x128xbf16, #tpu.memory_space<vmem>>, vector<1x16x128xbf16>
    %139 = vector.shape_cast %138 : vector<1x16x128xbf16> to vector<16x128xbf16>
    %140 = vector.shape_cast %136 : vector<16x128xbf16> to vector<1x16x128xbf16>
    tpu.vector_store %arg5[%137, %c0_40, %c0_41], %140 {strides = array<i32>} : memref<8x16x128xbf16, #tpu.memory_space<vmem>>, vector<1x16x128xbf16>,
    %c3_i32 = arith.constant 3 : i32
    %141 = arith.index_cast %c3_i32 : i32 to index
    %c0_42 = arith.constant 0 : index
    %c0_43 = arith.constant 0 : index
    %142 = vector.load %arg2[%141, %c0_42, %c0_43] : memref<8x16x384xbf16, #tpu.memory_space<vmem>>, vector<1x16x384xbf16>
    %143 = vector.shape_cast %142 : vector<1x16x384xbf16> to vector<16x384xbf16>
    %144 = arith.truncf %135 : vector<16x128xf32> to vector<16x128xbf16>
    %cst_44 = arith.constant dense<0.000000e+00> : vector<16x384xf32>
    %145 = tpu.matmul %144, %3, %cst_44 {dimension_numbers = #tpu.dot_dimension_numbers<[1], [0], [0], [1], [0, 0, 1, 1], [], []>} : vector<16x128xbf16>, vector<128x384xbf16>, vector<16x384xf32> -> vector<16x384xf32>
    %146 = vector.extract_strided_slice %143 {offsets = [0, 0], sizes = [16, 128], strides = [1, 1]} : vector<16x384xbf16> to vector<16x128xbf16>
    %147 = vector.extract_strided_slice %145 {offsets = [0, 0], sizes = [16, 128], strides = [1, 1]} : vector<16x384xf32> to vector<16x128xf32>
    %148 = arith.extf %146 : vector<16x128xbf16> to vector<16x128xf32>
    %149 = arith.addf %148, %147 : vector<16x128xf32>
    %cst_45 = arith.constant 5.000000e-01 : f32
    %150 = vector.broadcast %cst_45 : f32 to vector<16x128xf32>
    %151 = arith.mulf %150, %149 : vector<16x128xf32>
    %152 = math.tanh %151 : vector<16x128xf32>
    %cst_46 = arith.constant 5.000000e-01 : f32
    %153 = vector.broadcast %cst_46 : f32 to vector<16x128xf32>
    %154 = arith.mulf %153, %152 : vector<16x128xf32>
    %cst_47 = arith.constant 5.000000e-01 : f32
    %155 = vector.broadcast %cst_47 : f32 to vector<16x128xf32>
    %156 = arith.addf %154, %155 : vector<16x128xf32>
    %157 = vector.extract_strided_slice %143 {offsets = [0, 128], sizes = [16, 128], strides = [1, 1]} : vector<16x384xbf16> to vector<16x128xbf16>
    %158 = vector.extract_strided_slice %145 {offsets = [0, 128], sizes = [16, 128], strides = [1, 1]} : vector<16x384xf32> to vector<16x128xf32>
    %159 = arith.extf %157 : vector<16x128xbf16> to vector<16x128xf32>
    %160 = arith.addf %159, %158 : vector<16x128xf32>
    %cst_48 = arith.constant 5.000000e-01 : f32
    %161 = vector.broadcast %cst_48 : f32 to vector<16x128xf32>
    %162 = arith.mulf %161, %160 : vector<16x128xf32>
    %163 = math.tanh %162 : vector<16x128xf32>
    %cst_49 = arith.constant 5.000000e-01 : f32
    %164 = vector.broadcast %cst_49 : f32 to vector<16x128xf32>
    %165 = arith.mulf %164, %163 : vector<16x128xf32>
    %cst_50 = arith.constant 5.000000e-01 : f32
    %166 = vector.broadcast %cst_50 : f32 to vector<16x128xf32>
    %167 = arith.addf %165, %166 : vector<16x128xf32>
    %168 = vector.extract_strided_slice %143 {offsets = [0, 256], sizes = [16, 128], strides = [1, 1]} : vector<16x384xbf16> to vector<16x128xbf16>
    %169 = vector.extract_strided_slice %145 {offsets = [0, 256], sizes = [16, 128], strides = [1, 1]} : vector<16x384xf32> to vector<16x128xf32>
    %170 = vector.broadcast %4 : vector<1x128xf32> to vector<16x128xf32>
    %171 = arith.addf %169, %170 : vector<16x128xf32>
    %172 = arith.mulf %156, %171 : vector<16x128xf32>
    %173 = arith.extf %168 : vector<16x128xbf16> to vector<16x128xf32>
    %174 = arith.addf %173, %172 : vector<16x128xf32>
    %175 = math.tanh %174 : vector<16x128xf32>
    %cst_51 = arith.constant 1.000000e+00 : f32
    %176 = vector.broadcast %cst_51 : f32 to vector<16x128xf32>
    %177 = arith.subf %176, %167 : vector<16x128xf32>
    %178 = arith.mulf %177, %175 : vector<16x128xf32>
    %179 = arith.mulf %167, %135 : vector<16x128xf32>
    %180 = arith.addf %178, %179 : vector<16x128xf32>
    %181 = arith.truncf %180 : vector<16x128xf32> to vector<16x128xbf16>
    %182 = arith.index_cast %c3_i32 : i32 to index
    %c0_52 = arith.constant 0 : index
    %c0_53 = arith.constant 0 : index
    %183 = vector.load %arg5[%182, %c0_52, %c0_53] : memref<8x16x128xbf16, #tpu.memory_space<vmem>>, vector<1x16x128xbf16>
    %184 = vector.shape_cast %183 : vector<1x16x128xbf16> to vector<16x128xbf16>
    %185 = vector.shape_cast %181 : vector<16x128xbf16> to vector<1x16x128xbf16>
    tpu.vector_store %arg5[%182, %c0_52, %c0_53], %185 {strides = array<i32>} : memref<8x16x128xbf16, #tpu.memory_space<vmem>>, vector<1x16x128xbf16>,
    %c4_i32 = arith.constant 4 : i32
    %186 = arith.index_cast %c4_i32 : i32 to index
    %c0_54 = arith.constant 0 : index
    %c0_55 = arith.constant 0 : index
    %187 = vector.load %arg2[%186, %c0_54, %c0_55] : memref<8x16x384xbf16, #tpu.memory_space<vmem>>, vector<1x16x384xbf16>
    %188 = vector.shape_cast %187 : vector<1x16x384xbf16> to vector<16x384xbf16>
    %189 = arith.truncf %180 : vector<16x128xf32> to vector<16x128xbf16>
    %cst_56 = arith.constant dense<0.000000e+00> : vector<16x384xf32>
    %190 = tpu.matmul %189, %3, %cst_56 {dimension_numbers = #tpu.dot_dimension_numbers<[1], [0], [0], [1], [0, 0, 1, 1], [], []>} : vector<16x128xbf16>, vector<128x384xbf16>, vector<16x384xf32> -> vector<16x384xf32>
    %191 = vector.extract_strided_slice %188 {offsets = [0, 0], sizes = [16, 128], strides = [1, 1]} : vector<16x384xbf16> to vector<16x128xbf16>
    %192 = vector.extract_strided_slice %190 {offsets = [0, 0], sizes = [16, 128], strides = [1, 1]} : vector<16x384xf32> to vector<16x128xf32>
    %193 = arith.extf %191 : vector<16x128xbf16> to vector<16x128xf32>
    %194 = arith.addf %193, %192 : vector<16x128xf32>
    %cst_57 = arith.constant 5.000000e-01 : f32
    %195 = vector.broadcast %cst_57 : f32 to vector<16x128xf32>
    %196 = arith.mulf %195, %194 : vector<16x128xf32>
    %197 = math.tanh %196 : vector<16x128xf32>
    %cst_58 = arith.constant 5.000000e-01 : f32
    %198 = vector.broadcast %cst_58 : f32 to vector<16x128xf32>
    %199 = arith.mulf %198, %197 : vector<16x128xf32>
    %cst_59 = arith.constant 5.000000e-01 : f32
    %200 = vector.broadcast %cst_59 : f32 to vector<16x128xf32>
    %201 = arith.addf %199, %200 : vector<16x128xf32>
    %202 = vector.extract_strided_slice %188 {offsets = [0, 128], sizes = [16, 128], strides = [1, 1]} : vector<16x384xbf16> to vector<16x128xbf16>
    %203 = vector.extract_strided_slice %190 {offsets = [0, 128], sizes = [16, 128], strides = [1, 1]} : vector<16x384xf32> to vector<16x128xf32>
    %204 = arith.extf %202 : vector<16x128xbf16> to vector<16x128xf32>
    %205 = arith.addf %204, %203 : vector<16x128xf32>
    %cst_60 = arith.constant 5.000000e-01 : f32
    %206 = vector.broadcast %cst_60 : f32 to vector<16x128xf32>
    %207 = arith.mulf %206, %205 : vector<16x128xf32>
    %208 = math.tanh %207 : vector<16x128xf32>
    %cst_61 = arith.constant 5.000000e-01 : f32
    %209 = vector.broadcast %cst_61 : f32 to vector<16x128xf32>
    %210 = arith.mulf %209, %208 : vector<16x128xf32>
    %cst_62 = arith.constant 5.000000e-01 : f32
    %211 = vector.broadcast %cst_62 : f32 to vector<16x128xf32>
    %212 = arith.addf %210, %211 : vector<16x128xf32>
    %213 = vector.extract_strided_slice %188 {offsets = [0, 256], sizes = [16, 128], strides = [1, 1]} : vector<16x384xbf16> to vector<16x128xbf16>
    %214 = vector.extract_strided_slice %190 {offsets = [0, 256], sizes = [16, 128], strides = [1, 1]} : vector<16x384xf32> to vector<16x128xf32>
    %215 = vector.broadcast %4 : vector<1x128xf32> to vector<16x128xf32>
    %216 = arith.addf %214, %215 : vector<16x128xf32>
    %217 = arith.mulf %201, %216 : vector<16x128xf32>
    %218 = arith.extf %213 : vector<16x128xbf16> to vector<16x128xf32>
    %219 = arith.addf %218, %217 : vector<16x128xf32>
    %220 = math.tanh %219 : vector<16x128xf32>
    %cst_63 = arith.constant 1.000000e+00 : f32
    %221 = vector.broadcast %cst_63 : f32 to vector<16x128xf32>
    %222 = arith.subf %221, %212 : vector<16x128xf32>
    %223 = arith.mulf %222, %220 : vector<16x128xf32>
    %224 = arith.mulf %212, %180 : vector<16x128xf32>
    %225 = arith.addf %223, %224 : vector<16x128xf32>
    %226 = arith.truncf %225 : vector<16x128xf32> to vector<16x128xbf16>
    %227 = arith.index_cast %c4_i32 : i32 to index
    %c0_64 = arith.constant 0 : index
    %c0_65 = arith.constant 0 : index
    %228 = vector.load %arg5[%227, %c0_64, %c0_65] : memref<8x16x128xbf16, #tpu.memory_space<vmem>>, vector<1x16x128xbf16>
    %229 = vector.shape_cast %228 : vector<1x16x128xbf16> to vector<16x128xbf16>
    %230 = vector.shape_cast %226 : vector<16x128xbf16> to vector<1x16x128xbf16>
    tpu.vector_store %arg5[%227, %c0_64, %c0_65], %230 {strides = array<i32>} : memref<8x16x128xbf16, #tpu.memory_space<vmem>>, vector<1x16x128xbf16>,
    %c5_i32 = arith.constant 5 : i32
    %231 = arith.index_cast %c5_i32 : i32 to index
    %c0_66 = arith.constant 0 : index
    %c0_67 = arith.constant 0 : index
    %232 = vector.load %arg2[%231, %c0_66, %c0_67] : memref<8x16x384xbf16, #tpu.memory_space<vmem>>, vector<1x16x384xbf16>
    %233 = vector.shape_cast %232 : vector<1x16x384xbf16> to vector<16x384xbf16>
    %234 = arith.truncf %225 : vector<16x128xf32> to vector<16x128xbf16>
    %cst_68 = arith.constant dense<0.000000e+00> : vector<16x384xf32>
    %235 = tpu.matmul %234, %3, %cst_68 {dimension_numbers = #tpu.dot_dimension_numbers<[1], [0], [0], [1], [0, 0, 1, 1], [], []>} : vector<16x128xbf16>, vector<128x384xbf16>, vector<16x384xf32> -> vector<16x384xf32>
    %236 = vector.extract_strided_slice %233 {offsets = [0, 0], sizes = [16, 128], strides = [1, 1]} : vector<16x384xbf16> to vector<16x128xbf16>
    %237 = vector.extract_strided_slice %235 {offsets = [0, 0], sizes = [16, 128], strides = [1, 1]} : vector<16x384xf32> to vector<16x128xf32>
    %238 = arith.extf %236 : vector<16x128xbf16> to vector<16x128xf32>
    %239 = arith.addf %238, %237 : vector<16x128xf32>
    %cst_69 = arith.constant 5.000000e-01 : f32
    %240 = vector.broadcast %cst_69 : f32 to vector<16x128xf32>
    %241 = arith.mulf %240, %239 : vector<16x128xf32>
    %242 = math.tanh %241 : vector<16x128xf32>
    %cst_70 = arith.constant 5.000000e-01 : f32
    %243 = vector.broadcast %cst_70 : f32 to vector<16x128xf32>
    %244 = arith.mulf %243, %242 : vector<16x128xf32>
    %cst_71 = arith.constant 5.000000e-01 : f32
    %245 = vector.broadcast %cst_71 : f32 to vector<16x128xf32>
    %246 = arith.addf %244, %245 : vector<16x128xf32>
    %247 = vector.extract_strided_slice %233 {offsets = [0, 128], sizes = [16, 128], strides = [1, 1]} : vector<16x384xbf16> to vector<16x128xbf16>
    %248 = vector.extract_strided_slice %235 {offsets = [0, 128], sizes = [16, 128], strides = [1, 1]} : vector<16x384xf32> to vector<16x128xf32>
    %249 = arith.extf %247 : vector<16x128xbf16> to vector<16x128xf32>
    %250 = arith.addf %249, %248 : vector<16x128xf32>
    %cst_72 = arith.constant 5.000000e-01 : f32
    %251 = vector.broadcast %cst_72 : f32 to vector<16x128xf32>
    %252 = arith.mulf %251, %250 : vector<16x128xf32>
    %253 = math.tanh %252 : vector<16x128xf32>
    %cst_73 = arith.constant 5.000000e-01 : f32
    %254 = vector.broadcast %cst_73 : f32 to vector<16x128xf32>
    %255 = arith.mulf %254, %253 : vector<16x128xf32>
    %cst_74 = arith.constant 5.000000e-01 : f32
    %256 = vector.broadcast %cst_74 : f32 to vector<16x128xf32>
    %257 = arith.addf %255, %256 : vector<16x128xf32>
    %258 = vector.extract_strided_slice %233 {offsets = [0, 256], sizes = [16, 128], strides = [1, 1]} : vector<16x384xbf16> to vector<16x128xbf16>
    %259 = vector.extract_strided_slice %235 {offsets = [0, 256], sizes = [16, 128], strides = [1, 1]} : vector<16x384xf32> to vector<16x128xf32>
    %260 = vector.broadcast %4 : vector<1x128xf32> to vector<16x128xf32>
    %261 = arith.addf %259, %260 : vector<16x128xf32>
    %262 = arith.mulf %246, %261 : vector<16x128xf32>
    %263 = arith.extf %258 : vector<16x128xbf16> to vector<16x128xf32>
    %264 = arith.addf %263, %262 : vector<16x128xf32>
    %265 = math.tanh %264 : vector<16x128xf32>
    %cst_75 = arith.constant 1.000000e+00 : f32
    %266 = vector.broadcast %cst_75 : f32 to vector<16x128xf32>
    %267 = arith.subf %266, %257 : vector<16x128xf32>
    %268 = arith.mulf %267, %265 : vector<16x128xf32>
    %269 = arith.mulf %257, %225 : vector<16x128xf32>
    %270 = arith.addf %268, %269 : vector<16x128xf32>
    %271 = arith.truncf %270 : vector<16x128xf32> to vector<16x128xbf16>
    %272 = arith.index_cast %c5_i32 : i32 to index
    %c0_76 = arith.constant 0 : index
    %c0_77 = arith.constant 0 : index
    %273 = vector.load %arg5[%272, %c0_76, %c0_77] : memref<8x16x128xbf16, #tpu.memory_space<vmem>>, vector<1x16x128xbf16>
    %274 = vector.shape_cast %273 : vector<1x16x128xbf16> to vector<16x128xbf16>
    %275 = vector.shape_cast %271 : vector<16x128xbf16> to vector<1x16x128xbf16>
    tpu.vector_store %arg5[%272, %c0_76, %c0_77], %275 {strides = array<i32>} : memref<8x16x128xbf16, #tpu.memory_space<vmem>>, vector<1x16x128xbf16>,
    %c6_i32 = arith.constant 6 : i32
    %276 = arith.index_cast %c6_i32 : i32 to index
    %c0_78 = arith.constant 0 : index
    %c0_79 = arith.constant 0 : index
    %277 = vector.load %arg2[%276, %c0_78, %c0_79] : memref<8x16x384xbf16, #tpu.memory_space<vmem>>, vector<1x16x384xbf16>
    %278 = vector.shape_cast %277 : vector<1x16x384xbf16> to vector<16x384xbf16>
    %279 = arith.truncf %270 : vector<16x128xf32> to vector<16x128xbf16>
    %cst_80 = arith.constant dense<0.000000e+00> : vector<16x384xf32>
    %280 = tpu.matmul %279, %3, %cst_80 {dimension_numbers = #tpu.dot_dimension_numbers<[1], [0], [0], [1], [0, 0, 1, 1], [], []>} : vector<16x128xbf16>, vector<128x384xbf16>, vector<16x384xf32> -> vector<16x384xf32>
    %281 = vector.extract_strided_slice %278 {offsets = [0, 0], sizes = [16, 128], strides = [1, 1]} : vector<16x384xbf16> to vector<16x128xbf16>
    %282 = vector.extract_strided_slice %280 {offsets = [0, 0], sizes = [16, 128], strides = [1, 1]} : vector<16x384xf32> to vector<16x128xf32>
    %283 = arith.extf %281 : vector<16x128xbf16> to vector<16x128xf32>
    %284 = arith.addf %283, %282 : vector<16x128xf32>
    %cst_81 = arith.constant 5.000000e-01 : f32
    %285 = vector.broadcast %cst_81 : f32 to vector<16x128xf32>
    %286 = arith.mulf %285, %284 : vector<16x128xf32>
    %287 = math.tanh %286 : vector<16x128xf32>
    %cst_82 = arith.constant 5.000000e-01 : f32
    %288 = vector.broadcast %cst_82 : f32 to vector<16x128xf32>
    %289 = arith.mulf %288, %287 : vector<16x128xf32>
    %cst_83 = arith.constant 5.000000e-01 : f32
    %290 = vector.broadcast %cst_83 : f32 to vector<16x128xf32>
    %291 = arith.addf %289, %290 : vector<16x128xf32>
    %292 = vector.extract_strided_slice %278 {offsets = [0, 128], sizes = [16, 128], strides = [1, 1]} : vector<16x384xbf16> to vector<16x128xbf16>
    %293 = vector.extract_strided_slice %280 {offsets = [0, 128], sizes = [16, 128], strides = [1, 1]} : vector<16x384xf32> to vector<16x128xf32>
    %294 = arith.extf %292 : vector<16x128xbf16> to vector<16x128xf32>
    %295 = arith.addf %294, %293 : vector<16x128xf32>
    %cst_84 = arith.constant 5.000000e-01 : f32
    %296 = vector.broadcast %cst_84 : f32 to vector<16x128xf32>
    %297 = arith.mulf %296, %295 : vector<16x128xf32>
    %298 = math.tanh %297 : vector<16x128xf32>
    %cst_85 = arith.constant 5.000000e-01 : f32
    %299 = vector.broadcast %cst_85 : f32 to vector<16x128xf32>
    %300 = arith.mulf %299, %298 : vector<16x128xf32>
    %cst_86 = arith.constant 5.000000e-01 : f32
    %301 = vector.broadcast %cst_86 : f32 to vector<16x128xf32>
    %302 = arith.addf %300, %301 : vector<16x128xf32>
    %303 = vector.extract_strided_slice %278 {offsets = [0, 256], sizes = [16, 128], strides = [1, 1]} : vector<16x384xbf16> to vector<16x128xbf16>
    %304 = vector.extract_strided_slice %280 {offsets = [0, 256], sizes = [16, 128], strides = [1, 1]} : vector<16x384xf32> to vector<16x128xf32>
    %305 = vector.broadcast %4 : vector<1x128xf32> to vector<16x128xf32>
    %306 = arith.addf %304, %305 : vector<16x128xf32>
    %307 = arith.mulf %291, %306 : vector<16x128xf32>
    %308 = arith.extf %303 : vector<16x128xbf16> to vector<16x128xf32>
    %309 = arith.addf %308, %307 : vector<16x128xf32>
    %310 = math.tanh %309 : vector<16x128xf32>
    %cst_87 = arith.constant 1.000000e+00 : f32
    %311 = vector.broadcast %cst_87 : f32 to vector<16x128xf32>
    %312 = arith.subf %311, %302 : vector<16x128xf32>
    %313 = arith.mulf %312, %310 : vector<16x128xf32>
    %314 = arith.mulf %302, %270 : vector<16x128xf32>
    %315 = arith.addf %313, %314 : vector<16x128xf32>
    %316 = arith.truncf %315 : vector<16x128xf32> to vector<16x128xbf16>
    %317 = arith.index_cast %c6_i32 : i32 to index
    %c0_88 = arith.constant 0 : index
    %c0_89 = arith.constant 0 : index
    %318 = vector.load %arg5[%317, %c0_88, %c0_89] : memref<8x16x128xbf16, #tpu.memory_space<vmem>>, vector<1x16x128xbf16>
    %319 = vector.shape_cast %318 : vector<1x16x128xbf16> to vector<16x128xbf16>
    %320 = vector.shape_cast %316 : vector<16x128xbf16> to vector<1x16x128xbf16>
    tpu.vector_store %arg5[%317, %c0_88, %c0_89], %320 {strides = array<i32>} : memref<8x16x128xbf16, #tpu.memory_space<vmem>>, vector<1x16x128xbf16>,
    %c7_i32 = arith.constant 7 : i32
    %321 = arith.index_cast %c7_i32 : i32 to index
    %c0_90 = arith.constant 0 : index
    %c0_91 = arith.constant 0 : index
    %322 = vector.load %arg2[%321, %c0_90, %c0_91] : memref<8x16x384xbf16, #tpu.memory_space<vmem>>, vector<1x16x384xbf16>
    %323 = vector.shape_cast %322 : vector<1x16x384xbf16> to vector<16x384xbf16>
    %324 = arith.truncf %315 : vector<16x128xf32> to vector<16x128xbf16>
    %cst_92 = arith.constant dense<0.000000e+00> : vector<16x384xf32>
    %325 = tpu.matmul %324, %3, %cst_92 {dimension_numbers = #tpu.dot_dimension_numbers<[1], [0], [0], [1], [0, 0, 1, 1], [], []>} : vector<16x128xbf16>, vector<128x384xbf16>, vector<16x384xf32> -> vector<16x384xf32>
    %326 = vector.extract_strided_slice %323 {offsets = [0, 0], sizes = [16, 128], strides = [1, 1]} : vector<16x384xbf16> to vector<16x128xbf16>
    %327 = vector.extract_strided_slice %325 {offsets = [0, 0], sizes = [16, 128], strides = [1, 1]} : vector<16x384xf32> to vector<16x128xf32>
    %328 = arith.extf %326 : vector<16x128xbf16> to vector<16x128xf32>
    %329 = arith.addf %328, %327 : vector<16x128xf32>
    %cst_93 = arith.constant 5.000000e-01 : f32
    %330 = vector.broadcast %cst_93 : f32 to vector<16x128xf32>
    %331 = arith.mulf %330, %329 : vector<16x128xf32>
    %332 = math.tanh %331 : vector<16x128xf32>
    %cst_94 = arith.constant 5.000000e-01 : f32
    %333 = vector.broadcast %cst_94 : f32 to vector<16x128xf32>
    %334 = arith.mulf %333, %332 : vector<16x128xf32>
    %cst_95 = arith.constant 5.000000e-01 : f32
    %335 = vector.broadcast %cst_95 : f32 to vector<16x128xf32>
    %336 = arith.addf %334, %335 : vector<16x128xf32>
    %337 = vector.extract_strided_slice %323 {offsets = [0, 128], sizes = [16, 128], strides = [1, 1]} : vector<16x384xbf16> to vector<16x128xbf16>
    %338 = vector.extract_strided_slice %325 {offsets = [0, 128], sizes = [16, 128], strides = [1, 1]} : vector<16x384xf32> to vector<16x128xf32>
    %339 = arith.extf %337 : vector<16x128xbf16> to vector<16x128xf32>
    %340 = arith.addf %339, %338 : vector<16x128xf32>
    %cst_96 = arith.constant 5.000000e-01 : f32
    %341 = vector.broadcast %cst_96 : f32 to vector<16x128xf32>
    %342 = arith.mulf %341, %340 : vector<16x128xf32>
    %343 = math.tanh %342 : vector<16x128xf32>
    %cst_97 = arith.constant 5.000000e-01 : f32
    %344 = vector.broadcast %cst_97 : f32 to vector<16x128xf32>
    %345 = arith.mulf %344, %343 : vector<16x128xf32>
    %cst_98 = arith.constant 5.000000e-01 : f32
    %346 = vector.broadcast %cst_98 : f32 to vector<16x128xf32>
    %347 = arith.addf %345, %346 : vector<16x128xf32>
    %348 = vector.extract_strided_slice %323 {offsets = [0, 256], sizes = [16, 128], strides = [1, 1]} : vector<16x384xbf16> to vector<16x128xbf16>
    %349 = vector.extract_strided_slice %325 {offsets = [0, 256], sizes = [16, 128], strides = [1, 1]} : vector<16x384xf32> to vector<16x128xf32>
    %350 = vector.broadcast %4 : vector<1x128xf32> to vector<16x128xf32>
    %351 = arith.addf %349, %350 : vector<16x128xf32>
    %352 = arith.mulf %336, %351 : vector<16x128xf32>
    %353 = arith.extf %348 : vector<16x128xbf16> to vector<16x128xf32>
    %354 = arith.addf %353, %352 : vector<16x128xf32>
    %355 = math.tanh %354 : vector<16x128xf32>
    %cst_99 = arith.constant 1.000000e+00 : f32
    %356 = vector.broadcast %cst_99 : f32 to vector<16x128xf32>
    %357 = arith.subf %356, %347 : vector<16x128xf32>
    %358 = arith.mulf %357, %355 : vector<16x128xf32>
    %359 = arith.mulf %347, %315 : vector<16x128xf32>
    %360 = arith.addf %358, %359 : vector<16x128xf32>
    %361 = arith.truncf %360 : vector<16x128xf32> to vector<16x128xbf16>
    %362 = arith.index_cast %c7_i32 : i32 to index
    %c0_100 = arith.constant 0 : index
    %c0_101 = arith.constant 0 : index
    %363 = vector.load %arg5[%362, %c0_100, %c0_101] : memref<8x16x128xbf16, #tpu.memory_space<vmem>>, vector<1x16x128xbf16>
    %364 = vector.shape_cast %363 : vector<1x16x128xbf16> to vector<16x128xbf16>
    %365 = vector.shape_cast %361 : vector<16x128xbf16> to vector<1x16x128xbf16>
    tpu.vector_store %arg5[%362, %c0_100, %c0_101], %365 {strides = array<i32>} : memref<8x16x128xbf16, #tpu.memory_space<vmem>>, vector<1x16x128xbf16>,
    %c8_i32 = arith.constant 8 : i32
    %c0_102 = arith.constant 0 : index
    %c0_103 = arith.constant 0 : index
    %366 = vector.load %arg6[%c0_102, %c0_103] : memref<16x128xf32, #tpu.memory_space<vmem>>, vector<16x128xf32>
    tpu.vector_store %arg6[%c0_102, %c0_103], %360 {strides = array<i32>} : memref<16x128xf32, #tpu.memory_space<vmem>>, vector<16x128xf32>,
    return
  }
  func.func @transform_0(%arg0: i32, %arg1: i32) -> (i32, i32, i32) {
    %c0_i32 = arith.constant 0 : i32
    %c0_i32_0 = arith.constant 0 : i32
    return %arg1, %arg0, %c0_i32 : i32, i32, i32
  }
  func.func @transform_1(%arg0: i32, %arg1: i32) -> (i32, i32) {
    %c0_i32 = arith.constant 0 : i32
    %c0_i32_0 = arith.constant 0 : i32
    %c0_i32_1 = arith.constant 0 : i32
    return %c0_i32, %c0_i32_0 : i32, i32
  }
  func.func @transform_2(%arg0: i32, %arg1: i32) -> (i32, i32) {
    %c0_i32 = arith.constant 0 : i32
    %c0_i32_0 = arith.constant 0 : i32
    %c0_i32_1 = arith.constant 0 : i32
    return %c0_i32, %c0_i32_0 : i32, i32
  }
  func.func @transform_3(%arg0: i32, %arg1: i32) -> (i32, i32, i32) {
    %c0_i32 = arith.constant 0 : i32
    %c0_i32_0 = arith.constant 0 : i32
    return %arg1, %arg0, %c0_i32 : i32, i32, i32
  }
}

module attributes {stable_mosaic.version = 11 : i64} {
  func.func @_gru_last_kernel(%arg0: i32, %arg1: i32, %arg2: memref<8x16x384xbf16, #tpu.memory_space<vmem>>, %arg3: memref<128x384xbf16, #tpu.memory_space<vmem>>, %arg4: memref<1x128xf32, #tpu.memory_space<vmem>>, %arg5: memref<16x1xi32, #tpu.memory_space<vmem>>, %arg6: memref<128x128xbf16, #tpu.memory_space<vmem>>, %arg7: memref<1x128xf32, #tpu.memory_space<vmem>>, %arg8: memref<16x128xf32, #tpu.memory_space<vmem>>, %arg9: memref<16x128xf32, #tpu.memory_space<vmem>>) attributes {dimension_semantics = [#tpu.dimension_semantics<parallel>, #tpu.dimension_semantics<arbitrary>], iteration_bounds = array<i64: 1, 1>, scalar_prefetch = 0 : i64, scratch_operands = 1 : i64, tpu.core_type = #tpu.core_type<tc>, window_params = [{transform_indices = @transform_0, window_bounds = array<i64: 8, 16, 384>}, {pipeline_mode = #tpu.pipeline_mode<synchronous>, transform_indices = @transform_1, window_bounds = array<i64: 128, 384>}, {pipeline_mode = #tpu.pipeline_mode<synchronous>, transform_indices = @transform_2, window_bounds = array<i64: 1, 128>}, {transform_indices = @transform_3, window_bounds = array<i64: 16, 1>}, {pipeline_mode = #tpu.pipeline_mode<synchronous>, transform_indices = @transform_4, window_bounds = array<i64: 128, 128>}, {pipeline_mode = #tpu.pipeline_mode<synchronous>, transform_indices = @transform_5, window_bounds = array<i64: 1, 128>}, {transform_indices = @transform_6, window_bounds = array<i64: 16, 128>}]} {
    %c0_i32 = arith.constant 0 : i32
    %0 = arith.cmpi eq, %arg1, %c0_i32 : i32
    %1 = arith.extui %0 : i1 to i32
    %c0_i32_0 = arith.constant 0 : i32
    %2 = arith.cmpi ne, %1, %c0_i32_0 : i32
    scf.if %2 {
      %cst_93 = arith.constant 0.000000e+00 : f32
      %380 = vector.broadcast %cst_93 : f32 to vector<16x128xf32>
      %c0_94 = arith.constant 0 : index
      %c0_95 = arith.constant 0 : index
      %381 = vector.load %arg9[%c0_94, %c0_95] : memref<16x128xf32, #tpu.memory_space<vmem>>, vector<16x128xf32>
      tpu.vector_store %arg9[%c0_94, %c0_95], %380 {strides = array<i32>} : memref<16x128xf32, #tpu.memory_space<vmem>>, vector<16x128xf32>,
    } else {
    }
    %c0 = arith.constant 0 : index
    %c0_1 = arith.constant 0 : index
    %3 = vector.load %arg3[%c0, %c0_1] : memref<128x384xbf16, #tpu.memory_space<vmem>>, vector<128x384xbf16>
    %c0_2 = arith.constant 0 : index
    %c0_3 = arith.constant 0 : index
    %4 = vector.load %arg4[%c0_2, %c0_3] : memref<1x128xf32, #tpu.memory_space<vmem>>, vector<1x128xf32>
    %c0_4 = arith.constant 0 : index
    %c0_5 = arith.constant 0 : index
    %5 = vector.load %arg5[%c0_4, %c0_5] : memref<16x1xi32, #tpu.memory_space<vmem>>, vector<16x1xi32>
    %c8_i32 = arith.constant 8 : i32
    %6 = arith.muli %arg1, %c8_i32 : i32
    %c0_6 = arith.constant 0 : index
    %c0_7 = arith.constant 0 : index
    %7 = vector.load %arg9[%c0_6, %c0_7] : memref<16x128xf32, #tpu.memory_space<vmem>>, vector<16x128xf32>
    %c0_i32_8 = arith.constant 0 : i32
    %8 = arith.index_cast %c0_i32_8 : i32 to index
    %c0_9 = arith.constant 0 : index
    %c0_10 = arith.constant 0 : index
    %9 = vector.load %arg2[%8, %c0_9, %c0_10] : memref<8x16x384xbf16, #tpu.memory_space<vmem>>, vector<1x16x384xbf16>
    %10 = vector.shape_cast %9 : vector<1x16x384xbf16> to vector<16x384xbf16>
    %11 = arith.truncf %7 : vector<16x128xf32> to vector<16x128xbf16>
    %cst = arith.constant dense<0.000000e+00> : vector<16x384xf32>
    %12 = tpu.matmul %11, %3, %cst {dimension_numbers = #tpu.dot_dimension_numbers<[1], [0], [0], [1], [0, 0, 1, 1], [], []>} : vector<16x128xbf16>, vector<128x384xbf16>, vector<16x384xf32> -> vector<16x384xf32>
    %13 = vector.extract_strided_slice %10 {offsets = [0, 0], sizes = [16, 128], strides = [1, 1]} : vector<16x384xbf16> to vector<16x128xbf16>
    %14 = vector.extract_strided_slice %12 {offsets = [0, 0], sizes = [16, 128], strides = [1, 1]} : vector<16x384xf32> to vector<16x128xf32>
    %15 = arith.extf %13 : vector<16x128xbf16> to vector<16x128xf32>
    %16 = arith.addf %15, %14 : vector<16x128xf32>
    %cst_11 = arith.constant 5.000000e-01 : f32
    %17 = vector.broadcast %cst_11 : f32 to vector<16x128xf32>
    %18 = arith.mulf %17, %16 : vector<16x128xf32>
    %19 = math.tanh %18 : vector<16x128xf32>
    %cst_12 = arith.constant 5.000000e-01 : f32
    %20 = vector.broadcast %cst_12 : f32 to vector<16x128xf32>
    %21 = arith.mulf %20, %19 : vector<16x128xf32>
    %cst_13 = arith.constant 5.000000e-01 : f32
    %22 = vector.broadcast %cst_13 : f32 to vector<16x128xf32>
    %23 = arith.addf %21, %22 : vector<16x128xf32>
    %24 = vector.extract_strided_slice %10 {offsets = [0, 128], sizes = [16, 128], strides = [1, 1]} : vector<16x384xbf16> to vector<16x128xbf16>
    %25 = vector.extract_strided_slice %12 {offsets = [0, 128], sizes = [16, 128], strides = [1, 1]} : vector<16x384xf32> to vector<16x128xf32>
    %26 = arith.extf %24 : vector<16x128xbf16> to vector<16x128xf32>
    %27 = arith.addf %26, %25 : vector<16x128xf32>
    %cst_14 = arith.constant 5.000000e-01 : f32
    %28 = vector.broadcast %cst_14 : f32 to vector<16x128xf32>
    %29 = arith.mulf %28, %27 : vector<16x128xf32>
    %30 = math.tanh %29 : vector<16x128xf32>
    %cst_15 = arith.constant 5.000000e-01 : f32
    %31 = vector.broadcast %cst_15 : f32 to vector<16x128xf32>
    %32 = arith.mulf %31, %30 : vector<16x128xf32>
    %cst_16 = arith.constant 5.000000e-01 : f32
    %33 = vector.broadcast %cst_16 : f32 to vector<16x128xf32>
    %34 = arith.addf %32, %33 : vector<16x128xf32>
    %35 = vector.extract_strided_slice %10 {offsets = [0, 256], sizes = [16, 128], strides = [1, 1]} : vector<16x384xbf16> to vector<16x128xbf16>
    %36 = vector.extract_strided_slice %12 {offsets = [0, 256], sizes = [16, 128], strides = [1, 1]} : vector<16x384xf32> to vector<16x128xf32>
    %37 = vector.broadcast %4 : vector<1x128xf32> to vector<16x128xf32>
    %38 = arith.addf %36, %37 : vector<16x128xf32>
    %39 = arith.mulf %23, %38 : vector<16x128xf32>
    %40 = arith.extf %35 : vector<16x128xbf16> to vector<16x128xf32>
    %41 = arith.addf %40, %39 : vector<16x128xf32>
    %42 = math.tanh %41 : vector<16x128xf32>
    %cst_17 = arith.constant 1.000000e+00 : f32
    %43 = vector.broadcast %cst_17 : f32 to vector<16x128xf32>
    %44 = arith.subf %43, %34 : vector<16x128xf32>
    %45 = arith.mulf %44, %42 : vector<16x128xf32>
    %46 = arith.mulf %34, %7 : vector<16x128xf32>
    %47 = arith.addf %45, %46 : vector<16x128xf32>
    %48 = arith.addi %6, %c0_i32_8 : i32
    %49 = vector.broadcast %48 : i32 to vector<16x1xi32>
    %50 = arith.cmpi sgt, %5, %49 : vector<16x1xi32>
    %51 = vector.shape_cast %50 : vector<16x1xi1> to vector<16x1xi1>
    %52 = vector.broadcast %51 : vector<16x1xi1> to vector<16x128xi1>
    %53 = arith.select %52, %47, %7 : vector<16x128xi1>, vector<16x128xf32>
    %c1_i32 = arith.constant 1 : i32
    %54 = arith.index_cast %c1_i32 : i32 to index
    %c0_18 = arith.constant 0 : index
    %c0_19 = arith.constant 0 : index
    %55 = vector.load %arg2[%54, %c0_18, %c0_19] : memref<8x16x384xbf16, #tpu.memory_space<vmem>>, vector<1x16x384xbf16>
    %56 = vector.shape_cast %55 : vector<1x16x384xbf16> to vector<16x384xbf16>
    %57 = arith.truncf %53 : vector<16x128xf32> to vector<16x128xbf16>
    %cst_20 = arith.constant dense<0.000000e+00> : vector<16x384xf32>
    %58 = tpu.matmul %57, %3, %cst_20 {dimension_numbers = #tpu.dot_dimension_numbers<[1], [0], [0], [1], [0, 0, 1, 1], [], []>} : vector<16x128xbf16>, vector<128x384xbf16>, vector<16x384xf32> -> vector<16x384xf32>
    %59 = vector.extract_strided_slice %56 {offsets = [0, 0], sizes = [16, 128], strides = [1, 1]} : vector<16x384xbf16> to vector<16x128xbf16>
    %60 = vector.extract_strided_slice %58 {offsets = [0, 0], sizes = [16, 128], strides = [1, 1]} : vector<16x384xf32> to vector<16x128xf32>
    %61 = arith.extf %59 : vector<16x128xbf16> to vector<16x128xf32>
    %62 = arith.addf %61, %60 : vector<16x128xf32>
    %cst_21 = arith.constant 5.000000e-01 : f32
    %63 = vector.broadcast %cst_21 : f32 to vector<16x128xf32>
    %64 = arith.mulf %63, %62 : vector<16x128xf32>
    %65 = math.tanh %64 : vector<16x128xf32>
    %cst_22 = arith.constant 5.000000e-01 : f32
    %66 = vector.broadcast %cst_22 : f32 to vector<16x128xf32>
    %67 = arith.mulf %66, %65 : vector<16x128xf32>
    %cst_23 = arith.constant 5.000000e-01 : f32
    %68 = vector.broadcast %cst_23 : f32 to vector<16x128xf32>
    %69 = arith.addf %67, %68 : vector<16x128xf32>
    %70 = vector.extract_strided_slice %56 {offsets = [0, 128], sizes = [16, 128], strides = [1, 1]} : vector<16x384xbf16> to vector<16x128xbf16>
    %71 = vector.extract_strided_slice %58 {offsets = [0, 128], sizes = [16, 128], strides = [1, 1]} : vector<16x384xf32> to vector<16x128xf32>
    %72 = arith.extf %70 : vector<16x128xbf16> to vector<16x128xf32>
    %73 = arith.addf %72, %71 : vector<16x128xf32>
    %cst_24 = arith.constant 5.000000e-01 : f32
    %74 = vector.broadcast %cst_24 : f32 to vector<16x128xf32>
    %75 = arith.mulf %74, %73 : vector<16x128xf32>
    %76 = math.tanh %75 : vector<16x128xf32>
    %cst_25 = arith.constant 5.000000e-01 : f32
    %77 = vector.broadcast %cst_25 : f32 to vector<16x128xf32>
    %78 = arith.mulf %77, %76 : vector<16x128xf32>
    %cst_26 = arith.constant 5.000000e-01 : f32
    %79 = vector.broadcast %cst_26 : f32 to vector<16x128xf32>
    %80 = arith.addf %78, %79 : vector<16x128xf32>
    %81 = vector.extract_strided_slice %56 {offsets = [0, 256], sizes = [16, 128], strides = [1, 1]} : vector<16x384xbf16> to vector<16x128xbf16>
    %82 = vector.extract_strided_slice %58 {offsets = [0, 256], sizes = [16, 128], strides = [1, 1]} : vector<16x384xf32> to vector<16x128xf32>
    %83 = vector.broadcast %4 : vector<1x128xf32> to vector<16x128xf32>
    %84 = arith.addf %82, %83 : vector<16x128xf32>
    %85 = arith.mulf %69, %84 : vector<16x128xf32>
    %86 = arith.extf %81 : vector<16x128xbf16> to vector<16x128xf32>
    %87 = arith.addf %86, %85 : vector<16x128xf32>
    %88 = math.tanh %87 : vector<16x128xf32>
    %cst_27 = arith.constant 1.000000e+00 : f32
    %89 = vector.broadcast %cst_27 : f32 to vector<16x128xf32>
    %90 = arith.subf %89, %80 : vector<16x128xf32>
    %91 = arith.mulf %90, %88 : vector<16x128xf32>
    %92 = arith.mulf %80, %53 : vector<16x128xf32>
    %93 = arith.addf %91, %92 : vector<16x128xf32>
    %94 = arith.addi %6, %c1_i32 : i32
    %95 = vector.broadcast %94 : i32 to vector<16x1xi32>
    %96 = arith.cmpi sgt, %5, %95 : vector<16x1xi32>
    %97 = vector.shape_cast %96 : vector<16x1xi1> to vector<16x1xi1>
    %98 = vector.broadcast %97 : vector<16x1xi1> to vector<16x128xi1>
    %99 = arith.select %98, %93, %53 : vector<16x128xi1>, vector<16x128xf32>
    %c2_i32 = arith.constant 2 : i32
    %100 = arith.index_cast %c2_i32 : i32 to index
    %c0_28 = arith.constant 0 : index
    %c0_29 = arith.constant 0 : index
    %101 = vector.load %arg2[%100, %c0_28, %c0_29] : memref<8x16x384xbf16, #tpu.memory_space<vmem>>, vector<1x16x384xbf16>
    %102 = vector.shape_cast %101 : vector<1x16x384xbf16> to vector<16x384xbf16>
    %103 = arith.truncf %99 : vector<16x128xf32> to vector<16x128xbf16>
    %cst_30 = arith.constant dense<0.000000e+00> : vector<16x384xf32>
    %104 = tpu.matmul %103, %3, %cst_30 {dimension_numbers = #tpu.dot_dimension_numbers<[1], [0], [0], [1], [0, 0, 1, 1], [], []>} : vector<16x128xbf16>, vector<128x384xbf16>, vector<16x384xf32> -> vector<16x384xf32>
    %105 = vector.extract_strided_slice %102 {offsets = [0, 0], sizes = [16, 128], strides = [1, 1]} : vector<16x384xbf16> to vector<16x128xbf16>
    %106 = vector.extract_strided_slice %104 {offsets = [0, 0], sizes = [16, 128], strides = [1, 1]} : vector<16x384xf32> to vector<16x128xf32>
    %107 = arith.extf %105 : vector<16x128xbf16> to vector<16x128xf32>
    %108 = arith.addf %107, %106 : vector<16x128xf32>
    %cst_31 = arith.constant 5.000000e-01 : f32
    %109 = vector.broadcast %cst_31 : f32 to vector<16x128xf32>
    %110 = arith.mulf %109, %108 : vector<16x128xf32>
    %111 = math.tanh %110 : vector<16x128xf32>
    %cst_32 = arith.constant 5.000000e-01 : f32
    %112 = vector.broadcast %cst_32 : f32 to vector<16x128xf32>
    %113 = arith.mulf %112, %111 : vector<16x128xf32>
    %cst_33 = arith.constant 5.000000e-01 : f32
    %114 = vector.broadcast %cst_33 : f32 to vector<16x128xf32>
    %115 = arith.addf %113, %114 : vector<16x128xf32>
    %116 = vector.extract_strided_slice %102 {offsets = [0, 128], sizes = [16, 128], strides = [1, 1]} : vector<16x384xbf16> to vector<16x128xbf16>
    %117 = vector.extract_strided_slice %104 {offsets = [0, 128], sizes = [16, 128], strides = [1, 1]} : vector<16x384xf32> to vector<16x128xf32>
    %118 = arith.extf %116 : vector<16x128xbf16> to vector<16x128xf32>
    %119 = arith.addf %118, %117 : vector<16x128xf32>
    %cst_34 = arith.constant 5.000000e-01 : f32
    %120 = vector.broadcast %cst_34 : f32 to vector<16x128xf32>
    %121 = arith.mulf %120, %119 : vector<16x128xf32>
    %122 = math.tanh %121 : vector<16x128xf32>
    %cst_35 = arith.constant 5.000000e-01 : f32
    %123 = vector.broadcast %cst_35 : f32 to vector<16x128xf32>
    %124 = arith.mulf %123, %122 : vector<16x128xf32>
    %cst_36 = arith.constant 5.000000e-01 : f32
    %125 = vector.broadcast %cst_36 : f32 to vector<16x128xf32>
    %126 = arith.addf %124, %125 : vector<16x128xf32>
    %127 = vector.extract_strided_slice %102 {offsets = [0, 256], sizes = [16, 128], strides = [1, 1]} : vector<16x384xbf16> to vector<16x128xbf16>
    %128 = vector.extract_strided_slice %104 {offsets = [0, 256], sizes = [16, 128], strides = [1, 1]} : vector<16x384xf32> to vector<16x128xf32>
    %129 = vector.broadcast %4 : vector<1x128xf32> to vector<16x128xf32>
    %130 = arith.addf %128, %129 : vector<16x128xf32>
    %131 = arith.mulf %115, %130 : vector<16x128xf32>
    %132 = arith.extf %127 : vector<16x128xbf16> to vector<16x128xf32>
    %133 = arith.addf %132, %131 : vector<16x128xf32>
    %134 = math.tanh %133 : vector<16x128xf32>
    %cst_37 = arith.constant 1.000000e+00 : f32
    %135 = vector.broadcast %cst_37 : f32 to vector<16x128xf32>
    %136 = arith.subf %135, %126 : vector<16x128xf32>
    %137 = arith.mulf %136, %134 : vector<16x128xf32>
    %138 = arith.mulf %126, %99 : vector<16x128xf32>
    %139 = arith.addf %137, %138 : vector<16x128xf32>
    %140 = arith.addi %6, %c2_i32 : i32
    %141 = vector.broadcast %140 : i32 to vector<16x1xi32>
    %142 = arith.cmpi sgt, %5, %141 : vector<16x1xi32>
    %143 = vector.shape_cast %142 : vector<16x1xi1> to vector<16x1xi1>
    %144 = vector.broadcast %143 : vector<16x1xi1> to vector<16x128xi1>
    %145 = arith.select %144, %139, %99 : vector<16x128xi1>, vector<16x128xf32>
    %c3_i32 = arith.constant 3 : i32
    %146 = arith.index_cast %c3_i32 : i32 to index
    %c0_38 = arith.constant 0 : index
    %c0_39 = arith.constant 0 : index
    %147 = vector.load %arg2[%146, %c0_38, %c0_39] : memref<8x16x384xbf16, #tpu.memory_space<vmem>>, vector<1x16x384xbf16>
    %148 = vector.shape_cast %147 : vector<1x16x384xbf16> to vector<16x384xbf16>
    %149 = arith.truncf %145 : vector<16x128xf32> to vector<16x128xbf16>
    %cst_40 = arith.constant dense<0.000000e+00> : vector<16x384xf32>
    %150 = tpu.matmul %149, %3, %cst_40 {dimension_numbers = #tpu.dot_dimension_numbers<[1], [0], [0], [1], [0, 0, 1, 1], [], []>} : vector<16x128xbf16>, vector<128x384xbf16>, vector<16x384xf32> -> vector<16x384xf32>
    %151 = vector.extract_strided_slice %148 {offsets = [0, 0], sizes = [16, 128], strides = [1, 1]} : vector<16x384xbf16> to vector<16x128xbf16>
    %152 = vector.extract_strided_slice %150 {offsets = [0, 0], sizes = [16, 128], strides = [1, 1]} : vector<16x384xf32> to vector<16x128xf32>
    %153 = arith.extf %151 : vector<16x128xbf16> to vector<16x128xf32>
    %154 = arith.addf %153, %152 : vector<16x128xf32>
    %cst_41 = arith.constant 5.000000e-01 : f32
    %155 = vector.broadcast %cst_41 : f32 to vector<16x128xf32>
    %156 = arith.mulf %155, %154 : vector<16x128xf32>
    %157 = math.tanh %156 : vector<16x128xf32>
    %cst_42 = arith.constant 5.000000e-01 : f32
    %158 = vector.broadcast %cst_42 : f32 to vector<16x128xf32>
    %159 = arith.mulf %158, %157 : vector<16x128xf32>
    %cst_43 = arith.constant 5.000000e-01 : f32
    %160 = vector.broadcast %cst_43 : f32 to vector<16x128xf32>
    %161 = arith.addf %159, %160 : vector<16x128xf32>
    %162 = vector.extract_strided_slice %148 {offsets = [0, 128], sizes = [16, 128], strides = [1, 1]} : vector<16x384xbf16> to vector<16x128xbf16>
    %163 = vector.extract_strided_slice %150 {offsets = [0, 128], sizes = [16, 128], strides = [1, 1]} : vector<16x384xf32> to vector<16x128xf32>
    %164 = arith.extf %162 : vector<16x128xbf16> to vector<16x128xf32>
    %165 = arith.addf %164, %163 : vector<16x128xf32>
    %cst_44 = arith.constant 5.000000e-01 : f32
    %166 = vector.broadcast %cst_44 : f32 to vector<16x128xf32>
    %167 = arith.mulf %166, %165 : vector<16x128xf32>
    %168 = math.tanh %167 : vector<16x128xf32>
    %cst_45 = arith.constant 5.000000e-01 : f32
    %169 = vector.broadcast %cst_45 : f32 to vector<16x128xf32>
    %170 = arith.mulf %169, %168 : vector<16x128xf32>
    %cst_46 = arith.constant 5.000000e-01 : f32
    %171 = vector.broadcast %cst_46 : f32 to vector<16x128xf32>
    %172 = arith.addf %170, %171 : vector<16x128xf32>
    %173 = vector.extract_strided_slice %148 {offsets = [0, 256], sizes = [16, 128], strides = [1, 1]} : vector<16x384xbf16> to vector<16x128xbf16>
    %174 = vector.extract_strided_slice %150 {offsets = [0, 256], sizes = [16, 128], strides = [1, 1]} : vector<16x384xf32> to vector<16x128xf32>
    %175 = vector.broadcast %4 : vector<1x128xf32> to vector<16x128xf32>
    %176 = arith.addf %174, %175 : vector<16x128xf32>
    %177 = arith.mulf %161, %176 : vector<16x128xf32>
    %178 = arith.extf %173 : vector<16x128xbf16> to vector<16x128xf32>
    %179 = arith.addf %178, %177 : vector<16x128xf32>
    %180 = math.tanh %179 : vector<16x128xf32>
    %cst_47 = arith.constant 1.000000e+00 : f32
    %181 = vector.broadcast %cst_47 : f32 to vector<16x128xf32>
    %182 = arith.subf %181, %172 : vector<16x128xf32>
    %183 = arith.mulf %182, %180 : vector<16x128xf32>
    %184 = arith.mulf %172, %145 : vector<16x128xf32>
    %185 = arith.addf %183, %184 : vector<16x128xf32>
    %186 = arith.addi %6, %c3_i32 : i32
    %187 = vector.broadcast %186 : i32 to vector<16x1xi32>
    %188 = arith.cmpi sgt, %5, %187 : vector<16x1xi32>
    %189 = vector.shape_cast %188 : vector<16x1xi1> to vector<16x1xi1>
    %190 = vector.broadcast %189 : vector<16x1xi1> to vector<16x128xi1>
    %191 = arith.select %190, %185, %145 : vector<16x128xi1>, vector<16x128xf32>
    %c4_i32 = arith.constant 4 : i32
    %192 = arith.index_cast %c4_i32 : i32 to index
    %c0_48 = arith.constant 0 : index
    %c0_49 = arith.constant 0 : index
    %193 = vector.load %arg2[%192, %c0_48, %c0_49] : memref<8x16x384xbf16, #tpu.memory_space<vmem>>, vector<1x16x384xbf16>
    %194 = vector.shape_cast %193 : vector<1x16x384xbf16> to vector<16x384xbf16>
    %195 = arith.truncf %191 : vector<16x128xf32> to vector<16x128xbf16>
    %cst_50 = arith.constant dense<0.000000e+00> : vector<16x384xf32>
    %196 = tpu.matmul %195, %3, %cst_50 {dimension_numbers = #tpu.dot_dimension_numbers<[1], [0], [0], [1], [0, 0, 1, 1], [], []>} : vector<16x128xbf16>, vector<128x384xbf16>, vector<16x384xf32> -> vector<16x384xf32>
    %197 = vector.extract_strided_slice %194 {offsets = [0, 0], sizes = [16, 128], strides = [1, 1]} : vector<16x384xbf16> to vector<16x128xbf16>
    %198 = vector.extract_strided_slice %196 {offsets = [0, 0], sizes = [16, 128], strides = [1, 1]} : vector<16x384xf32> to vector<16x128xf32>
    %199 = arith.extf %197 : vector<16x128xbf16> to vector<16x128xf32>
    %200 = arith.addf %199, %198 : vector<16x128xf32>
    %cst_51 = arith.constant 5.000000e-01 : f32
    %201 = vector.broadcast %cst_51 : f32 to vector<16x128xf32>
    %202 = arith.mulf %201, %200 : vector<16x128xf32>
    %203 = math.tanh %202 : vector<16x128xf32>
    %cst_52 = arith.constant 5.000000e-01 : f32
    %204 = vector.broadcast %cst_52 : f32 to vector<16x128xf32>
    %205 = arith.mulf %204, %203 : vector<16x128xf32>
    %cst_53 = arith.constant 5.000000e-01 : f32
    %206 = vector.broadcast %cst_53 : f32 to vector<16x128xf32>
    %207 = arith.addf %205, %206 : vector<16x128xf32>
    %208 = vector.extract_strided_slice %194 {offsets = [0, 128], sizes = [16, 128], strides = [1, 1]} : vector<16x384xbf16> to vector<16x128xbf16>
    %209 = vector.extract_strided_slice %196 {offsets = [0, 128], sizes = [16, 128], strides = [1, 1]} : vector<16x384xf32> to vector<16x128xf32>
    %210 = arith.extf %208 : vector<16x128xbf16> to vector<16x128xf32>
    %211 = arith.addf %210, %209 : vector<16x128xf32>
    %cst_54 = arith.constant 5.000000e-01 : f32
    %212 = vector.broadcast %cst_54 : f32 to vector<16x128xf32>
    %213 = arith.mulf %212, %211 : vector<16x128xf32>
    %214 = math.tanh %213 : vector<16x128xf32>
    %cst_55 = arith.constant 5.000000e-01 : f32
    %215 = vector.broadcast %cst_55 : f32 to vector<16x128xf32>
    %216 = arith.mulf %215, %214 : vector<16x128xf32>
    %cst_56 = arith.constant 5.000000e-01 : f32
    %217 = vector.broadcast %cst_56 : f32 to vector<16x128xf32>
    %218 = arith.addf %216, %217 : vector<16x128xf32>
    %219 = vector.extract_strided_slice %194 {offsets = [0, 256], sizes = [16, 128], strides = [1, 1]} : vector<16x384xbf16> to vector<16x128xbf16>
    %220 = vector.extract_strided_slice %196 {offsets = [0, 256], sizes = [16, 128], strides = [1, 1]} : vector<16x384xf32> to vector<16x128xf32>
    %221 = vector.broadcast %4 : vector<1x128xf32> to vector<16x128xf32>
    %222 = arith.addf %220, %221 : vector<16x128xf32>
    %223 = arith.mulf %207, %222 : vector<16x128xf32>
    %224 = arith.extf %219 : vector<16x128xbf16> to vector<16x128xf32>
    %225 = arith.addf %224, %223 : vector<16x128xf32>
    %226 = math.tanh %225 : vector<16x128xf32>
    %cst_57 = arith.constant 1.000000e+00 : f32
    %227 = vector.broadcast %cst_57 : f32 to vector<16x128xf32>
    %228 = arith.subf %227, %218 : vector<16x128xf32>
    %229 = arith.mulf %228, %226 : vector<16x128xf32>
    %230 = arith.mulf %218, %191 : vector<16x128xf32>
    %231 = arith.addf %229, %230 : vector<16x128xf32>
    %232 = arith.addi %6, %c4_i32 : i32
    %233 = vector.broadcast %232 : i32 to vector<16x1xi32>
    %234 = arith.cmpi sgt, %5, %233 : vector<16x1xi32>
    %235 = vector.shape_cast %234 : vector<16x1xi1> to vector<16x1xi1>
    %236 = vector.broadcast %235 : vector<16x1xi1> to vector<16x128xi1>
    %237 = arith.select %236, %231, %191 : vector<16x128xi1>, vector<16x128xf32>
    %c5_i32 = arith.constant 5 : i32
    %238 = arith.index_cast %c5_i32 : i32 to index
    %c0_58 = arith.constant 0 : index
    %c0_59 = arith.constant 0 : index
    %239 = vector.load %arg2[%238, %c0_58, %c0_59] : memref<8x16x384xbf16, #tpu.memory_space<vmem>>, vector<1x16x384xbf16>
    %240 = vector.shape_cast %239 : vector<1x16x384xbf16> to vector<16x384xbf16>
    %241 = arith.truncf %237 : vector<16x128xf32> to vector<16x128xbf16>
    %cst_60 = arith.constant dense<0.000000e+00> : vector<16x384xf32>
    %242 = tpu.matmul %241, %3, %cst_60 {dimension_numbers = #tpu.dot_dimension_numbers<[1], [0], [0], [1], [0, 0, 1, 1], [], []>} : vector<16x128xbf16>, vector<128x384xbf16>, vector<16x384xf32> -> vector<16x384xf32>
    %243 = vector.extract_strided_slice %240 {offsets = [0, 0], sizes = [16, 128], strides = [1, 1]} : vector<16x384xbf16> to vector<16x128xbf16>
    %244 = vector.extract_strided_slice %242 {offsets = [0, 0], sizes = [16, 128], strides = [1, 1]} : vector<16x384xf32> to vector<16x128xf32>
    %245 = arith.extf %243 : vector<16x128xbf16> to vector<16x128xf32>
    %246 = arith.addf %245, %244 : vector<16x128xf32>
    %cst_61 = arith.constant 5.000000e-01 : f32
    %247 = vector.broadcast %cst_61 : f32 to vector<16x128xf32>
    %248 = arith.mulf %247, %246 : vector<16x128xf32>
    %249 = math.tanh %248 : vector<16x128xf32>
    %cst_62 = arith.constant 5.000000e-01 : f32
    %250 = vector.broadcast %cst_62 : f32 to vector<16x128xf32>
    %251 = arith.mulf %250, %249 : vector<16x128xf32>
    %cst_63 = arith.constant 5.000000e-01 : f32
    %252 = vector.broadcast %cst_63 : f32 to vector<16x128xf32>
    %253 = arith.addf %251, %252 : vector<16x128xf32>
    %254 = vector.extract_strided_slice %240 {offsets = [0, 128], sizes = [16, 128], strides = [1, 1]} : vector<16x384xbf16> to vector<16x128xbf16>
    %255 = vector.extract_strided_slice %242 {offsets = [0, 128], sizes = [16, 128], strides = [1, 1]} : vector<16x384xf32> to vector<16x128xf32>
    %256 = arith.extf %254 : vector<16x128xbf16> to vector<16x128xf32>
    %257 = arith.addf %256, %255 : vector<16x128xf32>
    %cst_64 = arith.constant 5.000000e-01 : f32
    %258 = vector.broadcast %cst_64 : f32 to vector<16x128xf32>
    %259 = arith.mulf %258, %257 : vector<16x128xf32>
    %260 = math.tanh %259 : vector<16x128xf32>
    %cst_65 = arith.constant 5.000000e-01 : f32
    %261 = vector.broadcast %cst_65 : f32 to vector<16x128xf32>
    %262 = arith.mulf %261, %260 : vector<16x128xf32>
    %cst_66 = arith.constant 5.000000e-01 : f32
    %263 = vector.broadcast %cst_66 : f32 to vector<16x128xf32>
    %264 = arith.addf %262, %263 : vector<16x128xf32>
    %265 = vector.extract_strided_slice %240 {offsets = [0, 256], sizes = [16, 128], strides = [1, 1]} : vector<16x384xbf16> to vector<16x128xbf16>
    %266 = vector.extract_strided_slice %242 {offsets = [0, 256], sizes = [16, 128], strides = [1, 1]} : vector<16x384xf32> to vector<16x128xf32>
    %267 = vector.broadcast %4 : vector<1x128xf32> to vector<16x128xf32>
    %268 = arith.addf %266, %267 : vector<16x128xf32>
    %269 = arith.mulf %253, %268 : vector<16x128xf32>
    %270 = arith.extf %265 : vector<16x128xbf16> to vector<16x128xf32>
    %271 = arith.addf %270, %269 : vector<16x128xf32>
    %272 = math.tanh %271 : vector<16x128xf32>
    %cst_67 = arith.constant 1.000000e+00 : f32
    %273 = vector.broadcast %cst_67 : f32 to vector<16x128xf32>
    %274 = arith.subf %273, %264 : vector<16x128xf32>
    %275 = arith.mulf %274, %272 : vector<16x128xf32>
    %276 = arith.mulf %264, %237 : vector<16x128xf32>
    %277 = arith.addf %275, %276 : vector<16x128xf32>
    %278 = arith.addi %6, %c5_i32 : i32
    %279 = vector.broadcast %278 : i32 to vector<16x1xi32>
    %280 = arith.cmpi sgt, %5, %279 : vector<16x1xi32>
    %281 = vector.shape_cast %280 : vector<16x1xi1> to vector<16x1xi1>
    %282 = vector.broadcast %281 : vector<16x1xi1> to vector<16x128xi1>
    %283 = arith.select %282, %277, %237 : vector<16x128xi1>, vector<16x128xf32>
    %c6_i32 = arith.constant 6 : i32
    %284 = arith.index_cast %c6_i32 : i32 to index
    %c0_68 = arith.constant 0 : index
    %c0_69 = arith.constant 0 : index
    %285 = vector.load %arg2[%284, %c0_68, %c0_69] : memref<8x16x384xbf16, #tpu.memory_space<vmem>>, vector<1x16x384xbf16>
    %286 = vector.shape_cast %285 : vector<1x16x384xbf16> to vector<16x384xbf16>
    %287 = arith.truncf %283 : vector<16x128xf32> to vector<16x128xbf16>
    %cst_70 = arith.constant dense<0.000000e+00> : vector<16x384xf32>
    %288 = tpu.matmul %287, %3, %cst_70 {dimension_numbers = #tpu.dot_dimension_numbers<[1], [0], [0], [1], [0, 0, 1, 1], [], []>} : vector<16x128xbf16>, vector<128x384xbf16>, vector<16x384xf32> -> vector<16x384xf32>
    %289 = vector.extract_strided_slice %286 {offsets = [0, 0], sizes = [16, 128], strides = [1, 1]} : vector<16x384xbf16> to vector<16x128xbf16>
    %290 = vector.extract_strided_slice %288 {offsets = [0, 0], sizes = [16, 128], strides = [1, 1]} : vector<16x384xf32> to vector<16x128xf32>
    %291 = arith.extf %289 : vector<16x128xbf16> to vector<16x128xf32>
    %292 = arith.addf %291, %290 : vector<16x128xf32>
    %cst_71 = arith.constant 5.000000e-01 : f32
    %293 = vector.broadcast %cst_71 : f32 to vector<16x128xf32>
    %294 = arith.mulf %293, %292 : vector<16x128xf32>
    %295 = math.tanh %294 : vector<16x128xf32>
    %cst_72 = arith.constant 5.000000e-01 : f32
    %296 = vector.broadcast %cst_72 : f32 to vector<16x128xf32>
    %297 = arith.mulf %296, %295 : vector<16x128xf32>
    %cst_73 = arith.constant 5.000000e-01 : f32
    %298 = vector.broadcast %cst_73 : f32 to vector<16x128xf32>
    %299 = arith.addf %297, %298 : vector<16x128xf32>
    %300 = vector.extract_strided_slice %286 {offsets = [0, 128], sizes = [16, 128], strides = [1, 1]} : vector<16x384xbf16> to vector<16x128xbf16>
    %301 = vector.extract_strided_slice %288 {offsets = [0, 128], sizes = [16, 128], strides = [1, 1]} : vector<16x384xf32> to vector<16x128xf32>
    %302 = arith.extf %300 : vector<16x128xbf16> to vector<16x128xf32>
    %303 = arith.addf %302, %301 : vector<16x128xf32>
    %cst_74 = arith.constant 5.000000e-01 : f32
    %304 = vector.broadcast %cst_74 : f32 to vector<16x128xf32>
    %305 = arith.mulf %304, %303 : vector<16x128xf32>
    %306 = math.tanh %305 : vector<16x128xf32>
    %cst_75 = arith.constant 5.000000e-01 : f32
    %307 = vector.broadcast %cst_75 : f32 to vector<16x128xf32>
    %308 = arith.mulf %307, %306 : vector<16x128xf32>
    %cst_76 = arith.constant 5.000000e-01 : f32
    %309 = vector.broadcast %cst_76 : f32 to vector<16x128xf32>
    %310 = arith.addf %308, %309 : vector<16x128xf32>
    %311 = vector.extract_strided_slice %286 {offsets = [0, 256], sizes = [16, 128], strides = [1, 1]} : vector<16x384xbf16> to vector<16x128xbf16>
    %312 = vector.extract_strided_slice %288 {offsets = [0, 256], sizes = [16, 128], strides = [1, 1]} : vector<16x384xf32> to vector<16x128xf32>
    %313 = vector.broadcast %4 : vector<1x128xf32> to vector<16x128xf32>
    %314 = arith.addf %312, %313 : vector<16x128xf32>
    %315 = arith.mulf %299, %314 : vector<16x128xf32>
    %316 = arith.extf %311 : vector<16x128xbf16> to vector<16x128xf32>
    %317 = arith.addf %316, %315 : vector<16x128xf32>
    %318 = math.tanh %317 : vector<16x128xf32>
    %cst_77 = arith.constant 1.000000e+00 : f32
    %319 = vector.broadcast %cst_77 : f32 to vector<16x128xf32>
    %320 = arith.subf %319, %310 : vector<16x128xf32>
    %321 = arith.mulf %320, %318 : vector<16x128xf32>
    %322 = arith.mulf %310, %283 : vector<16x128xf32>
    %323 = arith.addf %321, %322 : vector<16x128xf32>
    %324 = arith.addi %6, %c6_i32 : i32
    %325 = vector.broadcast %324 : i32 to vector<16x1xi32>
    %326 = arith.cmpi sgt, %5, %325 : vector<16x1xi32>
    %327 = vector.shape_cast %326 : vector<16x1xi1> to vector<16x1xi1>
    %328 = vector.broadcast %327 : vector<16x1xi1> to vector<16x128xi1>
    %329 = arith.select %328, %323, %283 : vector<16x128xi1>, vector<16x128xf32>
    %c7_i32 = arith.constant 7 : i32
    %330 = arith.index_cast %c7_i32 : i32 to index
    %c0_78 = arith.constant 0 : index
    %c0_79 = arith.constant 0 : index
    %331 = vector.load %arg2[%330, %c0_78, %c0_79] : memref<8x16x384xbf16, #tpu.memory_space<vmem>>, vector<1x16x384xbf16>
    %332 = vector.shape_cast %331 : vector<1x16x384xbf16> to vector<16x384xbf16>
    %333 = arith.truncf %329 : vector<16x128xf32> to vector<16x128xbf16>
    %cst_80 = arith.constant dense<0.000000e+00> : vector<16x384xf32>
    %334 = tpu.matmul %333, %3, %cst_80 {dimension_numbers = #tpu.dot_dimension_numbers<[1], [0], [0], [1], [0, 0, 1, 1], [], []>} : vector<16x128xbf16>, vector<128x384xbf16>, vector<16x384xf32> -> vector<16x384xf32>
    %335 = vector.extract_strided_slice %332 {offsets = [0, 0], sizes = [16, 128], strides = [1, 1]} : vector<16x384xbf16> to vector<16x128xbf16>
    %336 = vector.extract_strided_slice %334 {offsets = [0, 0], sizes = [16, 128], strides = [1, 1]} : vector<16x384xf32> to vector<16x128xf32>
    %337 = arith.extf %335 : vector<16x128xbf16> to vector<16x128xf32>
    %338 = arith.addf %337, %336 : vector<16x128xf32>
    %cst_81 = arith.constant 5.000000e-01 : f32
    %339 = vector.broadcast %cst_81 : f32 to vector<16x128xf32>
    %340 = arith.mulf %339, %338 : vector<16x128xf32>
    %341 = math.tanh %340 : vector<16x128xf32>
    %cst_82 = arith.constant 5.000000e-01 : f32
    %342 = vector.broadcast %cst_82 : f32 to vector<16x128xf32>
    %343 = arith.mulf %342, %341 : vector<16x128xf32>
    %cst_83 = arith.constant 5.000000e-01 : f32
    %344 = vector.broadcast %cst_83 : f32 to vector<16x128xf32>
    %345 = arith.addf %343, %344 : vector<16x128xf32>
    %346 = vector.extract_strided_slice %332 {offsets = [0, 128], sizes = [16, 128], strides = [1, 1]} : vector<16x384xbf16> to vector<16x128xbf16>
    %347 = vector.extract_strided_slice %334 {offsets = [0, 128], sizes = [16, 128], strides = [1, 1]} : vector<16x384xf32> to vector<16x128xf32>
    %348 = arith.extf %346 : vector<16x128xbf16> to vector<16x128xf32>
    %349 = arith.addf %348, %347 : vector<16x128xf32>
    %cst_84 = arith.constant 5.000000e-01 : f32
    %350 = vector.broadcast %cst_84 : f32 to vector<16x128xf32>
    %351 = arith.mulf %350, %349 : vector<16x128xf32>
    %352 = math.tanh %351 : vector<16x128xf32>
    %cst_85 = arith.constant 5.000000e-01 : f32
    %353 = vector.broadcast %cst_85 : f32 to vector<16x128xf32>
    %354 = arith.mulf %353, %352 : vector<16x128xf32>
    %cst_86 = arith.constant 5.000000e-01 : f32
    %355 = vector.broadcast %cst_86 : f32 to vector<16x128xf32>
    %356 = arith.addf %354, %355 : vector<16x128xf32>
    %357 = vector.extract_strided_slice %332 {offsets = [0, 256], sizes = [16, 128], strides = [1, 1]} : vector<16x384xbf16> to vector<16x128xbf16>
    %358 = vector.extract_strided_slice %334 {offsets = [0, 256], sizes = [16, 128], strides = [1, 1]} : vector<16x384xf32> to vector<16x128xf32>
    %359 = vector.broadcast %4 : vector<1x128xf32> to vector<16x128xf32>
    %360 = arith.addf %358, %359 : vector<16x128xf32>
    %361 = arith.mulf %345, %360 : vector<16x128xf32>
    %362 = arith.extf %357 : vector<16x128xbf16> to vector<16x128xf32>
    %363 = arith.addf %362, %361 : vector<16x128xf32>
    %364 = math.tanh %363 : vector<16x128xf32>
    %cst_87 = arith.constant 1.000000e+00 : f32
    %365 = vector.broadcast %cst_87 : f32 to vector<16x128xf32>
    %366 = arith.subf %365, %356 : vector<16x128xf32>
    %367 = arith.mulf %366, %364 : vector<16x128xf32>
    %368 = arith.mulf %356, %329 : vector<16x128xf32>
    %369 = arith.addf %367, %368 : vector<16x128xf32>
    %370 = arith.addi %6, %c7_i32 : i32
    %371 = vector.broadcast %370 : i32 to vector<16x1xi32>
    %372 = arith.cmpi sgt, %5, %371 : vector<16x1xi32>
    %373 = vector.shape_cast %372 : vector<16x1xi1> to vector<16x1xi1>
    %374 = vector.broadcast %373 : vector<16x1xi1> to vector<16x128xi1>
    %375 = arith.select %374, %369, %329 : vector<16x128xi1>, vector<16x128xf32>
    %c8_i32_88 = arith.constant 8 : i32
    %c0_89 = arith.constant 0 : index
    %c0_90 = arith.constant 0 : index
    %376 = vector.load %arg9[%c0_89, %c0_90] : memref<16x128xf32, #tpu.memory_space<vmem>>, vector<16x128xf32>
    tpu.vector_store %arg9[%c0_89, %c0_90], %375 {strides = array<i32>} : memref<16x128xf32, #tpu.memory_space<vmem>>, vector<16x128xf32>,
    %c0_i32_91 = arith.constant 0 : i32
    %377 = arith.cmpi eq, %arg1, %c0_i32_91 : i32
    %378 = arith.extui %377 : i1 to i32
    %c0_i32_92 = arith.constant 0 : i32
    %379 = arith.cmpi ne, %378, %c0_i32_92 : i32
    scf.if %379 {
      %380 = arith.truncf %375 : vector<16x128xf32> to vector<16x128xbf16>
      %c0_93 = arith.constant 0 : index
      %c0_94 = arith.constant 0 : index
      %381 = vector.load %arg6[%c0_93, %c0_94] : memref<128x128xbf16, #tpu.memory_space<vmem>>, vector<128x128xbf16>
      %cst_95 = arith.constant dense<0.000000e+00> : vector<16x128xf32>
      %382 = tpu.matmul %380, %381, %cst_95 {dimension_numbers = #tpu.dot_dimension_numbers<[1], [0], [0], [1], [0, 0, 1, 1], [], []>} : vector<16x128xbf16>, vector<128x128xbf16>, vector<16x128xf32> -> vector<16x128xf32>
      %c0_96 = arith.constant 0 : index
      %c0_97 = arith.constant 0 : index
      %383 = vector.load %arg7[%c0_96, %c0_97] : memref<1x128xf32, #tpu.memory_space<vmem>>, vector<1x128xf32>
      %384 = vector.broadcast %383 : vector<1x128xf32> to vector<16x128xf32>
      %385 = arith.addf %382, %384 : vector<16x128xf32>
      %c0_98 = arith.constant 0 : index
      %c0_99 = arith.constant 0 : index
      %386 = vector.load %arg8[%c0_98, %c0_99] : memref<16x128xf32, #tpu.memory_space<vmem>>, vector<16x128xf32>
      tpu.vector_store %arg8[%c0_98, %c0_99], %385 {strides = array<i32>} : memref<16x128xf32, #tpu.memory_space<vmem>>, vector<16x128xf32>,
    } else {
    }
    return
  }
  func.func @transform_0(%arg0: i32, %arg1: i32) -> (i32, i32, i32) {
    %c0_i32 = arith.constant 0 : i32
    %c0_i32_0 = arith.constant 0 : i32
    return %arg1, %arg0, %c0_i32 : i32, i32, i32
  }
  func.func @transform_1(%arg0: i32, %arg1: i32) -> (i32, i32) {
    %c0_i32 = arith.constant 0 : i32
    %c0_i32_0 = arith.constant 0 : i32
    %c0_i32_1 = arith.constant 0 : i32
    return %c0_i32, %c0_i32_0 : i32, i32
  }
  func.func @transform_2(%arg0: i32, %arg1: i32) -> (i32, i32) {
    %c0_i32 = arith.constant 0 : i32
    %c0_i32_0 = arith.constant 0 : i32
    %c0_i32_1 = arith.constant 0 : i32
    return %c0_i32, %c0_i32_0 : i32, i32
  }
  func.func @transform_3(%arg0: i32, %arg1: i32) -> (i32, i32) {
    %c0_i32 = arith.constant 0 : i32
    %c0_i32_0 = arith.constant 0 : i32
    return %arg0, %c0_i32 : i32, i32
  }
  func.func @transform_4(%arg0: i32, %arg1: i32) -> (i32, i32) {
    %c0_i32 = arith.constant 0 : i32
    %c0_i32_0 = arith.constant 0 : i32
    %c0_i32_1 = arith.constant 0 : i32
    return %c0_i32, %c0_i32_0 : i32, i32
  }
  func.func @transform_5(%arg0: i32, %arg1: i32) -> (i32, i32) {
    %c0_i32 = arith.constant 0 : i32
    %c0_i32_0 = arith.constant 0 : i32
    %c0_i32_1 = arith.constant 0 : i32
    return %c0_i32, %c0_i32_0 : i32, i32
  }
  func.func @transform_6(%arg0: i32, %arg1: i32) -> (i32, i32) {
    %c0_i32 = arith.constant 0 : i32
    %c0_i32_0 = arith.constant 0 : i32
    return %arg0, %c0_i32 : i32, i32
  }
}

</mosaic_0001>

<bundles_post_ra>
// kernel: rnn_classifier_forward.5
= control target key start
LH: loop header
LB: loop body
LE: loop exit
PB: predicated region body
PF: predicated region fallthrough
CT: control target
= control target key end

     0   :  { %v1914_v1 = vmov 0.0   ;;  %v1915_v2 = vmov 0   ;;  %vm1916_vm0 = vmmov 0   ;;  %v1917_v26 = vmov 0.0|0.0   ;;  %s2632_s1 = inlined_call_operand.vmem [shape: bf16[128,384], index: 1, kind: input, shape index: {}]   ;;  %s2633_s0 = inlined_call_operand.vmem [shape: bf16[8,16,384], index: 0, kind: input, shape index: {}]   ;;  %s2634_s2 = inlined_call_operand.vmem [shape: f32[1,128], index: 2, kind: input, shape index: {}]   ;;  %s2635_s3 = inlined_call_operand.vmem [shape: bf16[8,16,128], index: 3, kind: output, shape index: {}]  }
   0x1   :  { %v1941_v0 = vld [vmem:[%s2632_s1 + $0x4] ss:$12 sps:$4 sm:$0xff]   ;;  %1597 = vmatprep.subr.bf16.mxu1 %v1914_v1  ;;  %221 = vmatprep.mubr.bf16.mxu0 %v1915_v2  ;;  %v1948_v3 = vld [vmem:[%s2632_s1] ss:$12 sps:$4 sm:$0xff]   ;;  %v1956_v4 = vld [vmem:[%s2632_s1 + $0x1c] ss:$12 sps:$4 sm:$0xff]  }
   0x2   :  { %1613 = vmatprep.mubr.msk.bf16.mxu1 %vm1916_vm0, %v1914_v1  ;;  %189 = vmatprep.subr.bf16.mxu0 %v1941_v0  ;;  %v1962_v5 = vld [vmem:[%s2632_s1 + $0x18] ss:$12 sps:$4 sm:$0xff]   ;;  %v1968_v6 = vld [vmem:[%s2632_s1 + $0x34] ss:$12 sps:$4 sm:$0xff]   ;;  %v1979_v8 = vld [vmem:[%s2632_s1 + $0x30] ss:$12 sps:$4 sm:$0xff]  }
   0x3   :  { %190 = vmatpush1.bf16.msra.mxu0 %v1948_v3  ;;  %v1973_v7 = vld [vmem:[%s2632_s1 + $0x8] ss:$12 sps:$4 sm:$0xff]   ;;  %v1984_v9 = vld [vmem:[%s2632_s1 + $0x4c] ss:$12 sps:$4 sm:$0xff]   ;;  %v2003_v12 = vld [vmem:[%s2632_s1 + $0x64] ss:$12 sps:$4 sm:$0xff]  }
   0x4   :  { %191 = vmatprep.subr.bf16.mxu0 %v1956_v4  ;;  %1598 = vmatpush3.bf16.msra.mxu1 %v1973_v7  ;;  %v1991_v10 = vld [vmem:[%s2632_s1 + $0x20] ss:$12 sps:$4 sm:$0xff]   ;;  %v1997_v11 = vld [vmem:[%s2632_s1 + $0x48] ss:$12 sps:$4 sm:$0xff]   ;;  %v2010_v13 = vld [vmem:[%s2632_s1 + $0x38] ss:$12 sps:$4 sm:$0xff]  }
   0x5   :  { %1599 = vmatprep.subr.bf16.mxu1 %v1914_v1  ;;  %v2016_v14 = vld [vmem:[%s2632_s1 + $0x60] ss:$12 sps:$4 sm:$0xff]   ;;  %v2022_v15 = vld [vmem:[%s2632_s1 + $0x7c] ss:$12 sps:$4 sm:$0xff]   ;;  %v2036_v17 = vld [vmem:[%s2632_s1 + $0x78] ss:$12 sps:$4 sm:$0xff]  }
   0x6   :  { %v2029_v16 = vld [vmem:[%s2632_s1 + $0x50] ss:$12 sps:$4 sm:$0xff]   ;;  %v2042_v18 = vld [vmem:[%s2632_s1 + $0x94] ss:$12 sps:$4 sm:$0xff]   ;;  %v2061_v21 = vld [vmem:[%s2632_s1 + $0xac] ss:$12 sps:$4 sm:$0xff]  }
   0x7   :  { %192 = vmatpush1.bf16.msra.mxu0 %v1962_v5  ;;  %v2048_v19 = vld [vmem:[%s2632_s1 + $0x68] ss:$12 sps:$4 sm:$0xff]   ;;  %v2055_v20 = vld [vmem:[%s2632_s1 + $0x90] ss:$12 sps:$4 sm:$0xff]   ;;  %v2067_v22 = vld [vmem:[%s2632_s1 + $0x80] ss:$12 sps:$4 sm:$0xff]  }
   0x8   :  { %193 = vmatprep.subr.bf16.mxu0 %v1968_v6  ;;  %1600 = vmatpush3.bf16.msra.mxu1 %v1991_v10  ;;  %v2074_v23 = vld [vmem:[%s2632_s1 + $0xa8] ss:$12 sps:$4 sm:$0xff]   ;;  %v2081_v24 = vld [vmem:[%s2632_s1 + $0x98] ss:$12 sps:$4 sm:$0xff]   ;;  %v2089_v25 = vld [vmem:[%s2632_s1 + $0xb0] ss:$12 sps:$4 sm:$0xff]  }
   0x9   :  { %1601 = vmatprep.subr.bf16.mxu1 %v1914_v1  ;;  %v56_v27 = vld [vmem:[%s2633_s0] sm:$0xff]  ;;  %v58_v28 = vld [vmem:[%s2633_s0 + $0xc] sm:$0xff]  ;;  %v57_v53 = vld [vmem:[%s2633_s0 + $0x8] ss:$12 sps:$4 sm:$0xff]  }
   0xa   :  { %v287_v29 = vrot.slane %v56_v27, 4  ;;  %v273_v30 = vunpack.c.l.bf16 %v56_v27  ;;  %v288_v31 = vrot.slane %v58_v28, 4  ;;  %v274_v32 = vunpack.c.l.bf16 %v58_v28  ;;  %v2139_v51 = vld [vmem:[%s2634_s2] ss:$0 sm:$0xff] }
   0xb   :  { %194 = vmatpush1.bf16.msra.mxu0 %v1979_v8  ;;  %v313_v59 = vunpack.c.l.bf16 %v57_v53  ;;  %v314_v63 = vunpack.c.h.bf16 %v57_v53 }
   0xc   :  { %195 = vmatprep.subr.bf16.mxu0 %v1984_v9  ;;  %1602 = vmatpush3.bf16.msra.mxu1 %v2010_v13  ;;  %v291_v34 = vunpack.c.l.bf16 %v287_v29  ;;  %v292_v38 = vunpack.c.l.bf16 %v288_v31 }
   0xd   :  { %1603 = vmatprep.subr.bf16.mxu1 %v1914_v1 }
   0xf   :  { %196 = vmatpush1.bf16.msra.mxu0 %v1997_v11 }
  0x10   :  { %197 = vmatprep.subr.bf16.mxu0 %v2003_v12  ;;  %1604 = vmatpush3.bf16.msra.mxu1 %v2029_v16 }
  0x11   :  { %1605 = vmatprep.subr.bf16.mxu1 %v1914_v1 }
  0x13   :  { %198 = vmatpush1.bf16.msra.mxu0 %v2016_v14 }
  0x14   :  { %199 = vmatprep.subr.bf16.mxu0 %v2022_v15  ;;  %1606 = vmatpush3.bf16.msra.mxu1 %v2048_v19 }
  0x15   :  { %1607 = vmatprep.subr.bf16.mxu1 %v1914_v1 }
  0x17   :  { %200 = vmatpush1.bf16.msra.mxu0 %v2036_v17 }
  0x18   :  { %201 = vmatprep.subr.bf16.mxu0 %v2042_v18  ;;  %1608 = vmatpush3.bf16.msra.mxu1 %v2067_v22 }
  0x19   :  { %1609 = vmatprep.subr.bf16.mxu1 %v1914_v1 }
  0x1b   :  { %202 = vmatpush1.bf16.msra.mxu0 %v2055_v20 }
  0x1c   :  { %203 = vmatprep.subr.bf16.mxu0 %v2061_v21  ;;  %1610 = vmatpush3.bf16.msra.mxu1 %v2081_v24 }
  0x1d   :  { %1611 = vmatprep.subr.bf16.mxu1 %v1914_v1 }
  0x1f   :  { %204 = vmatpush1.bf16.msra.mxu0 %v2074_v23 }
  0x20   :  { %342 = vmatprep.subr.bf16.mxu0 %v1941_v0  ;;  %1612 = vmatpush3.bf16.msra.mxu1 %v2089_v25 }
  0x21   :  { %1617 = vmatprep.subr.bf16.mxu1 %v1914_v1 }
  0x22   :  { %222 = vmatmul.mubr.bf16.vlgmr.msra.gmra.mrb[0].mxu0 %v1917_v26 }
  0x23   :  { %343 = vmatpush1.bf16.msra.mxu0 %v1948_v3  ;;  %374 = vmatprep.mubr.bf16.mxu0 %v1915_v2 }
  0x24   :  { %344 = vmatprep.subr.bf16.mxu0 %v1956_v4  ;;  %1614 = vmatmul.mubr.bf16.vlgmr.msra.gmra.mrb[0].mxu1 %v1917_v26 }
  0x25   :  { %1618 = vmatpush3.bf16.msra.mxu1 %v1973_v7  ;;  %1633 = vmatprep.mubr.msk.bf16.mxu1 %vm1916_vm0, %v1914_v1 }
  0x26   :  { %1619 = vmatprep.subr.bf16.mxu1 %v1914_v1 }
  0x27   :  { %345 = vmatpush1.bf16.msra.mxu0 %v1962_v5 }
  0x28   :  { %346 = vmatprep.subr.bf16.mxu0 %v1968_v6 }
  0x29   :  { %1620 = vmatpush3.bf16.msra.mxu1 %v1991_v10 }
  0x2a   :  { %1621 = vmatprep.subr.bf16.mxu1 %v1914_v1 }
  0x2b   :  { %347 = vmatpush1.bf16.msra.mxu0 %v1979_v8 }
  0x2c   :  { %348 = vmatprep.subr.bf16.mxu0 %v1984_v9 }
  0x2d   :  { %1622 = vmatpush3.bf16.msra.mxu1 %v2010_v13 }
  0x2e   :  { %1623 = vmatprep.subr.bf16.mxu1 %v1914_v1 }
  0x2f   :  { %349 = vmatpush1.bf16.msra.mxu0 %v1997_v11 }
  0x30   :  { %350 = vmatprep.subr.bf16.mxu0 %v2003_v12 }
  0x31   :  { %1624 = vmatpush3.bf16.msra.mxu1 %v2029_v16 }
  0x32   :  { %1625 = vmatprep.subr.bf16.mxu1 %v1914_v1 }
  0x33   :  { %351 = vmatpush1.bf16.msra.mxu0 %v2016_v14 }
  0x34   :  { %352 = vmatprep.subr.bf16.mxu0 %v2022_v15 }
  0x35   :  { %1626 = vmatpush3.bf16.msra.mxu1 %v2048_v19 }
  0x36   :  { %1627 = vmatprep.subr.bf16.mxu1 %v1914_v1 }
  0x37   :  { %353 = vmatpush1.bf16.msra.mxu0 %v2036_v17 }
  0x38   :  { %354 = vmatprep.subr.bf16.mxu0 %v2042_v18 }
  0x39   :  { %1628 = vmatpush3.bf16.msra.mxu1 %v2067_v22 }
  0x3a   :  { %1629 = vmatprep.subr.bf16.mxu1 %v1914_v1 }
  0x3b   :  { %355 = vmatpush1.bf16.msra.mxu0 %v2055_v20 }
  0x3c   :  { %356 = vmatprep.subr.bf16.mxu0 %v2061_v21 }
  0x3d   :  { %1630 = vmatpush3.bf16.msra.mxu1 %v2081_v24 }
  0x3e   :  { %1631 = vmatprep.subr.bf16.mxu1 %v1914_v1 }
  0x3f   :  { %357 = vmatpush1.bf16.msra.mxu0 %v2074_v23 }
  0x40   :  { %490 = vmatprep.subr.bf16.mxu0 %v1941_v0 }
  0x41   :  { %1632 = vmatpush3.bf16.msra.mxu1 %v2089_v25 }
  0x42   :  { %1637 = vmatprep.subr.bf16.mxu1 %v1914_v1 }
  0xf5   :  { %v223_v33 = vpop.f32.mrb[0].mxu0 }
  0xf6   :  { %v275_v35 = vadd.f32 %v273_v30, %v223_v33  ;;  %v225_v36 = vpop.f32.mrb[1].mxu0 }
  0xf7   :  { %v227_v37 = vpop.f32.mrb[2].mxu0  ;;  %v293_v42 = vadd.f32 %v291_v34, %v225_v36  ;;  %v266_v44 = vpop.f32.mrb[0].mxu1 }
  0xf8   :  { %v277_v39 = vmul.f32 0.5, %v275_v35  ;;  %v276_v40 = vadd.f32 %v274_v32, %v227_v37  ;;  %v229_v41 = vpop.f32.mrb[3].mxu0  ;;  %v1615_v46 = vpop.f32.mrb[1].mxu1  ;;  %v309_v55 = vadd.f32 %v2139_v51, %v266_v44 }
  0xf9   :  { %v294_v45 = vadd.f32 %v292_v38, %v229_v41  ;;  %v269_v47 = vpop.f32.mrb[2].mxu1  ;;  %v295_v48 = vmul.f32 0.5, %v293_v42  ;;  %v1406_v46 = vld [vmem:[%s2633_s0 + $0x18] sm:$0xff] }
  0xfa   :  { %1793 = vtanh.f32 %v277_v39  ;;  %v278_v43 = vmul.f32 0.5, %v276_v40  ;;  %v1616_v49 = vpop.f32.mrb[3].mxu1  ;;  %v310_v62 = vadd.f32 %v2139_v51, %v269_v47  ;;  %v1408_v47 = vld [vmem:[%s2633_s0 + $0x24] sm:$0xff] }
  0xfb   :  { %v296_v50 = vmul.f32 0.5, %v294_v45  ;;  %v426_v49 = vunpack.c.l.bf16 %v1406_v46 }
  0xfc   :  { %1795 = vtanh.f32 %v278_v43 }
  0xfd   :  { %1797 = vtanh.f32 %v295_v48  ;;  %v440_v48 = vrot.slane %v1406_v46, 4 }
  0xfe   :  { %1799 = vtanh.f32 %v296_v50  ;;  %v441_v50 = vrot.slane %v1408_v47, 4 }
 0x104   :  { %v1794_v52 = vpop.eup %1793 }
 0x105   :  { %v281_v54 = vmul.f32 0.5, %v1794_v52  ;;  %v427_v52 = vunpack.c.l.bf16 %v1408_v47 }
 0x106   :  { %v1796_v56 = vpop.eup %1795 }
 0x107   :  { %v282_v57 = vmul.f32 0.5, %v1796_v56  ;;  %v283_v58 = vadd.f32 0.5, %v281_v54  ;;  %v1798_v26 = vpop.eup %1797 }
 0x108   :  { %v1800_v29 = vpop.eup %1799  ;;  %v299_v31 = vmul.f32 0.5, %v1798_v26 }
 0x109   :  { %v311_v60 = vmul.f32 %v309_v55, %v283_v58  ;;  %v284_v61 = vadd.f32 0.5, %v282_v57  ;;  %v300_v32 = vmul.f32 0.5, %v1800_v29  ;;  %v444_v55 = vunpack.c.l.bf16 %v440_v48 }
 0x10a   :  { %v301_v33 = vadd.f32 0.5, %v299_v31 }
 0x10b   :  { %v315_v27 = vadd.f32 %v313_v59, %v311_v60  ;;  %v312_v28 = vmul.f32 %v310_v62, %v284_v61  ;;  %v302_v34 = vadd.f32 0.5, %v300_v32  ;;  %v445_v61 = vunpack.c.l.bf16 %v441_v50 }
 0x10c   :  { %v319_v35 = vsub.f32 1.0, %v301_v33  ;;  %v323_v37 = vmul.f32 0.0, %v301_v33 }
 0x10d   :  { %1801 = vtanh.f32 %v315_v27  ;;  %v316_v30 = vadd.f32 %v314_v63, %v312_v28  ;;  %v320_v38 = vsub.f32 1.0, %v302_v34  ;;  %v324_v41 = vmul.f32 0.0, %v302_v34  ;;  %v1407_v34 = vld [vmem:[%s2633_s0 + $0x20] ss:$12 sps:$4 sm:$0xff]  }
 0x10e   :  { %v461_v46 = vunpack.c.h.bf16 %v1407_v34 }
 0x10f   :  { %1803 = vtanh.f32 %v316_v30 }
 0x117   :  { %v1802_v36 = vpop.eup %1801 }
 0x118   :  { %v321_v39 = vmul.f32 %v1802_v36, %v319_v35 }
 0x119   :  { %v1804_v40 = vpop.eup %1803 }
 0x11a   :  { %v322_v42 = vmul.f32 %v1804_v40, %v320_v38  ;;  %v2146_v43 = vadd.f32 %v323_v37, %v321_v39  ;;  %v460_v39 = vunpack.c.l.bf16 %v1407_v34 }
 0x11c   :  { %v2148_v44 = vadd.f32 %v324_v41, %v322_v42 }
 0x11e   :  { %v327_v45 = vpack.c.bf16 %v2148_v44, %v2146_v43 }
 0x120   :  { %1482 = vst [vmem:[%s2635_s3] sm:$0xff] %v327_v45   ;;  %375 = vmatmul.mubr.bf16.vlgmr.msra.gmra.mrb[4].mxu0 %v327_v45  ;;  %1634 = vmatmul.mubr.bf16.vlgmr.msra.gmra.mrb[4].mxu1 %v327_v45 }
 0x121   :  { %491 = vmatpush1.bf16.msra.mxu0 %v1948_v3  ;;  %1638 = vmatpush3.bf16.msra.mxu1 %v1973_v7 }
 0x122   :  { %492 = vmatprep.subr.bf16.mxu0 %v1956_v4  ;;  %1639 = vmatprep.subr.bf16.mxu1 %v1914_v1 }
 0x123   :  { %522 = vmatprep.mubr.bf16.mxu0 %v1915_v2  ;;  %1653 = vmatprep.mubr.msk.bf16.mxu1 %vm1916_vm0, %v1914_v1 }
 0x125   :  { %493 = vmatpush1.bf16.msra.mxu0 %v1962_v5  ;;  %1640 = vmatpush3.bf16.msra.mxu1 %v1991_v10 }
 0x126   :  { %494 = vmatprep.subr.bf16.mxu0 %v1968_v6  ;;  %1641 = vmatprep.subr.bf16.mxu1 %v1914_v1 }
 0x129   :  { %495 = vmatpush1.bf16.msra.mxu0 %v1979_v8  ;;  %1642 = vmatpush3.bf16.msra.mxu1 %v2010_v13 }
 0x12a   :  { %496 = vmatprep.subr.bf16.mxu0 %v1984_v9  ;;  %1643 = vmatprep.subr.bf16.mxu1 %v1914_v1 }
 0x12d   :  { %497 = vmatpush1.bf16.msra.mxu0 %v1997_v11  ;;  %1644 = vmatpush3.bf16.msra.mxu1 %v2029_v16 }
 0x12e   :  { %498 = vmatprep.subr.bf16.mxu0 %v2003_v12  ;;  %1645 = vmatprep.subr.bf16.mxu1 %v1914_v1 }
 0x131   :  { %499 = vmatpush1.bf16.msra.mxu0 %v2016_v14  ;;  %1646 = vmatpush3.bf16.msra.mxu1 %v2048_v19 }
 0x132   :  { %500 = vmatprep.subr.bf16.mxu0 %v2022_v15  ;;  %1647 = vmatprep.subr.bf16.mxu1 %v1914_v1 }
 0x135   :  { %501 = vmatpush1.bf16.msra.mxu0 %v2036_v17  ;;  %1648 = vmatpush3.bf16.msra.mxu1 %v2067_v22 }
 0x136   :  { %502 = vmatprep.subr.bf16.mxu0 %v2042_v18  ;;  %1649 = vmatprep.subr.bf16.mxu1 %v1914_v1 }
 0x139   :  { %503 = vmatpush1.bf16.msra.mxu0 %v2055_v20  ;;  %1650 = vmatpush3.bf16.msra.mxu1 %v2081_v24 }
 0x13a   :  { %504 = vmatprep.subr.bf16.mxu0 %v2061_v21  ;;  %1651 = vmatprep.subr.bf16.mxu1 %v1914_v1 }
 0x13d   :  { %505 = vmatpush1.bf16.msra.mxu0 %v2074_v23  ;;  %1652 = vmatpush3.bf16.msra.mxu1 %v2089_v25 }
 0x13e   :  { %638 = vmatprep.subr.bf16.mxu0 %v1941_v0  ;;  %1657 = vmatprep.subr.bf16.mxu1 %v1914_v1 }
 0x1f3   :  { %v376_v53 = vpop.f32.mrb[4].mxu0  ;;  %v419_v54 = vpop.f32.mrb[4].mxu1 }
 0x1f4   :  { %v428_v56 = vadd.f32 %v426_v49, %v376_v53  ;;  %v378_v57 = vpop.f32.mrb[5].mxu0  ;;  %v1635_v58 = vpop.f32.mrb[5].mxu1  ;;  %v456_v38 = vadd.f32 %v2139_v51, %v419_v54 }
 0x1f5   :  { %v380_v59 = vpop.f32.mrb[6].mxu0  ;;  %v422_v60 = vpop.f32.mrb[6].mxu1  ;;  %v446_v28 = vadd.f32 %v444_v55, %v378_v57 }
 0x1f6   :  { %v430_v62 = vmul.f32 0.5, %v428_v56  ;;  %v429_v63 = vadd.f32 %v427_v52, %v380_v59  ;;  %v382_v26 = vpop.f32.mrb[7].mxu0  ;;  %v1636_v27 = vpop.f32.mrb[7].mxu1  ;;  %v457_v45 = vadd.f32 %v2139_v51, %v422_v60 }
 0x1f7   :  { %v447_v30 = vadd.f32 %v445_v61, %v382_v26  ;;  %v448_v31 = vmul.f32 0.5, %v446_v28 }
 0x1f8   :  { %1805 = vtanh.f32 %v430_v62  ;;  %v431_v29 = vmul.f32 0.5, %v429_v63 }
 0x1f9   :  { %v449_v32 = vmul.f32 0.5, %v447_v30 }
 0x1fa   :  { %1807 = vtanh.f32 %v431_v29 }
 0x1fb   :  { %1809 = vtanh.f32 %v448_v31 }
 0x1fc   :  { %1811 = vtanh.f32 %v449_v32 }
 0x202   :  { %v1806_v33 = vpop.eup %1805 }
 0x203   :  { %v434_v35 = vmul.f32 0.5, %v1806_v33 }
 0x204   :  { %v1808_v36 = vpop.eup %1807 }
 0x205   :  { %v436_v37 = vadd.f32 0.5, %v434_v35  ;;  %v435_v40 = vmul.f32 0.5, %v1808_v36  ;;  %v1810_v47 = vpop.eup %1809 }
 0x206   :  { %v1812_v50 = vpop.eup %1811  ;;  %v452_v53 = vmul.f32 0.5, %v1810_v47 }
 0x207   :  { %v458_v41 = vmul.f32 %v456_v38, %v436_v37  ;;  %v437_v42 = vadd.f32 0.5, %v435_v40  ;;  %v453_v55 = vmul.f32 0.5, %v1812_v50 }
 0x208   :  { %v454_v56 = vadd.f32 0.5, %v452_v53 }
 0x209   :  { %v462_v48 = vadd.f32 %v460_v39, %v458_v41  ;;  %v459_v49 = vmul.f32 %v457_v45, %v437_v42  ;;  %v455_v57 = vadd.f32 0.5, %v453_v55 }
 0x20a   :  { %v466_v58 = vsub.f32 1.0, %v454_v56  ;;  %v470_v61 = vmul.f32 %v454_v56, %v2146_v43  ;;  %v1414_v43 = vld [vmem:[%s2633_s0 + $0x30] sm:$0xff] }
 0x20b   :  { %1813 = vtanh.f32 %v462_v48  ;;  %v463_v52 = vadd.f32 %v461_v46, %v459_v49  ;;  %v467_v62 = vsub.f32 1.0, %v455_v57  ;;  %v471_v27 = vmul.f32 %v455_v57, %v2148_v44  ;;  %v1416_v44 = vld [vmem:[%s2633_s0 + $0x3c] sm:$0xff]  ;;  %v1415_v57 = vld [vmem:[%s2633_s0 + $0x38] ss:$12 sps:$4 sm:$0xff]  }
 0x20c   :  { %v588_v30 = vrot.slane %v1414_v43, 4  ;;  %v574_v31 = vunpack.c.l.bf16 %v1414_v43  ;;  %v589_v32 = vrot.slane %v1416_v44, 4  ;;  %v575_v33 = vunpack.c.l.bf16 %v1416_v44 }
 0x20d   :  { %1815 = vtanh.f32 %v463_v52  ;;  %v609_v43 = vunpack.c.h.bf16 %v1415_v57 }
 0x20e   :  { %v592_v36 = vunpack.c.l.bf16 %v588_v30  ;;  %v593_v42 = vunpack.c.l.bf16 %v589_v32 }
 0x215   :  { %v1814_v54 = vpop.eup %1813 }
 0x216   :  { %v468_v59 = vmul.f32 %v1814_v54, %v466_v58 }
 0x217   :  { %v1816_v63 = vpop.eup %1815 }
 0x218   :  { %v2202_v60 = vadd.f32 %v470_v61, %v468_v59  ;;  %v469_v26 = vmul.f32 %v1816_v63, %v467_v62  ;;  %v608_v62 = vunpack.c.l.bf16 %v1415_v57 }
 0x21a   :  { %v2205_v28 = vadd.f32 %v471_v27, %v469_v26 }
 0x21c   :  { %v474_v29 = vpack.c.bf16 %v2205_v28, %v2202_v60 }
 0x21e   :  { %1518 = vst [vmem:[%s2635_s3 + $0x8] sm:$0xff] %v474_v29   ;;  %523 = vmatmul.mubr.bf16.vlgmr.msra.gmra.mrb[8].mxu0 %v474_v29  ;;  %1654 = vmatmul.mubr.bf16.vlgmr.msra.gmra.mrb[8].mxu1 %v474_v29 }
 0x21f   :  { %639 = vmatpush1.bf16.msra.mxu0 %v1948_v3  ;;  %1658 = vmatpush3.bf16.msra.mxu1 %v1973_v7 }
 0x220   :  { %640 = vmatprep.subr.bf16.mxu0 %v1956_v4  ;;  %1659 = vmatprep.subr.bf16.mxu1 %v1914_v1 }
 0x221   :  { %670 = vmatprep.mubr.bf16.mxu0 %v1915_v2  ;;  %1673 = vmatprep.mubr.msk.bf16.mxu1 %vm1916_vm0, %v1914_v1 }
 0x223   :  { %641 = vmatpush1.bf16.msra.mxu0 %v1962_v5  ;;  %1660 = vmatpush3.bf16.msra.mxu1 %v1991_v10 }
 0x224   :  { %642 = vmatprep.subr.bf16.mxu0 %v1968_v6  ;;  %1661 = vmatprep.subr.bf16.mxu1 %v1914_v1 }
 0x227   :  { %643 = vmatpush1.bf16.msra.mxu0 %v1979_v8  ;;  %1662 = vmatpush3.bf16.msra.mxu1 %v2010_v13 }
 0x228   :  { %644 = vmatprep.subr.bf16.mxu0 %v1984_v9  ;;  %1663 = vmatprep.subr.bf16.mxu1 %v1914_v1 }
 0x22b   :  { %645 = vmatpush1.bf16.msra.mxu0 %v1997_v11  ;;  %1664 = vmatpush3.bf16.msra.mxu1 %v2029_v16 }
 0x22c   :  { %646 = vmatprep.subr.bf16.mxu0 %v2003_v12  ;;  %1665 = vmatprep.subr.bf16.mxu1 %v1914_v1 }
 0x22f   :  { %647 = vmatpush1.bf16.msra.mxu0 %v2016_v14  ;;  %1666 = vmatpush3.bf16.msra.mxu1 %v2048_v19 }
 0x230   :  { %648 = vmatprep.subr.bf16.mxu0 %v2022_v15  ;;  %1667 = vmatprep.subr.bf16.mxu1 %v1914_v1 }
 0x233   :  { %649 = vmatpush1.bf16.msra.mxu0 %v2036_v17  ;;  %1668 = vmatpush3.bf16.msra.mxu1 %v2067_v22 }
 0x234   :  { %650 = vmatprep.subr.bf16.mxu0 %v2042_v18  ;;  %1669 = vmatprep.subr.bf16.mxu1 %v1914_v1 }
 0x237   :  { %651 = vmatpush1.bf16.msra.mxu0 %v2055_v20  ;;  %1670 = vmatpush3.bf16.msra.mxu1 %v2081_v24 }
 0x238   :  { %652 = vmatprep.subr.bf16.mxu0 %v2061_v21  ;;  %1671 = vmatprep.subr.bf16.mxu1 %v1914_v1 }
 0x23b   :  { %653 = vmatpush1.bf16.msra.mxu0 %v2074_v23  ;;  %1672 = vmatpush3.bf16.msra.mxu1 %v2089_v25 }
 0x23c   :  { %786 = vmatprep.subr.bf16.mxu0 %v1941_v0  ;;  %1677 = vmatprep.subr.bf16.mxu1 %v1914_v1 }
 0x2f1   :  { %v524_v34 = vpop.f32.mrb[8].mxu0  ;;  %v567_v35 = vpop.f32.mrb[8].mxu1 }
 0x2f2   :  { %v576_v37 = vadd.f32 %v574_v31, %v524_v34  ;;  %v526_v38 = vpop.f32.mrb[9].mxu0  ;;  %v1655_v39 = vpop.f32.mrb[9].mxu1  ;;  %v604_v61 = vadd.f32 %v2139_v51, %v567_v35 }
 0x2f3   :  { %v528_v40 = vpop.f32.mrb[10].mxu0  ;;  %v570_v41 = vpop.f32.mrb[10].mxu1  ;;  %v594_v49 = vadd.f32 %v592_v36, %v526_v38 }
 0x2f4   :  { %v578_v45 = vmul.f32 0.5, %v576_v37  ;;  %v577_v46 = vadd.f32 %v575_v33, %v528_v40  ;;  %v530_v47 = vpop.f32.mrb[11].mxu0  ;;  %v1656_v48 = vpop.f32.mrb[11].mxu1  ;;  %v605_v29 = vadd.f32 %v2139_v51, %v570_v41 }
 0x2f5   :  { %v595_v52 = vadd.f32 %v593_v42, %v530_v47  ;;  %v596_v53 = vmul.f32 0.5, %v594_v49 }
 0x2f6   :  { %1817 = vtanh.f32 %v578_v45  ;;  %v579_v50 = vmul.f32 0.5, %v577_v46 }
 0x2f7   :  { %v597_v55 = vmul.f32 0.5, %v595_v52 }
 0x2f8   :  { %1819 = vtanh.f32 %v579_v50 }
 0x2f9   :  { %1821 = vtanh.f32 %v596_v53 }
 0x2fa   :  { %1823 = vtanh.f32 %v597_v55 }
 0x300   :  { %v1818_v56 = vpop.eup %1817 }
 0x301   :  { %v582_v58 = vmul.f32 0.5, %v1818_v56 }
 0x302   :  { %v1820_v54 = vpop.eup %1819 }
 0x303   :  { %v584_v59 = vadd.f32 0.5, %v582_v58  ;;  %v583_v63 = vmul.f32 0.5, %v1820_v54  ;;  %v1822_v44 = vpop.eup %1821 }
 0x304   :  { %v1824_v32 = vpop.eup %1823  ;;  %v600_v34 = vmul.f32 0.5, %v1822_v44 }
 0x305   :  { %v606_v26 = vmul.f32 %v604_v61, %v584_v59  ;;  %v585_v27 = vadd.f32 0.5, %v583_v63  ;;  %v601_v36 = vmul.f32 0.5, %v1824_v32 }
 0x306   :  { %v602_v37 = vadd.f32 0.5, %v600_v34 }
 0x307   :  { %v610_v30 = vadd.f32 %v608_v62, %v606_v26  ;;  %v607_v31 = vmul.f32 %v605_v29, %v585_v27  ;;  %v603_v38 = vadd.f32 0.5, %v601_v36 }
 0x308   :  { %v614_v39 = vsub.f32 1.0, %v602_v37  ;;  %v618_v42 = vmul.f32 %v602_v37, %v2202_v60  ;;  %v1422_v60 = vld [vmem:[%s2633_s0 + $0x48] sm:$0xff]  ;;  %v1423_v37 = vld [vmem:[%s2633_s0 + $0x50] ss:$12 sps:$4 sm:$0xff]  }
 0x309   :  { %1825 = vtanh.f32 %v610_v30  ;;  %v611_v33 = vadd.f32 %v609_v43, %v607_v31  ;;  %v615_v45 = vsub.f32 1.0, %v603_v38  ;;  %v619_v48 = vmul.f32 %v603_v38, %v2205_v28  ;;  %v1424_v28 = vld [vmem:[%s2633_s0 + $0x54] sm:$0xff] }
 0x30a   :  { %v736_v52 = vrot.slane %v1422_v60, 4  ;;  %v722_v53 = vunpack.c.l.bf16 %v1422_v60  ;;  %v737_v55 = vrot.slane %v1424_v28, 4  ;;  %v723_v56 = vunpack.c.l.bf16 %v1424_v28 }
 0x30b   :  { %1827 = vtanh.f32 %v611_v33 }
 0x30c   :  { %v740_v54 = vunpack.c.l.bf16 %v736_v52  ;;  %v741_v26 = vunpack.c.l.bf16 %v737_v55 }
 0x313   :  { %v1826_v35 = vpop.eup %1825 }
 0x314   :  { %v616_v40 = vmul.f32 %v1826_v35, %v614_v39 }
 0x315   :  { %v1828_v46 = vpop.eup %1827 }
 0x316   :  { %v2259_v41 = vadd.f32 %v618_v42, %v616_v40  ;;  %v617_v47 = vmul.f32 %v1828_v46, %v615_v45  ;;  %v756_v42 = vunpack.c.l.bf16 %v1423_v37 }
 0x318   :  { %v2262_v49 = vadd.f32 %v619_v48, %v617_v47 }
 0x31a   :  { %v622_v50 = vpack.c.bf16 %v2262_v49, %v2259_v41 }
 0x31c   :  { %1519 = vst [vmem:[%s2635_s3 + $0x10] sm:$0xff] %v622_v50   ;;  %671 = vmatmul.mubr.bf16.vlgmr.msra.gmra.mrb[12].mxu0 %v622_v50  ;;  %1674 = vmatmul.mubr.bf16.vlgmr.msra.gmra.mrb[12].mxu1 %v622_v50  ;;  %v757_v50 = vunpack.c.h.bf16 %v1423_v37 }
 0x31d   :  { %787 = vmatpush1.bf16.msra.mxu0 %v1948_v3  ;;  %1678 = vmatpush3.bf16.msra.mxu1 %v1973_v7 }
 0x31e   :  { %788 = vmatprep.subr.bf16.mxu0 %v1956_v4  ;;  %1679 = vmatprep.subr.bf16.mxu1 %v1914_v1 }
 0x31f   :  { %818 = vmatprep.mubr.bf16.mxu0 %v1915_v2  ;;  %1693 = vmatprep.mubr.msk.bf16.mxu1 %vm1916_vm0, %v1914_v1 }
 0x321   :  { %789 = vmatpush1.bf16.msra.mxu0 %v1962_v5  ;;  %1680 = vmatpush3.bf16.msra.mxu1 %v1991_v10 }
 0x322   :  { %790 = vmatprep.subr.bf16.mxu0 %v1968_v6  ;;  %1681 = vmatprep.subr.bf16.mxu1 %v1914_v1 }
 0x325   :  { %791 = vmatpush1.bf16.msra.mxu0 %v1979_v8  ;;  %1682 = vmatpush3.bf16.msra.mxu1 %v2010_v13 }
 0x326   :  { %792 = vmatprep.subr.bf16.mxu0 %v1984_v9  ;;  %1683 = vmatprep.subr.bf16.mxu1 %v1914_v1 }
 0x329   :  { %793 = vmatpush1.bf16.msra.mxu0 %v1997_v11  ;;  %1684 = vmatpush3.bf16.msra.mxu1 %v2029_v16 }
 0x32a   :  { %794 = vmatprep.subr.bf16.mxu0 %v2003_v12  ;;  %1685 = vmatprep.subr.bf16.mxu1 %v1914_v1 }
 0x32d   :  { %795 = vmatpush1.bf16.msra.mxu0 %v2016_v14  ;;  %1686 = vmatpush3.bf16.msra.mxu1 %v2048_v19 }
 0x32e   :  { %796 = vmatprep.subr.bf16.mxu0 %v2022_v15  ;;  %1687 = vmatprep.subr.bf16.mxu1 %v1914_v1 }
 0x331   :  { %797 = vmatpush1.bf16.msra.mxu0 %v2036_v17  ;;  %1688 = vmatpush3.bf16.msra.mxu1 %v2067_v22 }
 0x332   :  { %798 = vmatprep.subr.bf16.mxu0 %v2042_v18  ;;  %1689 = vmatprep.subr.bf16.mxu1 %v1914_v1 }
 0x335   :  { %799 = vmatpush1.bf16.msra.mxu0 %v2055_v20  ;;  %1690 = vmatpush3.bf16.msra.mxu1 %v2081_v24 }
 0x336   :  { %800 = vmatprep.subr.bf16.mxu0 %v2061_v21  ;;  %1691 = vmatprep.subr.bf16.mxu1 %v1914_v1 }
 0x339   :  { %801 = vmatpush1.bf16.msra.mxu0 %v2074_v23  ;;  %1692 = vmatpush3.bf16.msra.mxu1 %v2089_v25 }
 0x33a   :  { %934 = vmatprep.subr.bf16.mxu0 %v1941_v0  ;;  %1697 = vmatprep.subr.bf16.mxu1 %v1914_v1 }
 0x3ef   :  { %v672_v57 = vpop.f32.mrb[12].mxu0  ;;  %v715_v58 = vpop.f32.mrb[12].mxu1 }
 0x3f0   :  { %v724_v59 = vadd.f32 %v722_v53, %v672_v57  ;;  %v674_v61 = vpop.f32.mrb[13].mxu0  ;;  %v1675_v0 = vpop.f32.mrb[13].mxu1  ;;  %v752_v40 = vadd.f32 %v2139_v51, %v715_v58 }
 0x3f1   :  { %v676_v62 = vpop.f32.mrb[14].mxu0  ;;  %v718_v63 = vpop.f32.mrb[14].mxu1  ;;  %v742_v30 = vadd.f32 %v740_v54, %v674_v61 }
 0x3f2   :  { %v726_v27 = vmul.f32 0.5, %v724_v59  ;;  %v725_v29 = vadd.f32 %v723_v56, %v676_v62  ;;  %v678_v43 = vpop.f32.mrb[15].mxu0  ;;  %v1676_v44 = vpop.f32.mrb[15].mxu1  ;;  %v753_v48 = vadd.f32 %v2139_v51, %v718_v63 }
 0x3f3   :  { %v743_v32 = vadd.f32 %v741_v26, %v678_v43  ;;  %v744_v33 = vmul.f32 0.5, %v742_v30 }
 0x3f4   :  { %1829 = vtanh.f32 %v726_v27  ;;  %v727_v31 = vmul.f32 0.5, %v725_v29 }
 0x3f5   :  { %v745_v34 = vmul.f32 0.5, %v743_v32  ;;  %v1431_v32 = vld [vmem:[%s2633_s0 + $0x68] ss:$12 sps:$4 sm:$0xff]  }
 0x3f6   :  { %1831 = vtanh.f32 %v727_v31 }
 0x3f7   :  { %1833 = vtanh.f32 %v744_v33 }
 0x3f8   :  { %1835 = vtanh.f32 %v745_v34 }
 0x3fe   :  { %v1830_v36 = vpop.eup %1829 }
 0x3ff   :  { %v730_v38 = vmul.f32 0.5, %v1830_v36 }
 0x400   :  { %v1832_v39 = vpop.eup %1831 }
 0x401   :  { %v732_v35 = vadd.f32 0.5, %v730_v38  ;;  %v731_v45 = vmul.f32 0.5, %v1832_v39  ;;  %v1834_v60 = vpop.eup %1833  ;;  %v904_v38 = vunpack.c.l.bf16 %v1431_v32 }
 0x402   :  { %v1836_v53 = vpop.eup %1835  ;;  %v748_v56 = vmul.f32 0.5, %v1834_v60 }
 0x403   :  { %v754_v46 = vmul.f32 %v752_v40, %v732_v35  ;;  %v733_v47 = vadd.f32 0.5, %v731_v45  ;;  %v749_v57 = vmul.f32 0.5, %v1836_v53  ;;  %v905_v45 = vunpack.c.h.bf16 %v1431_v32 }
 0x404   :  { %v750_v54 = vadd.f32 0.5, %v748_v56 }
 0x405   :  { %v758_v28 = vadd.f32 %v756_v42, %v754_v46  ;;  %v755_v52 = vmul.f32 %v753_v48, %v733_v47  ;;  %v751_v59 = vadd.f32 0.5, %v749_v57 }
 0x406   :  { %v762_v61 = vsub.f32 1.0, %v750_v54  ;;  %v766_v62 = vmul.f32 %v750_v54, %v2259_v41 }
 0x407   :  { %1837 = vtanh.f32 %v758_v28  ;;  %v759_v55 = vadd.f32 %v757_v50, %v755_v52  ;;  %v763_v26 = vsub.f32 1.0, %v751_v59  ;;  %v767_v43 = vmul.f32 %v751_v59, %v2262_v49 }
 0x409   :  { %1839 = vtanh.f32 %v759_v55 }
 0x411   :  { %v1838_v58 = vpop.eup %1837 }
 0x412   :  { %v764_v0 = vmul.f32 %v1838_v58, %v762_v61 }
 0x413   :  { %v1840_v27 = vpop.eup %1839 }
 0x414   :  { %v2316_v63 = vadd.f32 %v766_v62, %v764_v0  ;;  %v765_v29 = vmul.f32 %v1840_v27, %v763_v26 }
 0x416   :  { %v2319_v44 = vadd.f32 %v767_v43, %v765_v29  ;;  %v2397_v43 = vld [vmem:[%s2632_s1 + $0x8] ss:$12 sps:$4 sm:$0xff]  }
 0x418   :  { %v770_v30 = vpack.c.bf16 %v2319_v44, %v2316_v63 }
 0x41a   :  { %1520 = vst [vmem:[%s2635_s3 + $0x18] sm:$0xff] %v770_v30   ;;  %819 = vmatmul.mubr.bf16.vlgmr.msra.gmra.mrb[16].mxu0 %v770_v30  ;;  %1694 = vmatmul.mubr.bf16.vlgmr.msra.gmra.mrb[16].mxu1 %v770_v30  ;;  %v2413_v30 = vld [vmem:[%s2632_s1 + $0x18] ss:$12 sps:$4 sm:$0xff]  }
 0x41b   :  { %935 = vmatpush1.bf16.msra.mxu0 %v1948_v3  ;;  %1698 = vmatpush3.bf16.msra.mxu1 %v1973_v7  ;;  %v2362_v3 = vld [vmem:[%s2632_s1 + $0x4] ss:$12 sps:$4 sm:$0xff]  }
 0x41c   :  { %936 = vmatprep.subr.bf16.mxu0 %v1956_v4  ;;  %1699 = vmatprep.subr.bf16.mxu1 %v1914_v1  ;;  %v1430_v4 = vld [vmem:[%s2633_s0 + $0x60] sm:$0xff] }
 0x41d   :  { %966 = vmatprep.mubr.bf16.mxu0 %v1915_v2  ;;  %1713 = vmatprep.mubr.msk.bf16.mxu1 %vm1916_vm0, %v1914_v1  ;;  %v870_v7 = vunpack.c.l.bf16 %v1430_v4 }
 0x41f   :  { %937 = vmatpush1.bf16.msra.mxu0 %v1962_v5  ;;  %1700 = vmatpush3.bf16.msra.mxu1 %v1991_v10  ;;  %v1432_v5 = vld [vmem:[%s2633_s0 + $0x6c] sm:$0xff] }
 0x420   :  { %938 = vmatprep.subr.bf16.mxu0 %v1968_v6  ;;  %1701 = vmatprep.subr.bf16.mxu1 %v1914_v1  ;;  %v884_v6 = vrot.slane %v1430_v4, 4  ;;  %v2419_v4 = vld [vmem:[%s2632_s1 + $0x20] ss:$12 sps:$4 sm:$0xff]  }
 0x423   :  { %939 = vmatpush1.bf16.msra.mxu0 %v1979_v8  ;;  %1702 = vmatpush3.bf16.msra.mxu1 %v2010_v13  ;;  %v885_v8 = vrot.slane %v1432_v5, 4 }
 0x424   :  { %940 = vmatprep.subr.bf16.mxu0 %v1984_v9  ;;  %1703 = vmatprep.subr.bf16.mxu1 %v1914_v1  ;;  %v871_v9 = vunpack.c.l.bf16 %v1432_v5  ;;  %v2425_v5 = vld [vmem:[%s2632_s1 + $0x34] ss:$12 sps:$4 sm:$0xff]  }
 0x427   :  { %941 = vmatpush1.bf16.msra.mxu0 %v1997_v11  ;;  %1704 = vmatpush3.bf16.msra.mxu1 %v2029_v16 }
 0x428   :  { %942 = vmatprep.subr.bf16.mxu0 %v2003_v12  ;;  %1705 = vmatprep.subr.bf16.mxu1 %v1914_v1  ;;  %v888_v12 = vunpack.c.l.bf16 %v884_v6  ;;  %v2432_v6 = vld [vmem:[%s2632_s1 + $0x30] ss:$12 sps:$4 sm:$0xff]  }
 0x42b   :  { %943 = vmatpush1.bf16.msra.mxu0 %v2016_v14  ;;  %1706 = vmatpush3.bf16.msra.mxu1 %v2048_v19 }
 0x42c   :  { %944 = vmatprep.subr.bf16.mxu0 %v2022_v15  ;;  %1707 = vmatprep.subr.bf16.mxu1 %v1914_v1 }
 0x42f   :  { %945 = vmatpush1.bf16.msra.mxu0 %v2036_v17  ;;  %1708 = vmatpush3.bf16.msra.mxu1 %v2067_v22 }
 0x430   :  { %946 = vmatprep.subr.bf16.mxu0 %v2042_v18  ;;  %1709 = vmatprep.subr.bf16.mxu1 %v1914_v1  ;;  %v889_v18 = vunpack.c.l.bf16 %v885_v8  ;;  %v2444_v8 = vld [vmem:[%s2632_s1 + $0x4c] ss:$12 sps:$4 sm:$0xff]  }
 0x433   :  { %947 = vmatpush1.bf16.msra.mxu0 %v2055_v20  ;;  %1710 = vmatpush3.bf16.msra.mxu1 %v2081_v24 }
 0x434   :  { %948 = vmatprep.subr.bf16.mxu0 %v2061_v21  ;;  %1711 = vmatprep.subr.bf16.mxu1 %v1914_v1 }
 0x437   :  { %949 = vmatpush1.bf16.msra.mxu0 %v2074_v23  ;;  %1712 = vmatpush3.bf16.msra.mxu1 %v2089_v25 }
 0x438   :  { %1082 = vmatprep.subr.bf16.mxu0 %v2362_v3  ;;  %1717 = vmatprep.subr.bf16.mxu1 %v1914_v1 }
 0x4ed   :  { %v820_v10 = vpop.f32.mrb[16].mxu0  ;;  %v863_v11 = vpop.f32.mrb[16].mxu1 }
 0x4ee   :  { %v872_v13 = vadd.f32 %v870_v7, %v820_v10  ;;  %v822_v14 = vpop.f32.mrb[17].mxu0  ;;  %v1695_v15 = vpop.f32.mrb[17].mxu1  ;;  %v900_v37 = vadd.f32 %v2139_v51, %v863_v11  ;;  %v2438_v7 = vld [vmem:[%s2632_s1 + $0x38] ss:$12 sps:$4 sm:$0xff]   ;;  %v2457_v10 = vld [vmem:[%s2632_s1 + $0x50] ss:$12 sps:$4 sm:$0xff]  }
 0x4ef   :  { %v824_v16 = vpop.f32.mrb[18].mxu0  ;;  %v866_v17 = vpop.f32.mrb[18].mxu1  ;;  %v890_v23 = vadd.f32 %v888_v12, %v822_v14  ;;  %v2463_v11 = vld [vmem:[%s2632_s1 + $0x64] ss:$12 sps:$4 sm:$0xff]   ;;  %v2470_v12 = vld [vmem:[%s2632_s1 + $0x60] ss:$12 sps:$4 sm:$0xff]  }
 0x4f0   :  { %v874_v19 = vmul.f32 0.5, %v872_v13  ;;  %v873_v20 = vadd.f32 %v871_v9, %v824_v16  ;;  %v826_v21 = vpop.f32.mrb[19].mxu0  ;;  %v1696_v22 = vpop.f32.mrb[19].mxu1  ;;  %v901_v42 = vadd.f32 %v2139_v51, %v866_v17  ;;  %v2451_v9 = vld [vmem:[%s2632_s1 + $0x48] ss:$12 sps:$4 sm:$0xff]  }
 0x4f1   :  { %v891_v25 = vadd.f32 %v889_v18, %v826_v21  ;;  %v892_v41 = vmul.f32 0.5, %v890_v23  ;;  %v2476_v13 = vld [vmem:[%s2632_s1 + $0x68] ss:$12 sps:$4 sm:$0xff]   ;;  %v2489_v15 = vld [vmem:[%s2632_s1 + $0x78] ss:$12 sps:$4 sm:$0xff]  }
 0x4f2   :  { %1841 = vtanh.f32 %v874_v19  ;;  %v875_v24 = vmul.f32 0.5, %v873_v20  ;;  %v2482_v14 = vld [vmem:[%s2632_s1 + $0x7c] ss:$12 sps:$4 sm:$0xff]   ;;  %v2495_v16 = vld [vmem:[%s2632_s1 + $0x80] ss:$12 sps:$4 sm:$0xff]  }
 0x4f3   :  { %v893_v49 = vmul.f32 0.5, %v891_v25  ;;  %v2501_v17 = vld [vmem:[%s2632_s1 + $0x94] ss:$12 sps:$4 sm:$0xff]   ;;  %v2508_v18 = vld [vmem:[%s2632_s1 + $0x90] ss:$12 sps:$4 sm:$0xff]  }
 0x4f4   :  { %1843 = vtanh.f32 %v875_v24  ;;  %v2514_v19 = vld [vmem:[%s2632_s1 + $0x98] ss:$12 sps:$4 sm:$0xff]   ;;  %v2527_v21 = vld [vmem:[%s2632_s1 + $0xa8] ss:$12 sps:$4 sm:$0xff]   ;;  %v2533_v22 = vld [vmem:[%s2632_s1 + $0xb0] ss:$12 sps:$4 sm:$0xff]  }
 0x4f5   :  { %1845 = vtanh.f32 %v892_v41  ;;  %v2520_v20 = vld [vmem:[%s2632_s1 + $0xac] ss:$12 sps:$4 sm:$0xff]   ;;  %v1440_v24 = vld [vmem:[%s2633_s0 + $0x84] sm:$0xff] }
 0x4f6   :  { %1847 = vtanh.f32 %v893_v49  ;;  %v1438_v23 = vld [vmem:[%s2633_s0 + $0x78] sm:$0xff]  ;;  %v1033_v49 = vrot.slane %v1440_v24, 4 }
 0x4f7   :  { %v1032_v25 = vrot.slane %v1438_v23, 4  ;;  %v1018_v41 = vunpack.c.l.bf16 %v1438_v23 }
 0x4fc   :  { %v1842_v31 = vpop.eup %1841 }
 0x4fd   :  { %v878_v33 = vmul.f32 0.5, %v1842_v31  ;;  %v1019_v31 = vunpack.c.l.bf16 %v1440_v24 }
 0x4fe   :  { %v1844_v34 = vpop.eup %1843 }
 0x4ff   :  { %v880_v36 = vadd.f32 0.5, %v878_v33  ;;  %v879_v39 = vmul.f32 0.5, %v1844_v34  ;;  %v1846_v46 = vpop.eup %1845  ;;  %v1036_v34 = vunpack.c.l.bf16 %v1032_v25 }
 0x500   :  { %v1848_v50 = vpop.eup %1847  ;;  %v896_v28 = vmul.f32 0.5, %v1846_v46 }
 0x501   :  { %v902_v35 = vmul.f32 %v900_v37, %v880_v36  ;;  %v881_v40 = vadd.f32 0.5, %v879_v39  ;;  %v897_v52 = vmul.f32 0.5, %v1848_v50 }
 0x502   :  { %v898_v53 = vadd.f32 0.5, %v896_v28 }
 0x503   :  { %v906_v47 = vadd.f32 %v904_v38, %v902_v35  ;;  %v903_v48 = vmul.f32 %v901_v42, %v881_v40  ;;  %v899_v55 = vadd.f32 0.5, %v897_v52  ;;  %v1037_v35 = vunpack.c.l.bf16 %v1033_v49 }
 0x504   :  { %v910_v56 = vsub.f32 1.0, %v898_v53  ;;  %v914_v59 = vmul.f32 %v898_v53, %v2316_v63  ;;  %v2391_v63 = vld [vmem:[%s2632_s1] ss:$12 sps:$4 sm:$0xff]  }
 0x505   :  { %1849 = vtanh.f32 %v906_v47  ;;  %v907_v60 = vadd.f32 %v905_v45, %v903_v48  ;;  %v911_v61 = vsub.f32 1.0, %v899_v55  ;;  %v915_v26 = vmul.f32 %v899_v55, %v2319_v44  ;;  %v2403_v44 = vld [vmem:[%s2632_s1 + $0x1c] ss:$12 sps:$4 sm:$0xff]   ;;  %v1439_v53 = vld [vmem:[%s2633_s0 + $0x80] ss:$12 sps:$4 sm:$0xff]  }
 0x507   :  { %1851 = vtanh.f32 %v907_v60 }
 0x50f   :  { %v1850_v57 = vpop.eup %1849 }
 0x510   :  { %v912_v54 = vmul.f32 %v1850_v57, %v910_v56 }
 0x511   :  { %v1852_v58 = vpop.eup %1851 }
 0x512   :  { %v2378_v0 = vadd.f32 %v914_v59, %v912_v54  ;;  %v913_v62 = vmul.f32 %v1852_v58, %v911_v61  ;;  %v1052_v59 = vunpack.c.l.bf16 %v1439_v53 }
 0x514   :  { %v2381_v27 = vadd.f32 %v915_v26, %v913_v62 }
 0x516   :  { %v918_v29 = vpack.c.bf16 %v2381_v27, %v2378_v0 }
 0x518   :  { %1521 = vst [vmem:[%s2635_s3 + $0x20] sm:$0xff] %v918_v29   ;;  %967 = vmatmul.mubr.bf16.vlgmr.msra.gmra.mrb[20].mxu0 %v918_v29  ;;  %1714 = vmatmul.mubr.bf16.vlgmr.msra.gmra.mrb[20].mxu1 %v918_v29  ;;  %v1053_v29 = vunpack.c.h.bf16 %v1439_v53 }
 0x519   :  { %1083 = vmatpush1.bf16.msra.mxu0 %v2391_v63  ;;  %1718 = vmatpush3.bf16.msra.mxu1 %v2397_v43 }
 0x51a   :  { %1084 = vmatprep.subr.bf16.mxu0 %v2403_v44  ;;  %1719 = vmatprep.subr.bf16.mxu1 %v1914_v1 }
 0x51b   :  { %1114 = vmatprep.mubr.bf16.mxu0 %v1915_v2  ;;  %1733 = vmatprep.mubr.msk.bf16.mxu1 %vm1916_vm0, %v1914_v1 }
 0x51d   :  { %1085 = vmatpush1.bf16.msra.mxu0 %v2413_v30  ;;  %1720 = vmatpush3.bf16.msra.mxu1 %v2419_v4 }
 0x51e   :  { %1086 = vmatprep.subr.bf16.mxu0 %v2425_v5  ;;  %1721 = vmatprep.subr.bf16.mxu1 %v1914_v1 }
 0x521   :  { %1087 = vmatpush1.bf16.msra.mxu0 %v2432_v6  ;;  %1722 = vmatpush3.bf16.msra.mxu1 %v2438_v7 }
 0x522   :  { %1088 = vmatprep.subr.bf16.mxu0 %v2444_v8  ;;  %1723 = vmatprep.subr.bf16.mxu1 %v1914_v1 }
 0x525   :  { %1089 = vmatpush1.bf16.msra.mxu0 %v2451_v9  ;;  %1724 = vmatpush3.bf16.msra.mxu1 %v2457_v10 }
 0x526   :  { %1090 = vmatprep.subr.bf16.mxu0 %v2463_v11  ;;  %1725 = vmatprep.subr.bf16.mxu1 %v1914_v1 }
 0x529   :  { %1091 = vmatpush1.bf16.msra.mxu0 %v2470_v12  ;;  %1726 = vmatpush3.bf16.msra.mxu1 %v2476_v13 }
 0x52a   :  { %1092 = vmatprep.subr.bf16.mxu0 %v2482_v14  ;;  %1727 = vmatprep.subr.bf16.mxu1 %v1914_v1 }
 0x52d   :  { %1093 = vmatpush1.bf16.msra.mxu0 %v2489_v15  ;;  %1728 = vmatpush3.bf16.msra.mxu1 %v2495_v16 }
 0x52e   :  { %1094 = vmatprep.subr.bf16.mxu0 %v2501_v17  ;;  %1729 = vmatprep.subr.bf16.mxu1 %v1914_v1 }
 0x531   :  { %1095 = vmatpush1.bf16.msra.mxu0 %v2508_v18  ;;  %1730 = vmatpush3.bf16.msra.mxu1 %v2514_v19 }
 0x532   :  { %1096 = vmatprep.subr.bf16.mxu0 %v2520_v20  ;;  %1731 = vmatprep.subr.bf16.mxu1 %v1914_v1 }
 0x535   :  { %1097 = vmatpush1.bf16.msra.mxu0 %v2527_v21  ;;  %1732 = vmatpush3.bf16.msra.mxu1 %v2533_v22 }
 0x536   :  { %1230 = vmatprep.subr.bf16.mxu0 %v2362_v3  ;;  %1737 = vmatprep.subr.bf16.mxu1 %v1914_v1 }
 0x5eb   :  { %v968_v32 = vpop.f32.mrb[20].mxu0  ;;  %v1011_v33 = vpop.f32.mrb[20].mxu1 }
 0x5ec   :  { %v1020_v36 = vadd.f32 %v1018_v41, %v968_v32  ;;  %v970_v37 = vpop.f32.mrb[21].mxu0  ;;  %v1715_v3 = vpop.f32.mrb[21].mxu1  ;;  %v1048_v54 = vadd.f32 %v2139_v51, %v1011_v33 }
 0x5ed   :  { %v972_v38 = vpop.f32.mrb[22].mxu0  ;;  %v1014_v39 = vpop.f32.mrb[22].mxu1  ;;  %v1038_v47 = vadd.f32 %v1036_v34, %v970_v37 }
 0x5ee   :  { %v1022_v40 = vmul.f32 0.5, %v1020_v36  ;;  %v1021_v42 = vadd.f32 %v1019_v31, %v972_v38  ;;  %v974_v45 = vpop.f32.mrb[23].mxu0  ;;  %v1716_v46 = vpop.f32.mrb[23].mxu1  ;;  %v1049_v26 = vadd.f32 %v2139_v51, %v1014_v39 }
 0x5ef   :  { %v1039_v50 = vadd.f32 %v1037_v35, %v974_v45  ;;  %v1040_v60 = vmul.f32 0.5, %v1038_v47 }
 0x5f0   :  { %1853 = vtanh.f32 %v1022_v40  ;;  %v1023_v48 = vmul.f32 0.5, %v1021_v42 }
 0x5f1   :  { %v1041_v28 = vmul.f32 0.5, %v1039_v50  ;;  %v2605_v50 = vld [vmem:[%s2634_s2] ss:$0 sm:$0xff] }
 0x5f2   :  { %1855 = vtanh.f32 %v1023_v48 }
 0x5f3   :  { %1857 = vtanh.f32 %v1040_v60 }
 0x5f4   :  { %1859 = vtanh.f32 %v1041_v28 }
 0x5fa   :  { %v1854_v52 = vpop.eup %1853 }
 0x5fb   :  { %v1026_v55 = vmul.f32 0.5, %v1854_v52 }
 0x5fc   :  { %v1856_v56 = vpop.eup %1855 }
 0x5fd   :  { %v1028_v57 = vadd.f32 0.5, %v1026_v55  ;;  %v1027_v61 = vmul.f32 0.5, %v1856_v56  ;;  %v1858_v23 = vpop.eup %1857 }
 0x5fe   :  { %v1860_v41 = vpop.eup %1859  ;;  %v1044_v31 = vmul.f32 0.5, %v1858_v23 }
 0x5ff   :  { %v1050_v58 = vmul.f32 %v1048_v54, %v1028_v57  ;;  %v1029_v62 = vadd.f32 0.5, %v1027_v61  ;;  %v1045_v32 = vmul.f32 0.5, %v1860_v41 }
 0x600   :  { %v1046_v34 = vadd.f32 0.5, %v1044_v31 }
 0x601   :  { %v1054_v24 = vadd.f32 %v1052_v59, %v1050_v58  ;;  %v1051_v25 = vmul.f32 %v1049_v26, %v1029_v62  ;;  %v1047_v36 = vadd.f32 0.5, %v1045_v32 }
 0x602   :  { %v1058_v37 = vsub.f32 1.0, %v1046_v34  ;;  %v1062_v38 = vmul.f32 %v1046_v34, %v2378_v0  ;;  %v1448_v0 = vld [vmem:[%s2633_s0 + $0x9c] sm:$0xff] }
 0x603   :  { %1861 = vtanh.f32 %v1054_v24  ;;  %v1055_v49 = vadd.f32 %v1053_v29, %v1051_v25  ;;  %v1059_v35 = vsub.f32 1.0, %v1047_v36  ;;  %v1063_v42 = vmul.f32 %v1047_v36, %v2381_v27 }
 0x605   :  { %1863 = vtanh.f32 %v1055_v49 }
 0x60d   :  { %v1862_v33 = vpop.eup %1861 }
 0x60e   :  { %v1060_v3 = vmul.f32 %v1862_v33, %v1058_v37 }
 0x60f   :  { %v1864_v40 = vpop.eup %1863 }
 0x610   :  { %v2550_v51 = vadd.f32 %v1062_v38, %v1060_v3  ;;  %v1061_v39 = vmul.f32 %v1864_v40, %v1059_v35  ;;  %v1454_v35 = vld [vmem:[%s2633_s0 + $0xa8] sm:$0xff]  ;;  %v1456_v40 = vld [vmem:[%s2633_s0 + $0xb4] sm:$0xff] }
 0x612   :  { %v2553_v45 = vadd.f32 %v1063_v42, %v1061_v39  ;;  %v1314_v39 = vunpack.c.l.bf16 %v1454_v35  ;;  %v1329_v42 = vrot.slane %v1456_v40, 4 }
 0x614   :  { %v1066_v46 = vpack.c.bf16 %v2553_v45, %v2550_v51 }
 0x616   :  { %1522 = vst [vmem:[%s2635_s3 + $0x28] sm:$0xff] %v1066_v46   ;;  %1115 = vmatmul.mubr.bf16.vlgmr.msra.gmra.mrb[24].mxu0 %v1066_v46  ;;  %1734 = vmatmul.mubr.bf16.vlgmr.msra.gmra.mrb[24].mxu1 %v1066_v46 }
 0x617   :  { %1231 = vmatpush1.bf16.msra.mxu0 %v2391_v63  ;;  %1738 = vmatpush3.bf16.msra.mxu1 %v2397_v43  ;;  %v1181_v43 = vrot.slane %v1448_v0, 4 }
 0x618   :  { %1232 = vmatprep.subr.bf16.mxu0 %v2403_v44  ;;  %1739 = vmatprep.subr.bf16.mxu1 %v1914_v1  ;;  %v1167_v44 = vunpack.c.l.bf16 %v1448_v0 }
 0x619   :  { %1262 = vmatprep.mubr.bf16.mxu0 %v1915_v2  ;;  %1753 = vmatprep.mubr.msk.bf16.mxu1 %vm1916_vm0, %v1914_v1  ;;  %v1446_v2 = vld [vmem:[%s2633_s0 + $0x90] sm:$0xff] }
 0x61a   :  { %v1180_v27 = vrot.slane %v1446_v2, 4  ;;  %v1166_v63 = vunpack.c.l.bf16 %v1446_v2 }
 0x61b   :  { %1233 = vmatpush1.bf16.msra.mxu0 %v2413_v30  ;;  %1740 = vmatpush3.bf16.msra.mxu1 %v2419_v4 }
 0x61c   :  { %1234 = vmatprep.subr.bf16.mxu0 %v2425_v5  ;;  %1741 = vmatprep.subr.bf16.mxu1 %v1914_v1  ;;  %v1184_v5 = vunpack.c.l.bf16 %v1180_v27 }
 0x61f   :  { %1235 = vmatpush1.bf16.msra.mxu0 %v2432_v6  ;;  %1742 = vmatpush3.bf16.msra.mxu1 %v2438_v7 }
 0x620   :  { %1236 = vmatprep.subr.bf16.mxu0 %v2444_v8  ;;  %1743 = vmatprep.subr.bf16.mxu1 %v1914_v1 }
 0x623   :  { %1237 = vmatpush1.bf16.msra.mxu0 %v2451_v9  ;;  %1744 = vmatpush3.bf16.msra.mxu1 %v2457_v10  ;;  %v1185_v10 = vunpack.c.l.bf16 %v1181_v43 }
 0x624   :  { %1238 = vmatprep.subr.bf16.mxu0 %v2463_v11  ;;  %1745 = vmatprep.subr.bf16.mxu1 %v1914_v1 }
 0x627   :  { %1239 = vmatpush1.bf16.msra.mxu0 %v2470_v12  ;;  %1746 = vmatpush3.bf16.msra.mxu1 %v2476_v13 }
 0x628   :  { %1240 = vmatprep.subr.bf16.mxu0 %v2482_v14  ;;  %1747 = vmatprep.subr.bf16.mxu1 %v1914_v1 }
 0x62b   :  { %1241 = vmatpush1.bf16.msra.mxu0 %v2489_v15  ;;  %1748 = vmatpush3.bf16.msra.mxu1 %v2495_v16 }
 0x62c   :  { %1242 = vmatprep.subr.bf16.mxu0 %v2501_v17  ;;  %1749 = vmatprep.subr.bf16.mxu1 %v1914_v1 }
 0x62f   :  { %1243 = vmatpush1.bf16.msra.mxu0 %v2508_v18  ;;  %1750 = vmatpush3.bf16.msra.mxu1 %v2514_v19 }
 0x630   :  { %1244 = vmatprep.subr.bf16.mxu0 %v2520_v20  ;;  %1751 = vmatprep.subr.bf16.mxu1 %v1914_v1 }
 0x633   :  { %1245 = vmatpush1.bf16.msra.mxu0 %v2527_v21  ;;  %1752 = vmatpush3.bf16.msra.mxu1 %v2533_v22  ;;  %v1447_v21 = vld [vmem:[%s2633_s0 + $0x98] ss:$12 sps:$4 sm:$0xff]  }
 0x634   :  { %v1200_v28 = vunpack.c.l.bf16 %v1447_v21  ;;  %v1201_v57 = vunpack.c.h.bf16 %v1447_v21 }
 0x6e9   :  { %v1116_v30 = vpop.f32.mrb[24].mxu0  ;;  %v1159_v4 = vpop.f32.mrb[24].mxu1 }
 0x6ea   :  { %v1168_v1 = vadd.f32 %v1166_v63, %v1116_v30  ;;  %v1118_v6 = vpop.f32.mrb[25].mxu0  ;;  %v1735_v7 = vpop.f32.mrb[25].mxu1  ;;  %v1196_v60 = vadd.f32 %v2605_v50, %v1159_v4  ;;  %v1333_v4 = vunpack.c.l.bf16 %v1329_v42 }
 0x6eb   :  { %v1120_v8 = vpop.f32.mrb[26].mxu0  ;;  %v1162_v9 = vpop.f32.mrb[26].mxu1  ;;  %v1186_v15 = vadd.f32 %v1184_v5, %v1118_v6 }
 0x6ec   :  { %v1170_v11 = vmul.f32 0.5, %v1168_v1  ;;  %v1169_v12 = vadd.f32 %v1167_v44, %v1120_v8  ;;  %v1122_v13 = vpop.f32.mrb[27].mxu0  ;;  %v1736_v14 = vpop.f32.mrb[27].mxu1  ;;  %v1197_v56 = vadd.f32 %v2605_v50, %v1162_v9 }
 0x6ed   :  { %v1187_v17 = vadd.f32 %v1185_v10, %v1122_v13  ;;  %v1188_v18 = vmul.f32 0.5, %v1186_v15  ;;  %v1455_v14 = vld [vmem:[%s2633_s0 + $0xb0] ss:$12 sps:$4 sm:$0xff]  }
 0x6ee   :  { %1865 = vtanh.f32 %v1170_v11  ;;  %v1171_v16 = vmul.f32 0.5, %v1169_v12 }
 0x6ef   :  { %v1189_v19 = vmul.f32 0.5, %v1187_v17 }
 0x6f0   :  { %1867 = vtanh.f32 %v1171_v16 }
 0x6f1   :  { %1869 = vtanh.f32 %v1188_v18 }
 0x6f2   :  { %1871 = vtanh.f32 %v1189_v19  ;;  %v1348_v19 = vunpack.c.l.bf16 %v1455_v14 }
 0x6f8   :  { %v1866_v20 = vpop.eup %1865 }
 0x6f9   :  { %v1174_v22 = vmul.f32 0.5, %v1866_v20 }
 0x6fa   :  { %v1868_v47 = vpop.eup %1867 }
 0x6fb   :  { %v1176_v48 = vadd.f32 0.5, %v1174_v22  ;;  %v1175_v52 = vmul.f32 0.5, %v1868_v47  ;;  %v1870_v54 = vpop.eup %1869 }
 0x6fc   :  { %v1872_v58 = vpop.eup %1871  ;;  %v1192_v26 = vmul.f32 0.5, %v1870_v54 }
 0x6fd   :  { %v1198_v53 = vmul.f32 %v1196_v60, %v1176_v48  ;;  %v1177_v55 = vadd.f32 0.5, %v1175_v52  ;;  %v1193_v29 = vmul.f32 0.5, %v1872_v58  ;;  %v1349_v48 = vunpack.c.h.bf16 %v1455_v14 }
 0x6fe   :  { %v1194_v23 = vadd.f32 0.5, %v1192_v26 }
 0x6ff   :  { %v1202_v59 = vadd.f32 %v1200_v28, %v1198_v53  ;;  %v1199_v61 = vmul.f32 %v1197_v56, %v1177_v55  ;;  %v1195_v24 = vadd.f32 0.5, %v1193_v29 }
 0x700   :  { %v1206_v25 = vsub.f32 1.0, %v1194_v23  ;;  %v1210_v31 = vmul.f32 %v1194_v23, %v2550_v51  ;;  %v1328_v51 = vrot.slane %v1454_v35, 4 }
 0x701   :  { %1873 = vtanh.f32 %v1202_v59  ;;  %v1203_v62 = vadd.f32 %v1201_v57, %v1199_v61  ;;  %v1207_v32 = vsub.f32 1.0, %v1195_v24  ;;  %v1211_v33 = vmul.f32 %v1195_v24, %v2553_v45 }
 0x702   :  { %v1315_v45 = vunpack.c.l.bf16 %v1456_v40  ;;  %v1332_v0 = vunpack.c.l.bf16 %v1328_v51 }
 0x703   :  { %1875 = vtanh.f32 %v1203_v62 }
 0x70b   :  { %v1874_v41 = vpop.eup %1873 }
 0x70c   :  { %v1208_v49 = vmul.f32 %v1874_v41, %v1206_v25 }
 0x70d   :  { %v1876_v34 = vpop.eup %1875 }
 0x70e   :  { %v1212_v36 = vadd.f32 %v1210_v31, %v1208_v49  ;;  %v1209_v37 = vmul.f32 %v1876_v34, %v1207_v32 }
 0x710   :  { %v2611_v3 = vadd.f32 %v1211_v33, %v1209_v37 }
 0x712   :  { %v1214_v38 = vpack.c.bf16 %v2611_v3, %v1212_v36 }
 0x714   :  { %1523 = vst [vmem:[%s2635_s3 + $0x30] sm:$0xff] %v1214_v38   ;;  %1263 = vmatmul.mubr.bf16.vlgmr.msra.gmra.mrb[28].mxu0 %v1214_v38  ;;  %1754 = vmatmul.mubr.bf16.vlgmr.msra.gmra.mrb[28].mxu1 %v1214_v38 }
 0x7e7   :  { %v1264_v46 = vpop.f32.mrb[28].mxu0  ;;  %v1307_v2 = vpop.f32.mrb[28].mxu1 }
 0x7e8   :  { %v1316_v27 = vadd.f32 %v1314_v39, %v1264_v46  ;;  %v1266_v63 = vpop.f32.mrb[29].mxu0  ;;  %v1755_v43 = vpop.f32.mrb[29].mxu1  ;;  %v1344_v18 = vadd.f32 %v2605_v50, %v1307_v2 }
 0x7e9   :  { %v1268_v44 = vpop.f32.mrb[30].mxu0  ;;  %v1310_v30 = vpop.f32.mrb[30].mxu1  ;;  %v1334_v8 = vadd.f32 %v1332_v0, %v1266_v63 }
 0x7ea   :  { %v1318_v5 = vmul.f32 0.5, %v1316_v27  ;;  %v1317_v1 = vadd.f32 %v1315_v45, %v1268_v44  ;;  %v1270_v6 = vpop.f32.mrb[31].mxu0  ;;  %v1756_v7 = vpop.f32.mrb[31].mxu1  ;;  %v1345_v47 = vadd.f32 %v2605_v50, %v1310_v30 }
 0x7eb   :  { %v1335_v10 = vadd.f32 %v1333_v4, %v1270_v6  ;;  %v1336_v11 = vmul.f32 0.5, %v1334_v8 }
 0x7ec   :  { %1877 = vtanh.f32 %v1318_v5  ;;  %v1319_v9 = vmul.f32 0.5, %v1317_v1 }
 0x7ed   :  { %v1337_v12 = vmul.f32 0.5, %v1335_v10 }
 0x7ee   :  { %1879 = vtanh.f32 %v1319_v9 }
 0x7ef   :  { %1881 = vtanh.f32 %v1336_v11 }
 0x7f0   :  { %1883 = vtanh.f32 %v1337_v12 }
 0x7f6   :  { %v1878_v13 = vpop.eup %1877 }
 0x7f7   :  { %v1322_v15 = vmul.f32 0.5, %v1878_v13 }
 0x7f8   :  { %v1880_v16 = vpop.eup %1879 }
 0x7f9   :  { %v1324_v17 = vadd.f32 0.5, %v1322_v15  ;;  %v1323_v20 = vmul.f32 0.5, %v1880_v16  ;;  %v1882_v60 = vpop.eup %1881 }
 0x7fa   :  { %v1884_v53 = vpop.eup %1883  ;;  %v1340_v56 = vmul.f32 0.5, %v1882_v60 }
 0x7fb   :  { %v1346_v21 = vmul.f32 %v1344_v18, %v1324_v17  ;;  %v1325_v22 = vadd.f32 0.5, %v1323_v20  ;;  %v1341_v57 = vmul.f32 0.5, %v1884_v53 }
 0x7fc   :  { %v1342_v54 = vadd.f32 0.5, %v1340_v56 }
 0x7fd   :  { %v1350_v28 = vadd.f32 %v1348_v19, %v1346_v21  ;;  %v1347_v52 = vmul.f32 %v1345_v47, %v1325_v22  ;;  %v1343_v59 = vadd.f32 0.5, %v1341_v57 }
 0x7fe   :  { %v1354_v61 = vsub.f32 1.0, %v1342_v54  ;;  %v1358_v26 = vmul.f32 %v1342_v54, %v1212_v36 }
 0x7ff   :  { %1885 = vtanh.f32 %v1350_v28  ;;  %v1351_v55 = vadd.f32 %v1349_v48, %v1347_v52  ;;  %v1355_v29 = vsub.f32 1.0, %v1343_v59  ;;  %v1359_v25 = vmul.f32 %v1343_v59, %v2611_v3 }
 0x801   :  { %1887 = vtanh.f32 %v1351_v55 }
 0x809   :  { %v1886_v58 = vpop.eup %1885 }
 0x80a   :  { %v1356_v62 = vmul.f32 %v1886_v58, %v1354_v61 }
 0x80b   :  { %v1888_v23 = vpop.eup %1887 }
 0x80c   :  { %v1360_v24 = vadd.f32 %v1358_v26, %v1356_v62  ;;  %v1357_v50 = vmul.f32 %v1888_v23, %v1355_v29 }
 0x80e   :  { %v1361_v41 = vadd.f32 %v1359_v25, %v1357_v50 }
 0x810   :  { %v1516_v49 = vpack.c.bf16 %v1361_v41, %v1360_v24 }
 0x812   :  { %1524 = vst [vmem:[%s2635_s3 + $0x38] sm:$0xff] %v1516_v49  }

// kernel: rnn_classifier_forward.4
= control target key start
LH: loop header
LB: loop body
LE: loop exit
PB: predicated region body
PF: predicated region fallthrough
CT: control target
= control target key end

     0   :  { %v847_v1 = vmov 0   ;;  %v65_v33 = vlaneseq  ;;  %s1125_s1 = inlined_call_operand.vmem [shape: bf16[128,384], index: 1, kind: input, shape index: {}]   ;;  %s1126_s0 = inlined_call_operand.vmem [shape: bf16[128,128], index: 0, kind: input, shape index: {}]   ;;  %s1127_s2 = inlined_call_operand.vmem [shape: f32[1,384], index: 2, kind: input, shape index: {}]   ;;  %s1128_s3 = inlined_call_operand.vmem [shape: bf16[128,384], index: 3, kind: output, shape index: {}]  }
   0x1   :  { %v807_v0 = vld [vmem:[%s1125_s1 + $0x4] ss:$12 sps:$4 sm:$0xff]   ;;  %288 = vmatprep.mubr.bf16.mxu0 %v847_v1  ;;  %v809_v2 = vld [vmem:[%s1125_s1] ss:$12 sps:$4 sm:$0xff]   ;;  %v810_v3 = vld [vmem:[%s1125_s1 + $0x1c] ss:$12 sps:$4 sm:$0xff]  }
   0x2   :  { %256 = vmatprep.subr.bf16.mxu0 %v807_v0  ;;  %v812_v4 = vld [vmem:[%s1125_s1 + $0x18] ss:$12 sps:$4 sm:$0xff]   ;;  %v813_v5 = vld [vmem:[%s1125_s1 + $0x34] ss:$12 sps:$4 sm:$0xff]   ;;  %v815_v6 = vld [vmem:[%s1125_s1 + $0x30] ss:$12 sps:$4 sm:$0xff]  }
   0x3   :  { %257 = vmatpush1.bf16.msra.mxu0 %v809_v2  ;;  %v816_v7 = vld [vmem:[%s1125_s1 + $0x4c] ss:$12 sps:$4 sm:$0xff]   ;;  %v818_v8 = vld [vmem:[%s1125_s1 + $0x48] ss:$12 sps:$4 sm:$0xff]   ;;  %v819_v9 = vld [vmem:[%s1125_s1 + $0x64] ss:$12 sps:$4 sm:$0xff]  }
   0x4   :  { %258 = vmatprep.subr.bf16.mxu0 %v810_v3  ;;  %v831_v10 = vld [vmem:[%s1125_s1 + $0x8] ss:$12 sps:$4 sm:$0xff]   ;;  %v832_v11 = vld [vmem:[%s1126_s0] sm:$0xff]   ;;  %v836_v17 = vld [vmem:[%s1125_s1 + $0x50] ss:$12 sps:$4 sm:$0xff]   ;;  %v66_v34 = vshrl.u32 %v65_v33, 7 }
   0x5   :  { %774 = vmatprep.subr.bf16.mxu1 %v831_v10  ;;  %v833_v12 = vld [vmem:[%s1125_s1 + $0x20] ss:$12 sps:$4 sm:$0xff]   ;;  %790 = vmatprep.mubr.bf16.mxu1 %v832_v11  ;;  %v834_v14 = vld [vmem:[%s1125_s1 + $0x38] ss:$12 sps:$4 sm:$0xff]   ;;  %v822_v15 = vld [vmem:[%s1125_s1 + $0x7c] ss:$12 sps:$4 sm:$0xff]  }
   0x6   :  { %v821_v13 = vld [vmem:[%s1125_s1 + $0x60] ss:$12 sps:$4 sm:$0xff]   ;;  %775 = vmatpush3.bf16.msra.mxu1 %v831_v10  ;;  %v824_v16 = vld [vmem:[%s1125_s1 + $0x78] ss:$12 sps:$4 sm:$0xff]   ;;  %v827_v19 = vld [vmem:[%s1125_s1 + $0x90] ss:$12 sps:$4 sm:$0xff]  }
   0x7   :  { %259 = vmatpush1.bf16.msra.mxu0 %v812_v4  ;;  %776 = vmatprep.subr.bf16.mxu1 %v833_v12  ;;  %v825_v18 = vld [vmem:[%s1125_s1 + $0x94] ss:$12 sps:$4 sm:$0xff]   ;;  %v828_v21 = vld [vmem:[%s1125_s1 + $0xac] ss:$12 sps:$4 sm:$0xff]   ;;  %v842_v25 = vld [vmem:[%s1125_s1 + $0xb0] ss:$12 sps:$4 sm:$0xff]  }
   0x8   :  { %260 = vmatprep.subr.bf16.mxu0 %v813_v5  ;;  %v837_v20 = vld [vmem:[%s1125_s1 + $0x68] ss:$12 sps:$4 sm:$0xff]   ;;  %v839_v23 = vld [vmem:[%s1125_s1 + $0x80] ss:$12 sps:$4 sm:$0xff]   ;;  %v840_v24 = vld [vmem:[%s1125_s1 + $0x98] ss:$12 sps:$4 sm:$0xff]  }
   0x9   :  { %v830_v22 = vld [vmem:[%s1125_s1 + $0xa8] ss:$12 sps:$4 sm:$0xff]   ;;  %v841_v28 = vld [vmem:[%s1126_s0 + $0x18] sm:$0xff]   ;;  %v843_v29 = vld [vmem:[%s1126_s0 + $0x20] sm:$0xff]   ;;  %v67_v35 = vsub.s32 0, %v66_v34  ;;  %v71_v37 = vsub.s32 1, %v66_v34 }
   0xa   :  { %777 = vmatpush3.bf16.msra.mxu1 %v833_v12  ;;  %v835_v26 = vld [vmem:[%s1126_s0 + $0x8] sm:$0xff]   ;;  %v838_v27 = vld [vmem:[%s1126_s0 + $0x10] sm:$0xff]   ;;  %v846_v32 = vld [vmem:[%s1126_s0 + $0x38] sm:$0xff]   ;;  %v75_v49 = vsub.s32 2, %v66_v34 }
   0xb   :  { %261 = vmatpush1.bf16.msra.mxu0 %v815_v6  ;;  %778 = vmatprep.subr.bf16.mxu1 %v834_v14  ;;  %v844_v30 = vld [vmem:[%s1126_s0 + $0x28] sm:$0xff]   ;;  %v845_v31 = vld [vmem:[%s1126_s0 + $0x30] sm:$0xff]   ;;  %v63_v36 = vld [vmem:[%s1127_s2] sm:$0x7] }
   0xc   :  { %262 = vmatprep.subr.bf16.mxu0 %v816_v7  ;;  %v975_v38 = vrot.slane %v63_v36, %v67_v35  ;;  %v977_v39 = vrot.slane %v63_v36, %v71_v37  ;;  %v989_v52 = vrot.slane %v63_v36, %v75_v49 }
   0xe   :  { %779 = vmatpush3.bf16.msra.mxu1 %v834_v14 }
   0xf   :  { %263 = vmatpush1.bf16.msra.mxu0 %v818_v8  ;;  %780 = vmatprep.subr.bf16.mxu1 %v836_v17 }
  0x10   :  { %264 = vmatprep.subr.bf16.mxu0 %v819_v9 }
  0x12   :  { %781 = vmatpush3.bf16.msra.mxu1 %v836_v17 }
  0x13   :  { %265 = vmatpush1.bf16.msra.mxu0 %v821_v13  ;;  %782 = vmatprep.subr.bf16.mxu1 %v837_v20 }
  0x14   :  { %266 = vmatprep.subr.bf16.mxu0 %v822_v15 }
  0x16   :  { %783 = vmatpush3.bf16.msra.mxu1 %v837_v20 }
  0x17   :  { %267 = vmatpush1.bf16.msra.mxu0 %v824_v16  ;;  %784 = vmatprep.subr.bf16.mxu1 %v839_v23 }
  0x18   :  { %268 = vmatprep.subr.bf16.mxu0 %v825_v18 }
  0x1a   :  { %785 = vmatpush3.bf16.msra.mxu1 %v839_v23 }
  0x1b   :  { %269 = vmatpush1.bf16.msra.mxu0 %v827_v19  ;;  %786 = vmatprep.subr.bf16.mxu1 %v840_v24 }
  0x1c   :  { %270 = vmatprep.subr.bf16.mxu0 %v828_v21 }
  0x1e   :  { %787 = vmatpush3.bf16.msra.mxu1 %v840_v24 }
  0x1f   :  { %271 = vmatpush1.bf16.msra.mxu0 %v830_v22  ;;  %788 = vmatprep.subr.bf16.mxu1 %v842_v25 }
  0x22   :  { %289 = vmatmul.mubr.bf16.vlgmr.msra.gmra.mrb[0].mxu0 %v832_v11  ;;  %789 = vmatpush3.bf16.msra.mxu1 %v842_v25 }
  0x23   :  { %298 = vmatprep.mubr.bf16.mxu0 %v847_v1 }
  0x25   :  { %791 = vmatmul.mubr.bf16.vlgmr.msra.gmra.mrb[0].mxu1 %v835_v26 }
  0x26   :  { %794 = vmatprep.mubr.bf16.mxu1 %v838_v27 }
  0x2a   :  { %299 = vmatmul.mubr.bf16.gmra.mrb[4].mxu0 %v835_v26 }
  0x2b   :  { %308 = vmatprep.mubr.bf16.mxu0 %v847_v1 }
  0x2d   :  { %795 = vmatmul.mubr.bf16.gmra.mrb[4].mxu1 %v841_v28 }
  0x2e   :  { %798 = vmatprep.mubr.bf16.mxu1 %v843_v29 }
  0x32   :  { %309 = vmatmul.mubr.bf16.gmra.mrb[8].mxu0 %v838_v27 }
  0x33   :  { %318 = vmatprep.mubr.bf16.mxu0 %v847_v1 }
  0x35   :  { %799 = vmatmul.mubr.bf16.gmra.mrb[8].mxu1 %v844_v30 }
  0x36   :  { %802 = vmatprep.mubr.bf16.mxu1 %v845_v31 }
  0x3a   :  { %319 = vmatmul.mubr.bf16.gmra.mrb[12].mxu0 %v841_v28 }
  0x3b   :  { %328 = vmatprep.mubr.bf16.mxu0 %v847_v1 }
  0x3d   :  { %803 = vmatmul.mubr.bf16.gmra.mrb[12].mxu1 %v846_v32 }
  0x42   :  { %329 = vmatmul.mubr.bf16.gmra.mrb[16].mxu0 %v843_v29 }
  0x43   :  { %338 = vmatprep.mubr.bf16.mxu0 %v847_v1 }
  0x4a   :  { %339 = vmatmul.mubr.bf16.gmra.mrb[20].mxu0 %v844_v30 }
  0x4b   :  { %348 = vmatprep.mubr.bf16.mxu0 %v847_v1 }
  0x52   :  { %349 = vmatmul.mubr.bf16.gmra.mrb[24].mxu0 %v845_v31 }
  0x53   :  { %358 = vmatprep.mubr.bf16.mxu0 %v847_v1 }
  0x5a   :  { %359 = vmatmul.mubr.bf16.gmra.mrb[28].mxu0 %v846_v32 }
  0xf5   :  { %v290_v40 = vpop.f32.mrb[0].mxu0 }
  0xf6   :  { %v291_v41 = vadd.f32 %v290_v40, %v975_v38  ;;  %v292_v42 = vpop.f32.mrb[1].mxu0 }
  0xf7   :  { %v293_v43 = vadd.f32 %v292_v42, %v977_v39  ;;  %v294_v44 = vpop.f32.mrb[2].mxu0 }
  0xf8   :  { %v295_v45 = vadd.f32 %v294_v44, %v975_v38  ;;  %v296_v46 = vpop.f32.mrb[3].mxu0  ;;  %v792_v59 = vpop.f32.mrb[0].mxu1 }
  0xf9   :  { %v726_v47 = vpack.c.bf16 %v293_v43, %v291_v41  ;;  %v297_v48 = vadd.f32 %v296_v46, %v977_v39  ;;  %v412_v62 = vadd.f32 %v792_v59, %v989_v52  ;;  %v403_v63 = vpop.f32.mrb[1].mxu1 }
  0xfa   :  { %v404_v0 = vadd.f32 %v403_v63, %v989_v52  ;;  %v793_v1 = vpop.f32.mrb[2].mxu1 }
  0xfb   :  { %626 = vst [vmem:[%s1128_s3] sm:$0xff] %v726_v47  ;;  %v728_v50 = vpack.c.bf16 %v297_v48, %v295_v45  ;;  %v731_v3 = vpack.c.bf16 %v412_v62, %v412_v62  ;;  %v415_v4 = vadd.f32 %v793_v1, %v989_v52  ;;  %v406_v5 = vpop.f32.mrb[3].mxu1 }
  0xfc   :  { %v727_v6 = vpack.c.bf16 %v404_v0, %v404_v0  ;;  %v407_v7 = vadd.f32 %v406_v5, %v989_v52 }
  0xfd   :  { %628 = vst [vmem:[%s1128_s3 + $0xc] sm:$0xff] %v728_v50  ;;  %v300_v51 = vpop.f32.mrb[4].mxu0  ;;  %631 = vst [vmem:[%s1128_s3 + $0x20] sm:$0xf] %v731_v3  ;;  %v733_v9 = vpack.c.bf16 %v415_v4, %v415_v4 }
  0xfe   :  { %v301_v53 = vadd.f32 %v300_v51, %v975_v38  ;;  %v302_v54 = vpop.f32.mrb[5].mxu0  ;;  %627 = vst [vmem:[%s1128_s3 + $0x8] sm:$0xf] %v727_v6  ;;  %v729_v12 = vpack.c.bf16 %v407_v7, %v407_v7 }
  0xff   :  { %v303_v55 = vadd.f32 %v302_v54, %v977_v39  ;;  %v304_v56 = vpop.f32.mrb[6].mxu0  ;;  %633 = vst [vmem:[%s1128_s3 + $0x2c] sm:$0xf] %v733_v9 }
 0x100   :  { %v305_v57 = vadd.f32 %v304_v56, %v975_v38  ;;  %v306_v58 = vpop.f32.mrb[7].mxu0  ;;  %629 = vst [vmem:[%s1128_s3 + $0x14] sm:$0xf] %v729_v12  ;;  %v796_v17 = vpop.f32.mrb[4].mxu1 }
 0x101   :  { %v730_v60 = vpack.c.bf16 %v303_v55, %v301_v53  ;;  %v307_v61 = vadd.f32 %v306_v58, %v977_v39  ;;  %v428_v20 = vadd.f32 %v796_v17, %v989_v52  ;;  %v419_v21 = vpop.f32.mrb[5].mxu1 }
 0x102   :  { %v420_v22 = vadd.f32 %v419_v21, %v989_v52  ;;  %v797_v23 = vpop.f32.mrb[6].mxu1 }
 0x103   :  { %630 = vst [vmem:[%s1128_s3 + $0x18] sm:$0xff] %v730_v60  ;;  %v732_v2 = vpack.c.bf16 %v307_v61, %v305_v57  ;;  %v739_v25 = vpack.c.bf16 %v428_v20, %v428_v20  ;;  %v431_v26 = vadd.f32 %v797_v23, %v989_v52  ;;  %v422_v27 = vpop.f32.mrb[7].mxu1 }
 0x104   :  { %v735_v28 = vpack.c.bf16 %v420_v22, %v420_v22  ;;  %v423_v29 = vadd.f32 %v422_v27, %v989_v52 }
 0x105   :  { %632 = vst [vmem:[%s1128_s3 + $0x24] sm:$0xff] %v732_v2  ;;  %v310_v8 = vpop.f32.mrb[8].mxu0  ;;  %639 = vst [vmem:[%s1128_s3 + $0x50] sm:$0xf] %v739_v25  ;;  %v741_v31 = vpack.c.bf16 %v431_v26, %v431_v26 }
 0x106   :  { %v311_v10 = vadd.f32 %v310_v8, %v975_v38  ;;  %v312_v11 = vpop.f32.mrb[9].mxu0  ;;  %635 = vst [vmem:[%s1128_s3 + $0x38] sm:$0xf] %v735_v28  ;;  %v737_v34 = vpack.c.bf16 %v423_v29, %v423_v29 }
 0x107   :  { %v313_v13 = vadd.f32 %v312_v11, %v977_v39  ;;  %v314_v14 = vpop.f32.mrb[10].mxu0  ;;  %641 = vst [vmem:[%s1128_s3 + $0x5c] sm:$0xf] %v741_v31 }
 0x108   :  { %v315_v15 = vadd.f32 %v314_v14, %v975_v38  ;;  %v316_v16 = vpop.f32.mrb[11].mxu0  ;;  %637 = vst [vmem:[%s1128_s3 + $0x44] sm:$0xf] %v737_v34  ;;  %v800_v41 = vpop.f32.mrb[8].mxu1 }
 0x109   :  { %v734_v18 = vpack.c.bf16 %v313_v13, %v311_v10  ;;  %v317_v19 = vadd.f32 %v316_v16, %v977_v39  ;;  %v444_v44 = vadd.f32 %v800_v41, %v989_v52  ;;  %v435_v45 = vpop.f32.mrb[9].mxu1 }
 0x10a   :  { %v436_v46 = vadd.f32 %v435_v45, %v989_v52  ;;  %v801_v47 = vpop.f32.mrb[10].mxu1 }
 0x10b   :  { %634 = vst [vmem:[%s1128_s3 + $0x30] sm:$0xff] %v734_v18  ;;  %v736_v24 = vpack.c.bf16 %v317_v19, %v315_v15  ;;  %v747_v49 = vpack.c.bf16 %v444_v44, %v444_v44  ;;  %v447_v50 = vadd.f32 %v801_v47, %v989_v52  ;;  %v438_v51 = vpop.f32.mrb[11].mxu1 }
 0x10c   :  { %v743_v53 = vpack.c.bf16 %v436_v46, %v436_v46  ;;  %v439_v54 = vadd.f32 %v438_v51, %v989_v52 }
 0x10d   :  { %636 = vst [vmem:[%s1128_s3 + $0x3c] sm:$0xff] %v736_v24  ;;  %v320_v30 = vpop.f32.mrb[12].mxu0  ;;  %647 = vst [vmem:[%s1128_s3 + $0x80] sm:$0xf] %v747_v49  ;;  %v749_v56 = vpack.c.bf16 %v447_v50, %v447_v50 }
 0x10e   :  { %v321_v32 = vadd.f32 %v320_v30, %v975_v38  ;;  %v322_v33 = vpop.f32.mrb[13].mxu0  ;;  %643 = vst [vmem:[%s1128_s3 + $0x68] sm:$0xf] %v743_v53  ;;  %v745_v59 = vpack.c.bf16 %v439_v54, %v439_v54 }
 0x10f   :  { %v323_v35 = vadd.f32 %v322_v33, %v977_v39  ;;  %v324_v36 = vpop.f32.mrb[14].mxu0  ;;  %649 = vst [vmem:[%s1128_s3 + $0x8c] sm:$0xf] %v749_v56 }
 0x110   :  { %v325_v37 = vadd.f32 %v324_v36, %v975_v38  ;;  %v326_v40 = vpop.f32.mrb[15].mxu0  ;;  %645 = vst [vmem:[%s1128_s3 + $0x74] sm:$0xf] %v745_v59  ;;  %v804_v0 = vpop.f32.mrb[12].mxu1 }
 0x111   :  { %v738_v42 = vpack.c.bf16 %v323_v35, %v321_v32  ;;  %v327_v43 = vadd.f32 %v326_v40, %v977_v39  ;;  %v460_v3 = vadd.f32 %v804_v0, %v989_v52  ;;  %v451_v4 = vpop.f32.mrb[13].mxu1 }
 0x112   :  { %v452_v5 = vadd.f32 %v451_v4, %v989_v52  ;;  %v805_v6 = vpop.f32.mrb[14].mxu1 }
 0x113   :  { %638 = vst [vmem:[%s1128_s3 + $0x48] sm:$0xff] %v738_v42  ;;  %v740_v48 = vpack.c.bf16 %v327_v43, %v325_v37  ;;  %v755_v8 = vpack.c.bf16 %v460_v3, %v460_v3  ;;  %v463_v9 = vadd.f32 %v805_v6, %v989_v52  ;;  %v454_v10 = vpop.f32.mrb[15].mxu1 }
 0x114   :  { %v751_v11 = vpack.c.bf16 %v452_v5, %v452_v5  ;;  %v455_v12 = vadd.f32 %v454_v10, %v989_v52 }
 0x115   :  { %640 = vst [vmem:[%s1128_s3 + $0x54] sm:$0xff] %v740_v48  ;;  %v330_v55 = vpop.f32.mrb[16].mxu0  ;;  %655 = vst [vmem:[%s1128_s3 + $0xb0] sm:$0xf] %v755_v8  ;;  %v757_v14 = vpack.c.bf16 %v463_v9, %v463_v9 }
 0x116   :  { %v331_v57 = vadd.f32 %v330_v55, %v975_v38  ;;  %v332_v58 = vpop.f32.mrb[17].mxu0  ;;  %651 = vst [vmem:[%s1128_s3 + $0x98] sm:$0xf] %v751_v11  ;;  %v753_v17 = vpack.c.bf16 %v455_v12, %v455_v12 }
 0x117   :  { %v333_v60 = vadd.f32 %v332_v58, %v977_v39  ;;  %v334_v61 = vpop.f32.mrb[18].mxu0  ;;  %657 = vst [vmem:[%s1128_s3 + $0xbc] sm:$0xf] %v757_v14 }
 0x118   :  { %v335_v62 = vadd.f32 %v334_v61, %v975_v38  ;;  %v336_v63 = vpop.f32.mrb[19].mxu0  ;;  %653 = vst [vmem:[%s1128_s3 + $0xa4] sm:$0xf] %v753_v17 }
 0x119   :  { %v742_v1 = vpack.c.bf16 %v333_v60, %v331_v57  ;;  %v337_v2 = vadd.f32 %v336_v63, %v977_v39 }
 0x11b   :  { %642 = vst [vmem:[%s1128_s3 + $0x60] sm:$0xff] %v742_v1  ;;  %v744_v7 = vpack.c.bf16 %v337_v2, %v335_v62 }
 0x11d   :  { %644 = vst [vmem:[%s1128_s3 + $0x6c] sm:$0xff] %v744_v7  ;;  %v340_v13 = vpop.f32.mrb[20].mxu0 }
 0x11e   :  { %v341_v15 = vadd.f32 %v340_v13, %v975_v38  ;;  %v342_v16 = vpop.f32.mrb[21].mxu0 }
 0x11f   :  { %v343_v52 = vadd.f32 %v342_v16, %v977_v39  ;;  %v344_v18 = vpop.f32.mrb[22].mxu0 }
 0x120   :  { %v345_v19 = vadd.f32 %v344_v18, %v975_v38  ;;  %v346_v20 = vpop.f32.mrb[23].mxu0 }
 0x121   :  { %v746_v21 = vpack.c.bf16 %v343_v52, %v341_v15  ;;  %v347_v22 = vadd.f32 %v346_v20, %v977_v39 }
 0x123   :  { %646 = vst [vmem:[%s1128_s3 + $0x78] sm:$0xff] %v746_v21  ;;  %v748_v23 = vpack.c.bf16 %v347_v22, %v345_v19 }
 0x125   :  { %648 = vst [vmem:[%s1128_s3 + $0x84] sm:$0xff] %v748_v23  ;;  %v350_v24 = vpop.f32.mrb[24].mxu0 }
 0x126   :  { %v351_v25 = vadd.f32 %v350_v24, %v975_v38  ;;  %v352_v26 = vpop.f32.mrb[25].mxu0 }
 0x127   :  { %v353_v27 = vadd.f32 %v352_v26, %v977_v39  ;;  %v354_v28 = vpop.f32.mrb[26].mxu0 }
 0x128   :  { %v355_v29 = vadd.f32 %v354_v28, %v975_v38  ;;  %v356_v30 = vpop.f32.mrb[27].mxu0 }
 0x129   :  { %v750_v31 = vpack.c.bf16 %v353_v27, %v351_v25  ;;  %v357_v32 = vadd.f32 %v356_v30, %v977_v39 }
 0x12b   :  { %650 = vst [vmem:[%s1128_s3 + $0x90] sm:$0xff] %v750_v31  ;;  %v752_v33 = vpack.c.bf16 %v357_v32, %v355_v29 }
 0x12d   :  { %652 = vst [vmem:[%s1128_s3 + $0x9c] sm:$0xff] %v752_v33  ;;  %v360_v34 = vpop.f32.mrb[28].mxu0 }
 0x12e   :  { %v361_v35 = vadd.f32 %v360_v34, %v975_v38  ;;  %v362_v36 = vpop.f32.mrb[29].mxu0 }
 0x12f   :  { %v363_v37 = vadd.f32 %v362_v36, %v977_v39  ;;  %v364_v40 = vpop.f32.mrb[30].mxu0 }
 0x130   :  { %v365_v41 = vadd.f32 %v364_v40, %v975_v38  ;;  %v366_v42 = vpop.f32.mrb[31].mxu0 }
 0x131   :  { %v754_v43 = vpack.c.bf16 %v363_v37, %v361_v35  ;;  %v367_v44 = vadd.f32 %v366_v42, %v977_v39 }
 0x133   :  { %654 = vst [vmem:[%s1128_s3 + $0xa8] sm:$0xff] %v754_v43  ;;  %v756_v45 = vpack.c.bf16 %v367_v44, %v365_v41 }
 0x135   :  { %656 = vst [vmem:[%s1128_s3 + $0xb4] sm:$0xff] %v756_v45 }

// kernel: rnn_classifier_forward.7
= control target key start
LH: loop header
LB: loop body
LE: loop exit
PB: predicated region body
PF: predicated region fallthrough
CT: control target
= control target key end

     0   :  { %v2052_v1 = vmov 0.0   ;;  %v2053_v2 = vmov 0   ;;  %vm2054_vm0 = vmmov 0   ;;  %v2055_v32 = vmov 0.0|0.0   ;;  %s2878_s1 = inlined_call_operand.vmem [shape: bf16[128,384], index: 1, kind: input, shape index: {}]   ;;  %s2879_s3 = inlined_call_operand.vmem [shape: s32[16,1], index: 3, kind: input, shape index: {}]   ;;  %s2880_s0 = inlined_call_operand.vmem [shape: bf16[8,16,384], index: 0, kind: input, shape index: {}]   ;;  %s2881_s2 = inlined_call_operand.vmem [shape: f32[1,128], index: 2, kind: input, shape index: {}]   ;;  %s2882_s4 = inlined_call_operand.vmem [shape: bf16[128,128], index: 4, kind: input, shape index: {}]   ;;  %s2883_s5 = inlined_call_operand.vmem [shape: f32[1,128], index: 5, kind: input, shape index: {}]   ;;  %s2884_s6 = inlined_call_operand.vmem [shape: f32[16,128], index: 6, kind: output, shape index: {}]  }
   0x1   :  { %v2094_v0 = vld [vmem:[%s2878_s1 + $0x4] ss:$12 sps:$4 sm:$0xff]   ;;  %1705 = vmatprep.subr.bf16.mxu1 %v2052_v1  ;;  %233 = vmatprep.mubr.bf16.mxu0 %v2053_v2  ;;  %v2101_v3 = vld [vmem:[%s2878_s1] ss:$12 sps:$4 sm:$0xff]   ;;  %v2110_v4 = vld [vmem:[%s2878_s1 + $0x1c] ss:$12 sps:$4 sm:$0xff]  }
   0x2   :  { %1721 = vmatprep.mubr.msk.bf16.mxu1 %vm2054_vm0, %v2052_v1  ;;  %1889 = vset.pattern.permute.xlu0 %v2053_v2  ;;  %v2117_v5 = vld [vmem:[%s2878_s1 + $0x18] ss:$12 sps:$4 sm:$0xff]   ;;  %v2123_v6 = vld [vmem:[%s2878_s1 + $0x34] ss:$12 sps:$4 sm:$0xff]   ;;  %v2134_v8 = vld [vmem:[%s2878_s1 + $0x30] ss:$12 sps:$4 sm:$0xff]  }
   0x3   :  { %201 = vmatprep.subr.bf16.mxu0 %v2094_v0  ;;  %1890 = vset.pattern.permute.xlu1 %v2053_v2  ;;  %v2128_v7 = vld [vmem:[%s2878_s1 + $0x8] ss:$12 sps:$4 sm:$0xff]   ;;  %v2139_v9 = vld [vmem:[%s2878_s1 + $0x4c] ss:$12 sps:$4 sm:$0xff]   ;;  %v2158_v12 = vld [vmem:[%s2878_s1 + $0x64] ss:$12 sps:$4 sm:$0xff]  }
   0x4   :  { %202 = vmatpush1.bf16.msra.mxu0 %v2101_v3  ;;  %1706 = vmatpush3.bf16.msra.mxu1 %v2128_v7  ;;  %v2146_v10 = vld [vmem:[%s2878_s1 + $0x20] ss:$12 sps:$4 sm:$0xff]   ;;  %v2152_v11 = vld [vmem:[%s2878_s1 + $0x48] ss:$12 sps:$4 sm:$0xff]   ;;  %v2165_v13 = vld [vmem:[%s2878_s1 + $0x38] ss:$12 sps:$4 sm:$0xff]  }
   0x5   :  { %203 = vmatprep.subr.bf16.mxu0 %v2110_v4  ;;  %1707 = vmatprep.subr.bf16.mxu1 %v2052_v1  ;;  %v2171_v14 = vld [vmem:[%s2878_s1 + $0x60] ss:$12 sps:$4 sm:$0xff]   ;;  %v2177_v15 = vld [vmem:[%s2878_s1 + $0x7c] ss:$12 sps:$4 sm:$0xff]   ;;  %v2196_v18 = vld [vmem:[%s2878_s1 + $0x78] ss:$12 sps:$4 sm:$0xff]  }
   0x6   :  { %v2184_v16 = vld [vmem:[%s2878_s1 + $0x50] ss:$12 sps:$4 sm:$0xff]   ;;  %v2190_v17 = vld [vmem:[%s2879_s3] sm:$0xff]  ;;  %v2202_v19 = vld [vmem:[%s2879_s3 + $0x8] sm:$0xff] }
   0x7   :  { %vm340_vm1 = vcmp.gt.s32.totalorder %v2190_v17, 0  ;;  %v2208_v20 = vld [vmem:[%s2878_s1 + $0x94] ss:$12 sps:$4 sm:$0xff]   ;;  %vm341_vm2 = vcmp.gt.s32.totalorder %v2202_v19, 0  ;;  %v2224_v24 = vld [vmem:[%s2878_s1 + $0x90] ss:$12 sps:$4 sm:$0xff]  }
   0x8   :  { %204 = vmatpush1.bf16.msra.mxu0 %v2117_v5  ;;  %1708 = vmatpush3.bf16.msra.mxu1 %v2146_v10  ;;  %v2214_v21 = vld [vmem:[%s2878_s1 + $0x68] ss:$12 sps:$4 sm:$0xff]   ;;  %v342_v22 = vsel %vm340_vm1, 1, %v2053_v2  ;;  %v343_v23 = vsel %vm341_vm2, 1, %v2053_v2  ;;  %vm648_vm3 = vcmp.gt.s32.totalorder %v2190_v17, 2  ;;  %vm802_vm4 = vcmp.gt.s32.totalorder %v2190_v17, 3 }
   0x9   :  { %205 = vmatprep.subr.bf16.mxu0 %v2123_v6  ;;  %1709 = vmatprep.subr.bf16.mxu1 %v2052_v1  ;;  %v2231_v25 = vld [vmem:[%s2878_s1 + $0xac] ss:$12 sps:$4 sm:$0xff]   ;;  %v650_v27 = vsel %vm648_vm3, 1, %v2053_v2  ;;  %v2245_v28 = vld [vmem:[%s2878_s1 + $0xa8] ss:$12 sps:$4 sm:$0xff]   ;;  %v804_v30 = vsel %vm802_vm4, 1, %v2053_v2 }
   0xa   :  { %345 = vperm.xlu0 %1889, %v342_v22   ;;  %v2237_v26 = vld [vmem:[%s2878_s1 + $0x80] ss:$12 sps:$4 sm:$0xff]   ;;  %v2253_v29 = vld [vmem:[%s2878_s1 + $0x98] ss:$12 sps:$4 sm:$0xff]   ;;  %vm956_vm5 = vcmp.gt.s32.totalorder %v2190_v17, 4  ;;  %vm1110_vm6 = vcmp.gt.s32.totalorder %v2190_v17, 5 }
   0xb   :  { %v2263_v31 = vld [vmem:[%s2878_s1 + $0xb0] ss:$12 sps:$4 sm:$0xff]   ;;  %v958_v33 = vsel %vm956_vm5, 1, %v2053_v2  ;;  %v1112_v34 = vsel %vm1110_vm6, 1, %v2053_v2  ;;  %vm1264_vm7 = vcmp.gt.s32.totalorder %v2190_v17, 6  ;;  %vm1418_vm8 = vcmp.gt.s32.totalorder %v2190_v17, 7 }
   0xc   :  { %206 = vmatpush1.bf16.msra.mxu0 %v2134_v8  ;;  %1710 = vmatpush3.bf16.msra.mxu1 %v2165_v13  ;;  %v1266_v35 = vsel %vm1264_vm7, 1, %v2053_v2  ;;  %v1420_v36 = vsel %vm1418_vm8, 1, %v2053_v2  ;;  %vm494_vm9 = vcmp.gt.s32.totalorder %v2190_v17, 1  ;;  %vm495_vm10 = vcmp.gt.s32.totalorder %v2202_v19, 1  ;;  %v68_v45 = vld [vmem:[%s2880_s0] sm:$0xff]  ;;  %v70_v46 = vld [vmem:[%s2880_s0 + $0xc] sm:$0xff] }
   0xd   :  { %207 = vmatprep.subr.bf16.mxu0 %v2139_v9  ;;  %1711 = vmatprep.subr.bf16.mxu1 %v2052_v1  ;;  %v496_v37 = vsel %vm494_vm9, 1, %v2053_v2  ;;  %v497_v38 = vsel %vm495_vm10, 1, %v2053_v2  ;;  %vm649_vm11 = vcmp.gt.s32.totalorder %v2202_v19, 2  ;;  %vm803_vm12 = vcmp.gt.s32.totalorder %v2202_v19, 3 }
   0xe   :  { %348 = vperm.xlu0 %1889, %v343_v23   ;;  %499 = vperm.xlu1 %1890, %v496_v37   ;;  %v651_v39 = vsel %vm649_vm11, 1, %v2053_v2  ;;  %v805_v40 = vsel %vm803_vm12, 1, %v2053_v2  ;;  %vm957_vm13 = vcmp.gt.s32.totalorder %v2202_v19, 4  ;;  %vm1111_vm14 = vcmp.gt.s32.totalorder %v2202_v19, 5 }
   0xf   :  { %v959_v41 = vsel %vm957_vm13, 1, %v2053_v2  ;;  %v1113_v42 = vsel %vm1111_vm14, 1, %v2053_v2  ;;  %vm1265_vm15 = vcmp.gt.s32.totalorder %v2202_v19, 6  ;;  %vm1419_vm1 = vcmp.gt.s32.totalorder %v2202_v19, 7 }
  0x10   :  { %208 = vmatpush1.bf16.msra.mxu0 %v2152_v11  ;;  %1712 = vmatpush3.bf16.msra.mxu1 %v2184_v16  ;;  %v1267_v43 = vsel %vm1265_vm15, 1, %v2053_v2  ;;  %v1421_v44 = vsel %vm1419_vm1, 1, %v2053_v2  ;;  %v299_v47 = vrot.slane %v68_v45, 4  ;;  %v285_v48 = vunpack.c.l.bf16 %v68_v45 }
  0x11   :  { %209 = vmatprep.subr.bf16.mxu0 %v2158_v12  ;;  %1713 = vmatprep.subr.bf16.mxu1 %v2052_v1  ;;  %v300_v49 = vrot.slane %v70_v46, 4  ;;  %v286_v50 = vunpack.c.l.bf16 %v70_v46 }
  0x12   :  { %653 = vperm.xlu0 %1889, %v650_v27   ;;  %502 = vperm.xlu1 %1890, %v497_v38   ;;  %v303_v52 = vunpack.c.l.bf16 %v299_v47 }
  0x13   :  { %v304_v56 = vunpack.c.l.bf16 %v300_v49 }
  0x14   :  { %210 = vmatpush1.bf16.msra.mxu0 %v2171_v14  ;;  %1714 = vmatpush3.bf16.msra.mxu1 %v2214_v21 }
  0x15   :  { %211 = vmatprep.subr.bf16.mxu0 %v2177_v15  ;;  %1715 = vmatprep.subr.bf16.mxu1 %v2052_v1 }
  0x16   :  { %807 = vperm.xlu0 %1889, %v804_v30   ;;  %656 = vperm.xlu1 %1890, %v651_v39   ;;  %v2336_v30 = vld [vmem:[%s2881_s2] ss:$0 sm:$0xff] }
  0x18   :  { %212 = vmatpush1.bf16.msra.mxu0 %v2196_v18  ;;  %1716 = vmatpush3.bf16.msra.mxu1 %v2237_v26 }
  0x19   :  { %213 = vmatprep.subr.bf16.mxu0 %v2208_v20  ;;  %1717 = vmatprep.subr.bf16.mxu1 %v2052_v1 }
  0x1a   :  { %961 = vperm.xlu0 %1889, %v958_v33   ;;  %810 = vperm.xlu1 %1890, %v805_v40   ;;  %v69_v33 = vld [vmem:[%s2880_s0 + $0x8] ss:$12 sps:$4 sm:$0xff]  }
  0x1b   :  { %v325_v39 = vunpack.c.l.bf16 %v69_v33 }
  0x1c   :  { %214 = vmatpush1.bf16.msra.mxu0 %v2224_v24  ;;  %1718 = vmatpush3.bf16.msra.mxu1 %v2253_v29 }
  0x1d   :  { %215 = vmatprep.subr.bf16.mxu0 %v2231_v25  ;;  %1719 = vmatprep.subr.bf16.mxu1 %v2052_v1 }
  0x1e   :  { %1115 = vperm.xlu0 %1889, %v1112_v34   ;;  %964 = vperm.xlu1 %1890, %v959_v41  }
  0x20   :  { %216 = vmatpush1.bf16.msra.mxu0 %v2245_v28  ;;  %1720 = vmatpush3.bf16.msra.mxu1 %v2263_v31 }
  0x21   :  { %360 = vmatprep.subr.bf16.mxu0 %v2094_v0  ;;  %1725 = vmatprep.subr.bf16.mxu1 %v2052_v1 }
  0x22   :  { %1269 = vperm.xlu0 %1889, %v1266_v35   ;;  %1118 = vperm.xlu1 %1890, %v1113_v42  }
  0x23   :  { %234 = vmatmul.mubr.bf16.vlgmr.msra.gmra.mrb[0].mxu0 %v2055_v32  ;;  %1722 = vmatmul.mubr.bf16.vlgmr.msra.gmra.mrb[0].mxu1 %v2055_v32 }
  0x24   :  { %361 = vmatpush1.bf16.msra.mxu0 %v2101_v3  ;;  %392 = vmatprep.mubr.bf16.mxu0 %v2053_v2 }
  0x25   :  { %362 = vmatprep.subr.bf16.mxu0 %v2110_v4  ;;  %1726 = vmatpush3.bf16.msra.mxu1 %v2128_v7 }
  0x26   :  { %1727 = vmatprep.subr.bf16.mxu1 %v2052_v1  ;;  %1741 = vmatprep.mubr.msk.bf16.mxu1 %vm2054_vm0, %v2052_v1 }
  0x27   :  { %1423 = vperm.xlu0 %1889, %v1420_v36   ;;  %1272 = vperm.xlu1 %1890, %v1267_v43   ;;  %v326_v43 = vunpack.c.h.bf16 %v69_v33 }
  0x28   :  { %363 = vmatpush1.bf16.msra.mxu0 %v2117_v5 }
  0x29   :  { %364 = vmatprep.subr.bf16.mxu0 %v2123_v6  ;;  %1728 = vmatpush3.bf16.msra.mxu1 %v2146_v10 }
  0x2a   :  { %1729 = vmatprep.subr.bf16.mxu1 %v2052_v1 }
  0x2b   :  { %1426 = vperm.xlu1 %1890, %v1421_v44  }
  0x2c   :  { %365 = vmatpush1.bf16.msra.mxu0 %v2134_v8 }
  0x2d   :  { %366 = vmatprep.subr.bf16.mxu0 %v2139_v9  ;;  %1730 = vmatpush3.bf16.msra.mxu1 %v2165_v13 }
  0x2e   :  { %1731 = vmatprep.subr.bf16.mxu1 %v2052_v1 }
  0x30   :  { %367 = vmatpush1.bf16.msra.mxu0 %v2152_v11 }
  0x31   :  { %368 = vmatprep.subr.bf16.mxu0 %v2158_v12  ;;  %1732 = vmatpush3.bf16.msra.mxu1 %v2184_v16 }
  0x32   :  { %1733 = vmatprep.subr.bf16.mxu1 %v2052_v1 }
  0x34   :  { %369 = vmatpush1.bf16.msra.mxu0 %v2171_v14 }
  0x35   :  { %370 = vmatprep.subr.bf16.mxu0 %v2177_v15  ;;  %1734 = vmatpush3.bf16.msra.mxu1 %v2214_v21 }
  0x36   :  { %1735 = vmatprep.subr.bf16.mxu1 %v2052_v1 }
  0x38   :  { %371 = vmatpush1.bf16.msra.mxu0 %v2196_v18 }
  0x39   :  { %372 = vmatprep.subr.bf16.mxu0 %v2208_v20  ;;  %1736 = vmatpush3.bf16.msra.mxu1 %v2237_v26 }
  0x3a   :  { %1737 = vmatprep.subr.bf16.mxu1 %v2052_v1 }
  0x3c   :  { %373 = vmatpush1.bf16.msra.mxu0 %v2224_v24 }
  0x3d   :  { %374 = vmatprep.subr.bf16.mxu0 %v2231_v25  ;;  %1738 = vmatpush3.bf16.msra.mxu1 %v2253_v29 }
  0x3e   :  { %1739 = vmatprep.subr.bf16.mxu1 %v2052_v1 }
  0x40   :  { %375 = vmatpush1.bf16.msra.mxu0 %v2245_v28 }
  0x41   :  { %514 = vmatprep.subr.bf16.mxu0 %v2094_v0  ;;  %1740 = vmatpush3.bf16.msra.mxu1 %v2263_v31 }
  0x42   :  { %1745 = vmatprep.subr.bf16.mxu1 %v2052_v1 }
  0xf6   :  { %v235_v51 = vpop.f32.mrb[0].mxu0  ;;  %v278_v62 = vpop.f32.mrb[0].mxu1 }
  0xf7   :  { %v287_v53 = vadd.f32 %v285_v48, %v235_v51  ;;  %v237_v54 = vpop.f32.mrb[1].mxu0  ;;  %v1723_v17 = vpop.f32.mrb[1].mxu1  ;;  %v321_v35 = vadd.f32 %v2336_v30, %v278_v62 }
  0xf8   :  { %v239_v55 = vpop.f32.mrb[2].mxu0  ;;  %v305_v60 = vadd.f32 %v303_v52, %v237_v54  ;;  %v281_v19 = vpop.f32.mrb[2].mxu1 }
  0xf9   :  { %v289_v57 = vmul.f32 0.5, %v287_v53  ;;  %v288_v58 = vadd.f32 %v286_v50, %v239_v55  ;;  %v241_v59 = vpop.f32.mrb[3].mxu0  ;;  %v1724_v23 = vpop.f32.mrb[3].mxu1  ;;  %v322_v42 = vadd.f32 %v2336_v30, %v281_v19 }
  0xfa   :  { %v306_v63 = vadd.f32 %v304_v56, %v241_v59  ;;  %v307_v22 = vmul.f32 0.5, %v305_v60  ;;  %v2343_v53 = vpop.permute.xlu0 %345  ;;  %v1583_v23 = vld [vmem:[%s2880_s0 + $0x24] sm:$0xff] }
  0xfb   :  { %1931 = vtanh.f32 %v289_v57  ;;  %v290_v61 = vmul.f32 0.5, %v288_v58  ;;  %vm350_vm2 = vcmp.eq.s32.totalorder %v2343_v53, 1  ;;  %v500_v53 = vpop.permute.xlu1 %499 }
  0xfc   :  { %v308_v27 = vmul.f32 0.5, %v306_v63  ;;  %vm504_vm5 = vcmp.eq.s32.totalorder %v500_v53, 1  ;;  %v1586_v53 = vld [vmem:[%s2880_s0 + $0x38] ss:$12 sps:$4 sm:$0xff]  }
  0xfd   :  { %1933 = vtanh.f32 %v290_v61 }
  0xfe   :  { %1935 = vtanh.f32 %v307_v22  ;;  %v2347_v63 = vpop.permute.xlu0 %348  ;;  %v1581_v22 = vld [vmem:[%s2880_s0 + $0x18] sm:$0xff] }
  0xff   :  { %1937 = vtanh.f32 %v308_v27  ;;  %vm351_vm3 = vcmp.eq.s32.totalorder %v2347_v63, 1  ;;  %v458_v27 = vrot.slane %v1581_v22, 4  ;;  %v444_v33 = vunpack.c.l.bf16 %v1581_v22 }
 0x100   :  { %vm1618_vm4 = vmpackc.low %vm351_vm3, %vm350_vm2 }
 0x105   :  { %v1932_v32 = vpop.eup %1931 }
 0x106   :  { %v293_v34 = vmul.f32 0.5, %v1932_v32  ;;  %v459_v32 = vrot.slane %v1583_v23, 4 }
 0x107   :  { %v1934_v36 = vpop.eup %1933 }
 0x108   :  { %v294_v37 = vmul.f32 0.5, %v1934_v36  ;;  %v295_v38 = vadd.f32 0.5, %v293_v34  ;;  %v1936_v44 = vpop.eup %1935  ;;  %v462_v34 = vunpack.c.l.bf16 %v458_v27 }
 0x109   :  { %v1938_v47 = vpop.eup %1937  ;;  %v311_v49 = vmul.f32 0.5, %v1936_v44 }
 0x10a   :  { %v323_v40 = vmul.f32 %v321_v35, %v295_v38  ;;  %v296_v41 = vadd.f32 0.5, %v294_v37  ;;  %v312_v50 = vmul.f32 0.5, %v1938_v47  ;;  %v445_v35 = vunpack.c.l.bf16 %v1583_v23 }
 0x10b   :  { %v313_v51 = vadd.f32 0.5, %v311_v49  ;;  %v463_v38 = vunpack.c.l.bf16 %v459_v32 }
 0x10c   :  { %v327_v45 = vadd.f32 %v325_v39, %v323_v40  ;;  %v324_v46 = vmul.f32 %v322_v42, %v296_v41  ;;  %v314_v52 = vadd.f32 0.5, %v312_v50 }
 0x10d   :  { %v331_v54 = vsub.f32 1.0, %v313_v51  ;;  %v335_v56 = vmul.f32 0.0, %v313_v51 }
 0x10e   :  { %1939 = vtanh.f32 %v327_v45  ;;  %v328_v48 = vadd.f32 %v326_v43, %v324_v46  ;;  %v332_v57 = vsub.f32 1.0, %v314_v52  ;;  %v336_v60 = vmul.f32 0.0, %v314_v52 }
 0x110   :  { %1941 = vtanh.f32 %v328_v48 }
 0x118   :  { %v1940_v55 = vpop.eup %1939 }
 0x119   :  { %v333_v58 = vmul.f32 %v1940_v55, %v331_v54  ;;  %v1582_v55 = vld [vmem:[%s2880_s0 + $0x20] ss:$12 sps:$4 sm:$0xff]  }
 0x11a   :  { %v1942_v59 = vpop.eup %1941  ;;  %v478_v22 = vunpack.c.l.bf16 %v1582_v55 }
 0x11b   :  { %v334_v61 = vmul.f32 %v1942_v59, %v332_v57  ;;  %v2345_v62 = vadd.f32 %v335_v56, %v333_v58 }
 0x11d   :  { %v2351_v17 = vadd.f32 %v336_v60, %v334_v61 }
 0x11f   :  { %v1619_v19 = vpack.c.bf16 %v2351_v17, %v2345_v62 }
 0x121   :  { %1620 = vmatmul.mubr.msk.bf16.vlgmr.msra.gmra.mrb[4].mxu0 %vm1618_vm4, %v1619_v19  ;;  %1742 = vmatmul.mubr.msk.bf16.vlgmr.msra.gmra.mrb[4].mxu1 %vm1618_vm4, %v1619_v19 }
 0x122   :  { %515 = vmatpush1.bf16.msra.mxu0 %v2101_v3  ;;  %1746 = vmatpush3.bf16.msra.mxu1 %v2128_v7 }
 0x123   :  { %516 = vmatprep.subr.bf16.mxu0 %v2110_v4  ;;  %1747 = vmatprep.subr.bf16.mxu1 %v2052_v1 }
 0x124   :  { %546 = vmatprep.mubr.bf16.mxu0 %v2053_v2  ;;  %1761 = vmatprep.mubr.msk.bf16.mxu1 %vm2054_vm0, %v2052_v1 }
 0x126   :  { %517 = vmatpush1.bf16.msra.mxu0 %v2117_v5  ;;  %1748 = vmatpush3.bf16.msra.mxu1 %v2146_v10 }
 0x127   :  { %518 = vmatprep.subr.bf16.mxu0 %v2123_v6  ;;  %1749 = vmatprep.subr.bf16.mxu1 %v2052_v1 }
 0x12a   :  { %519 = vmatpush1.bf16.msra.mxu0 %v2134_v8  ;;  %1750 = vmatpush3.bf16.msra.mxu1 %v2165_v13 }
 0x12b   :  { %520 = vmatprep.subr.bf16.mxu0 %v2139_v9  ;;  %1751 = vmatprep.subr.bf16.mxu1 %v2052_v1 }
 0x12e   :  { %521 = vmatpush1.bf16.msra.mxu0 %v2152_v11  ;;  %1752 = vmatpush3.bf16.msra.mxu1 %v2184_v16 }
 0x12f   :  { %522 = vmatprep.subr.bf16.mxu0 %v2158_v12  ;;  %1753 = vmatprep.subr.bf16.mxu1 %v2052_v1 }
 0x132   :  { %523 = vmatpush1.bf16.msra.mxu0 %v2171_v14  ;;  %1754 = vmatpush3.bf16.msra.mxu1 %v2214_v21 }
 0x133   :  { %524 = vmatprep.subr.bf16.mxu0 %v2177_v15  ;;  %1755 = vmatprep.subr.bf16.mxu1 %v2052_v1 }
 0x136   :  { %525 = vmatpush1.bf16.msra.mxu0 %v2196_v18  ;;  %1756 = vmatpush3.bf16.msra.mxu1 %v2237_v26 }
 0x137   :  { %526 = vmatprep.subr.bf16.mxu0 %v2208_v20  ;;  %1757 = vmatprep.subr.bf16.mxu1 %v2052_v1 }
 0x13a   :  { %527 = vmatpush1.bf16.msra.mxu0 %v2224_v24  ;;  %1758 = vmatpush3.bf16.msra.mxu1 %v2253_v29 }
 0x13b   :  { %528 = vmatprep.subr.bf16.mxu0 %v2231_v25  ;;  %1759 = vmatprep.subr.bf16.mxu1 %v2052_v1 }
 0x13e   :  { %529 = vmatpush1.bf16.msra.mxu0 %v2245_v28  ;;  %1760 = vmatpush3.bf16.msra.mxu1 %v2263_v31 }
 0x13f   :  { %668 = vmatprep.subr.bf16.mxu0 %v2094_v0  ;;  %1765 = vmatprep.subr.bf16.mxu1 %v2052_v1 }
 0x1f4   :  { %v394_v36 = vpop.f32.mrb[4].mxu0  ;;  %v437_v37 = vpop.f32.mrb[4].mxu1 }
 0x1f5   :  { %v446_v39 = vadd.f32 %v444_v33, %v394_v36  ;;  %v396_v40 = vpop.f32.mrb[5].mxu0  ;;  %v1743_v41 = vpop.f32.mrb[5].mxu1  ;;  %v474_v19 = vadd.f32 %v2336_v30, %v437_v37  ;;  %v352_v33 = vsel %vm350_vm2, %v2345_v62, 0.0  ;;  %v353_v37 = vsel %vm351_vm3, %v2351_v17, 0.0 }
 0x1f6   :  { %v464_v42 = vadd.f32 %v462_v34, %v396_v40  ;;  %v398_v43 = vpop.f32.mrb[6].mxu0  ;;  %v440_v44 = vpop.f32.mrb[6].mxu1 }
 0x1f7   :  { %v448_v45 = vmul.f32 0.5, %v446_v39  ;;  %v447_v46 = vadd.f32 %v445_v35, %v398_v43  ;;  %v400_v47 = vpop.f32.mrb[7].mxu0  ;;  %v1744_v48 = vpop.f32.mrb[7].mxu1  ;;  %v475_v36 = vadd.f32 %v2336_v30, %v440_v44 }
 0x1f8   :  { %v466_v49 = vmul.f32 0.5, %v464_v42  ;;  %v465_v50 = vadd.f32 %v463_v38, %v400_v47  ;;  %v479_v38 = vunpack.c.h.bf16 %v1582_v55  ;;  %v1585_v55 = vld [vmem:[%s2880_s0 + $0x30] sm:$0xff] }
 0x1f9   :  { %1943 = vtanh.f32 %v448_v45  ;;  %v449_v51 = vmul.f32 0.5, %v447_v46 }
 0x1fa   :  { %1945 = vtanh.f32 %v466_v49  ;;  %v467_v52 = vmul.f32 0.5, %v465_v50 }
 0x1fb   :  { %1947 = vtanh.f32 %v449_v51 }
 0x1fc   :  { %1949 = vtanh.f32 %v467_v52  ;;  %v503_v52 = vpop.permute.xlu1 %502 }
 0x1fd   :  { %vm505_vm6 = vcmp.eq.s32.totalorder %v503_v52, 1 }
 0x203   :  { %v1944_v54 = vpop.eup %1943 }
 0x204   :  { %v1946_v56 = vpop.eup %1945  ;;  %v452_v57 = vmul.f32 0.5, %v1944_v54 }
 0x205   :  { %v1948_v58 = vpop.eup %1947  ;;  %v470_v59 = vmul.f32 0.5, %v1946_v56  ;;  %v1587_v56 = vld [vmem:[%s2880_s0 + $0x3c] sm:$0xff] }
 0x206   :  { %v1950_v60 = vpop.eup %1949  ;;  %v454_v61 = vadd.f32 0.5, %v452_v57  ;;  %v453_v23 = vmul.f32 0.5, %v1948_v58  ;;  %v612_v57 = vrot.slane %v1585_v55, 4  ;;  %v598_v58 = vunpack.c.l.bf16 %v1585_v55 }
 0x207   :  { %v472_v27 = vadd.f32 0.5, %v470_v59  ;;  %v471_v32 = vmul.f32 0.5, %v1950_v60  ;;  %v613_v59 = vrot.slane %v1587_v56, 4  ;;  %v599_v60 = vunpack.c.l.bf16 %v1587_v56 }
 0x208   :  { %v476_v34 = vmul.f32 %v474_v19, %v454_v61  ;;  %v455_v35 = vadd.f32 0.5, %v453_v23  ;;  %v633_v55 = vunpack.c.h.bf16 %v1586_v53 }
 0x209   :  { %v473_v39 = vadd.f32 0.5, %v471_v32  ;;  %v488_v40 = vmul.f32 %v472_v27, %v352_v33  ;;  %v484_v46 = vsub.f32 1.0, %v472_v27 }
 0x20a   :  { %v480_v41 = vadd.f32 %v478_v22, %v476_v34  ;;  %v477_v42 = vmul.f32 %v475_v36, %v455_v35  ;;  %v616_v22 = vunpack.c.l.bf16 %v612_v57  ;;  %v617_v35 = vunpack.c.l.bf16 %v613_v59 }
 0x20b   :  { %v489_v43 = vmul.f32 %v473_v39, %v353_v37  ;;  %v485_v48 = vsub.f32 1.0, %v473_v39 }
 0x20c   :  { %1951 = vtanh.f32 %v480_v41  ;;  %v481_v45 = vadd.f32 %v479_v38, %v477_v42 }
 0x20e   :  { %1953 = vtanh.f32 %v481_v45 }
 0x216   :  { %v1952_v62 = vpop.eup %1951 }
 0x217   :  { %v486_v47 = vmul.f32 %v1952_v62, %v484_v46 }
 0x218   :  { %v1954_v49 = vpop.eup %1953 }
 0x219   :  { %v487_v44 = vmul.f32 %v1954_v49, %v485_v48  ;;  %v490_v50 = vadd.f32 %v488_v40, %v486_v47 }
 0x21b   :  { %v2411_v51 = vsel %vm504_vm5, %v490_v50, %v352_v33  ;;  %v491_v54 = vadd.f32 %v489_v43, %v487_v44  ;;  %v632_v44 = vunpack.c.l.bf16 %v1586_v53 }
 0x21d   :  { %v2413_v63 = vsel %vm505_vm6, %v491_v54, %v353_v37 }
 0x21e   :  { %v513_v17 = vpack.c.bf16 %v2413_v63, %v2411_v51 }
 0x220   :  { %547 = vmatmul.mubr.bf16.vlgmr.msra.gmra.mrb[8].mxu0 %v513_v17  ;;  %1762 = vmatmul.mubr.bf16.vlgmr.msra.gmra.mrb[8].mxu1 %v513_v17 }
 0x221   :  { %669 = vmatpush1.bf16.msra.mxu0 %v2101_v3  ;;  %1766 = vmatpush3.bf16.msra.mxu1 %v2128_v7 }
 0x222   :  { %670 = vmatprep.subr.bf16.mxu0 %v2110_v4  ;;  %1767 = vmatprep.subr.bf16.mxu1 %v2052_v1 }
 0x223   :  { %700 = vmatprep.mubr.bf16.mxu0 %v2053_v2  ;;  %1781 = vmatprep.mubr.msk.bf16.mxu1 %vm2054_vm0, %v2052_v1 }
 0x225   :  { %671 = vmatpush1.bf16.msra.mxu0 %v2117_v5  ;;  %1768 = vmatpush3.bf16.msra.mxu1 %v2146_v10 }
 0x226   :  { %672 = vmatprep.subr.bf16.mxu0 %v2123_v6  ;;  %1769 = vmatprep.subr.bf16.mxu1 %v2052_v1 }
 0x229   :  { %673 = vmatpush1.bf16.msra.mxu0 %v2134_v8  ;;  %1770 = vmatpush3.bf16.msra.mxu1 %v2165_v13 }
 0x22a   :  { %674 = vmatprep.subr.bf16.mxu0 %v2139_v9  ;;  %1771 = vmatprep.subr.bf16.mxu1 %v2052_v1 }
 0x22d   :  { %675 = vmatpush1.bf16.msra.mxu0 %v2152_v11  ;;  %1772 = vmatpush3.bf16.msra.mxu1 %v2184_v16 }
 0x22e   :  { %676 = vmatprep.subr.bf16.mxu0 %v2158_v12  ;;  %1773 = vmatprep.subr.bf16.mxu1 %v2052_v1 }
 0x231   :  { %677 = vmatpush1.bf16.msra.mxu0 %v2171_v14  ;;  %1774 = vmatpush3.bf16.msra.mxu1 %v2214_v21 }
 0x232   :  { %678 = vmatprep.subr.bf16.mxu0 %v2177_v15  ;;  %1775 = vmatprep.subr.bf16.mxu1 %v2052_v1 }
 0x235   :  { %679 = vmatpush1.bf16.msra.mxu0 %v2196_v18  ;;  %1776 = vmatpush3.bf16.msra.mxu1 %v2237_v26 }
 0x236   :  { %680 = vmatprep.subr.bf16.mxu0 %v2208_v20  ;;  %1777 = vmatprep.subr.bf16.mxu1 %v2052_v1 }
 0x239   :  { %681 = vmatpush1.bf16.msra.mxu0 %v2224_v24  ;;  %1778 = vmatpush3.bf16.msra.mxu1 %v2253_v29 }
 0x23a   :  { %682 = vmatprep.subr.bf16.mxu0 %v2231_v25  ;;  %1779 = vmatprep.subr.bf16.mxu1 %v2052_v1 }
 0x23d   :  { %683 = vmatpush1.bf16.msra.mxu0 %v2245_v28  ;;  %1780 = vmatpush3.bf16.msra.mxu1 %v2263_v31 }
 0x23e   :  { %822 = vmatprep.subr.bf16.mxu0 %v2094_v0  ;;  %1785 = vmatprep.subr.bf16.mxu1 %v2052_v1 }
 0x2f3   :  { %v548_v61 = vpop.f32.mrb[8].mxu0  ;;  %v591_v19 = vpop.f32.mrb[8].mxu1 }
 0x2f4   :  { %v600_v23 = vadd.f32 %v598_v58, %v548_v61  ;;  %v550_v27 = vpop.f32.mrb[9].mxu0  ;;  %v1763_v32 = vpop.f32.mrb[9].mxu1  ;;  %v628_v49 = vadd.f32 %v2336_v30, %v591_v19 }
 0x2f5   :  { %v552_v33 = vpop.f32.mrb[10].mxu0  ;;  %v594_v34 = vpop.f32.mrb[10].mxu1  ;;  %v618_v41 = vadd.f32 %v616_v22, %v550_v27 }
 0x2f6   :  { %v602_v36 = vmul.f32 0.5, %v600_v23  ;;  %v601_v38 = vadd.f32 %v599_v60, %v552_v33  ;;  %v554_v39 = vpop.f32.mrb[11].mxu0  ;;  %v1764_v40 = vpop.f32.mrb[11].mxu1  ;;  %v629_v17 = vadd.f32 %v2336_v30, %v594_v34 }
 0x2f7   :  { %v619_v37 = vadd.f32 %v617_v35, %v554_v39  ;;  %v620_v43 = vmul.f32 0.5, %v618_v41  ;;  %v654_v41 = vpop.permute.xlu0 %653 }
 0x2f8   :  { %1955 = vtanh.f32 %v602_v36  ;;  %v603_v42 = vmul.f32 0.5, %v601_v38  ;;  %vm658_vm7 = vcmp.eq.s32.totalorder %v654_v41, 1 }
 0x2f9   :  { %v621_v45 = vmul.f32 0.5, %v619_v37 }
 0x2fa   :  { %1957 = vtanh.f32 %v603_v42  ;;  %v657_v42 = vpop.permute.xlu1 %656 }
 0x2fb   :  { %1959 = vtanh.f32 %v620_v43  ;;  %vm659_vm8 = vcmp.eq.s32.totalorder %v657_v42, 1 }
 0x2fc   :  { %1961 = vtanh.f32 %v621_v45 }
 0x302   :  { %v1956_v46 = vpop.eup %1955 }
 0x303   :  { %v606_v62 = vmul.f32 0.5, %v1956_v46 }
 0x304   :  { %v1958_v47 = vpop.eup %1957 }
 0x305   :  { %v608_v48 = vadd.f32 0.5, %v606_v62  ;;  %v607_v50 = vmul.f32 0.5, %v1958_v47  ;;  %v1960_v56 = vpop.eup %1959 }
 0x306   :  { %v1962_v59 = vpop.eup %1961  ;;  %v624_v61 = vmul.f32 0.5, %v1960_v56 }
 0x307   :  { %v630_v52 = vmul.f32 %v628_v49, %v608_v48  ;;  %v609_v54 = vadd.f32 0.5, %v607_v50  ;;  %v625_v22 = vmul.f32 0.5, %v1962_v59  ;;  %v1590_v50 = vld [vmem:[%s2880_s0 + $0x50] ss:$12 sps:$4 sm:$0xff]  }
 0x308   :  { %v626_v23 = vadd.f32 0.5, %v624_v61  ;;  %v786_v56 = vunpack.c.l.bf16 %v1590_v50  ;;  %v787_v61 = vunpack.c.h.bf16 %v1590_v50 }
 0x309   :  { %v634_v57 = vadd.f32 %v632_v44, %v630_v52  ;;  %v631_v58 = vmul.f32 %v629_v17, %v609_v54  ;;  %v627_v27 = vadd.f32 0.5, %v625_v22 }
 0x30a   :  { %v638_v32 = vsub.f32 1.0, %v626_v23  ;;  %v642_v35 = vmul.f32 %v626_v23, %v2411_v51 }
 0x30b   :  { %1963 = vtanh.f32 %v634_v57  ;;  %v635_v60 = vadd.f32 %v633_v55, %v631_v58  ;;  %v639_v36 = vsub.f32 1.0, %v627_v27  ;;  %v643_v40 = vmul.f32 %v627_v27, %v2413_v63 }
 0x30d   :  { %1965 = vtanh.f32 %v635_v60 }
 0x315   :  { %v1964_v19 = vpop.eup %1963 }
 0x316   :  { %v640_v33 = vmul.f32 %v1964_v19, %v638_v32 }
 0x317   :  { %v1966_v38 = vpop.eup %1965 }
 0x318   :  { %v644_v34 = vadd.f32 %v642_v35, %v640_v33  ;;  %v641_v39 = vmul.f32 %v1966_v38, %v639_v36 }
 0x31a   :  { %v645_v37 = vadd.f32 %v643_v40, %v641_v39  ;;  %v2466_v43 = vsel %vm658_vm7, %v644_v34, %v2411_v51 }
 0x31c   :  { %v2469_v45 = vsel %vm659_vm8, %v645_v37, %v2413_v63 }
 0x31d   :  { %v667_v46 = vpack.c.bf16 %v2469_v45, %v2466_v43 }
 0x31f   :  { %701 = vmatmul.mubr.bf16.vlgmr.msra.gmra.mrb[12].mxu0 %v667_v46  ;;  %1782 = vmatmul.mubr.bf16.vlgmr.msra.gmra.mrb[12].mxu1 %v667_v46 }
 0x320   :  { %823 = vmatpush1.bf16.msra.mxu0 %v2101_v3  ;;  %1786 = vmatpush3.bf16.msra.mxu1 %v2128_v7  ;;  %v1589_v3 = vld [vmem:[%s2880_s0 + $0x48] sm:$0xff] }
 0x321   :  { %824 = vmatprep.subr.bf16.mxu0 %v2110_v4  ;;  %1787 = vmatprep.subr.bf16.mxu1 %v2052_v1  ;;  %v1591_v4 = vld [vmem:[%s2880_s0 + $0x54] sm:$0xff] }
 0x322   :  { %854 = vmatprep.mubr.bf16.mxu0 %v2053_v2  ;;  %1801 = vmatprep.mubr.msk.bf16.mxu1 %vm2054_vm0, %v2052_v1  ;;  %v767_v7 = vrot.slane %v1591_v4, 4 }
 0x324   :  { %825 = vmatpush1.bf16.msra.mxu0 %v2117_v5  ;;  %1788 = vmatpush3.bf16.msra.mxu1 %v2146_v10  ;;  %v766_v5 = vrot.slane %v1589_v3, 4 }
 0x325   :  { %826 = vmatprep.subr.bf16.mxu0 %v2123_v6  ;;  %1789 = vmatprep.subr.bf16.mxu1 %v2052_v1  ;;  %v752_v6 = vunpack.c.l.bf16 %v1589_v3 }
 0x328   :  { %827 = vmatpush1.bf16.msra.mxu0 %v2134_v8  ;;  %1790 = vmatpush3.bf16.msra.mxu1 %v2165_v13  ;;  %v753_v8 = vunpack.c.l.bf16 %v1591_v4 }
 0x329   :  { %828 = vmatprep.subr.bf16.mxu0 %v2139_v9  ;;  %1791 = vmatprep.subr.bf16.mxu1 %v2052_v1 }
 0x32c   :  { %829 = vmatpush1.bf16.msra.mxu0 %v2152_v11  ;;  %1792 = vmatpush3.bf16.msra.mxu1 %v2184_v16  ;;  %v770_v11 = vunpack.c.l.bf16 %v766_v5  ;;  %v771_v16 = vunpack.c.l.bf16 %v767_v7  ;;  %v808_v5 = vpop.permute.xlu0 %807 }
 0x32d   :  { %830 = vmatprep.subr.bf16.mxu0 %v2158_v12  ;;  %1793 = vmatprep.subr.bf16.mxu1 %v2052_v1  ;;  %vm812_vm9 = vcmp.eq.s32.totalorder %v808_v5, 1 }
 0x330   :  { %831 = vmatpush1.bf16.msra.mxu0 %v2171_v14  ;;  %1794 = vmatpush3.bf16.msra.mxu1 %v2214_v21 }
 0x331   :  { %832 = vmatprep.subr.bf16.mxu0 %v2177_v15  ;;  %1795 = vmatprep.subr.bf16.mxu1 %v2052_v1 }
 0x334   :  { %833 = vmatpush1.bf16.msra.mxu0 %v2196_v18  ;;  %1796 = vmatpush3.bf16.msra.mxu1 %v2237_v26 }
 0x335   :  { %834 = vmatprep.subr.bf16.mxu0 %v2208_v20  ;;  %1797 = vmatprep.subr.bf16.mxu1 %v2052_v1 }
 0x338   :  { %835 = vmatpush1.bf16.msra.mxu0 %v2224_v24  ;;  %1798 = vmatpush3.bf16.msra.mxu1 %v2253_v29 }
 0x339   :  { %836 = vmatprep.subr.bf16.mxu0 %v2231_v25  ;;  %1799 = vmatprep.subr.bf16.mxu1 %v2052_v1 }
 0x33c   :  { %837 = vmatpush1.bf16.msra.mxu0 %v2245_v28  ;;  %1800 = vmatpush3.bf16.msra.mxu1 %v2263_v31 }
 0x33d   :  { %976 = vmatprep.subr.bf16.mxu0 %v2094_v0  ;;  %1805 = vmatprep.subr.bf16.mxu1 %v2052_v1 }
 0x3f2   :  { %v702_v9 = vpop.f32.mrb[12].mxu0  ;;  %v745_v10 = vpop.f32.mrb[12].mxu1 }
 0x3f3   :  { %v754_v12 = vadd.f32 %v752_v6, %v702_v9  ;;  %v704_v13 = vpop.f32.mrb[13].mxu0  ;;  %v1783_v0 = vpop.f32.mrb[13].mxu1  ;;  %v782_v55 = vadd.f32 %v2336_v30, %v745_v10 }
 0x3f4   :  { %v706_v14 = vpop.f32.mrb[14].mxu0  ;;  %v748_v15 = vpop.f32.mrb[14].mxu1  ;;  %v772_v53 = vadd.f32 %v770_v11, %v704_v13  ;;  %v2532_v11 = vld [vmem:[%s2878_s1] ss:$12 sps:$4 sm:$0xff]  }
 0x3f5   :  { %v756_v18 = vmul.f32 0.5, %v754_v12  ;;  %v755_v20 = vadd.f32 %v753_v8, %v706_v14  ;;  %v708_v51 = vpop.f32.mrb[15].mxu0  ;;  %v1784_v63 = vpop.f32.mrb[15].mxu1  ;;  %v783_v60 = vadd.f32 %v2336_v30, %v748_v15  ;;  %v2554_v12 = vld [vmem:[%s2878_s1 + $0x18] ss:$12 sps:$4 sm:$0xff]  }
 0x3f6   :  { %v773_v47 = vadd.f32 %v771_v16, %v708_v51  ;;  %v774_v48 = vmul.f32 0.5, %v772_v53  ;;  %v811_v6 = vpop.permute.xlu1 %810  ;;  %v2560_v13 = vld [vmem:[%s2878_s1 + $0x20] ss:$12 sps:$4 sm:$0xff]   ;;  %v2573_v14 = vld [vmem:[%s2878_s1 + $0x30] ss:$12 sps:$4 sm:$0xff]  }
 0x3f7   :  { %1967 = vtanh.f32 %v756_v18  ;;  %v757_v62 = vmul.f32 0.5, %v755_v20  ;;  %vm813_vm10 = vcmp.eq.s32.totalorder %v811_v6, 1  ;;  %v2566_v0 = vld [vmem:[%s2878_s1 + $0x34] ss:$12 sps:$4 sm:$0xff]   ;;  %v2579_v15 = vld [vmem:[%s2878_s1 + $0x38] ss:$12 sps:$4 sm:$0xff]  }
 0x3f8   :  { %v775_v49 = vmul.f32 0.5, %v773_v47  ;;  %v2585_v16 = vld [vmem:[%s2878_s1 + $0x4c] ss:$12 sps:$4 sm:$0xff]   ;;  %v2592_v18 = vld [vmem:[%s2878_s1 + $0x48] ss:$12 sps:$4 sm:$0xff]  }
 0x3f9   :  { %1969 = vtanh.f32 %v757_v62  ;;  %v2598_v20 = vld [vmem:[%s2878_s1 + $0x50] ss:$12 sps:$4 sm:$0xff]   ;;  %v2611_v63 = vld [vmem:[%s2878_s1 + $0x60] ss:$12 sps:$4 sm:$0xff]   ;;  %v2625_v62 = vld [vmem:[%s2878_s1 + $0x78] ss:$12 sps:$4 sm:$0xff]  }
 0x3fa   :  { %1971 = vtanh.f32 %v774_v48  ;;  %v2604_v51 = vld [vmem:[%s2878_s1 + $0x64] ss:$12 sps:$4 sm:$0xff]   ;;  %v2618_v53 = vld [vmem:[%s2878_s1 + $0x7c] ss:$12 sps:$4 sm:$0xff]  }
 0x3fb   :  { %1973 = vtanh.f32 %v775_v49 }
 0x401   :  { %v1968_v44 = vpop.eup %1967 }
 0x402   :  { %v760_v52 = vmul.f32 0.5, %v1968_v44 }
 0x403   :  { %v1970_v54 = vpop.eup %1969 }
 0x404   :  { %v762_v17 = vadd.f32 0.5, %v760_v52  ;;  %v761_v57 = vmul.f32 0.5, %v1970_v54  ;;  %v1972_v22 = vpop.eup %1971 }
 0x405   :  { %v1974_v32 = vpop.eup %1973  ;;  %v778_v33 = vmul.f32 0.5, %v1972_v22 }
 0x406   :  { %v784_v58 = vmul.f32 %v782_v55, %v762_v17  ;;  %v763_v59 = vadd.f32 0.5, %v761_v57  ;;  %v779_v35 = vmul.f32 0.5, %v1974_v32 }
 0x407   :  { %v780_v36 = vadd.f32 0.5, %v778_v33  ;;  %v1594_v33 = vld [vmem:[%s2880_s0 + $0x68] ss:$12 sps:$4 sm:$0xff]  }
 0x408   :  { %v788_v23 = vadd.f32 %v786_v56, %v784_v58  ;;  %v785_v27 = vmul.f32 %v783_v60, %v763_v59  ;;  %v781_v38 = vadd.f32 0.5, %v779_v35 }
 0x409   :  { %v792_v34 = vsub.f32 1.0, %v780_v36  ;;  %v796_v41 = vmul.f32 %v780_v36, %v2466_v43 }
 0x40a   :  { %1975 = vtanh.f32 %v788_v23  ;;  %v789_v19 = vadd.f32 %v787_v61, %v785_v27  ;;  %v793_v42 = vsub.f32 1.0, %v781_v38  ;;  %v797_v4 = vmul.f32 %v781_v38, %v2469_v45 }
 0x40c   :  { %1977 = vtanh.f32 %v789_v19 }
 0x414   :  { %v1976_v39 = vpop.eup %1975 }
 0x415   :  { %v794_v40 = vmul.f32 %v1976_v39, %v792_v34  ;;  %v940_v39 = vunpack.c.l.bf16 %v1594_v33 }
 0x416   :  { %v1978_v37 = vpop.eup %1977 }
 0x417   :  { %v798_v46 = vadd.f32 %v796_v41, %v794_v40  ;;  %v795_v3 = vmul.f32 %v1978_v37, %v793_v42 }
 0x419   :  { %v799_v7 = vadd.f32 %v797_v4, %v795_v3  ;;  %v2522_v8 = vsel %vm812_vm9, %v798_v46, %v2466_v43  ;;  %v2538_v43 = vld [vmem:[%s2878_s1 + $0x8] ss:$12 sps:$4 sm:$0xff]   ;;  %v941_v46 = vunpack.c.h.bf16 %v1594_v33 }
 0x41b   :  { %v2525_v9 = vsel %vm813_vm10, %v799_v7, %v2469_v45  ;;  %v2544_v45 = vld [vmem:[%s2878_s1 + $0x1c] ss:$12 sps:$4 sm:$0xff]  }
 0x41c   :  { %v821_v10 = vpack.c.bf16 %v2525_v9, %v2522_v8 }
 0x41e   :  { %855 = vmatmul.mubr.bf16.vlgmr.msra.gmra.mrb[16].mxu0 %v821_v10  ;;  %1802 = vmatmul.mubr.bf16.vlgmr.msra.gmra.mrb[16].mxu1 %v821_v10 }
 0x41f   :  { %977 = vmatpush1.bf16.msra.mxu0 %v2532_v11  ;;  %1806 = vmatpush3.bf16.msra.mxu1 %v2538_v43 }
 0x420   :  { %978 = vmatprep.subr.bf16.mxu0 %v2544_v45  ;;  %1807 = vmatprep.subr.bf16.mxu1 %v2052_v1 }
 0x421   :  { %1008 = vmatprep.mubr.bf16.mxu0 %v2053_v2  ;;  %1821 = vmatprep.mubr.msk.bf16.mxu1 %vm2054_vm0, %v2052_v1 }
 0x423   :  { %979 = vmatpush1.bf16.msra.mxu0 %v2554_v12  ;;  %1808 = vmatpush3.bf16.msra.mxu1 %v2560_v13 }
 0x424   :  { %980 = vmatprep.subr.bf16.mxu0 %v2566_v0  ;;  %1809 = vmatprep.subr.bf16.mxu1 %v2052_v1 }
 0x427   :  { %981 = vmatpush1.bf16.msra.mxu0 %v2573_v14  ;;  %1810 = vmatpush3.bf16.msra.mxu1 %v2579_v15 }
 0x428   :  { %982 = vmatprep.subr.bf16.mxu0 %v2585_v16  ;;  %1811 = vmatprep.subr.bf16.mxu1 %v2052_v1 }
 0x42b   :  { %983 = vmatpush1.bf16.msra.mxu0 %v2592_v18  ;;  %1812 = vmatpush3.bf16.msra.mxu1 %v2598_v20 }
 0x42c   :  { %984 = vmatprep.subr.bf16.mxu0 %v2604_v51  ;;  %1813 = vmatprep.subr.bf16.mxu1 %v2052_v1 }
 0x42f   :  { %985 = vmatpush1.bf16.msra.mxu0 %v2611_v63  ;;  %1814 = vmatpush3.bf16.msra.mxu1 %v2214_v21  ;;  %v2632_v21 = vld [vmem:[%s2878_s1 + $0x94] ss:$12 sps:$4 sm:$0xff]  }
 0x430   :  { %986 = vmatprep.subr.bf16.mxu0 %v2618_v53  ;;  %1815 = vmatprep.subr.bf16.mxu1 %v2052_v1 }
 0x433   :  { %987 = vmatpush1.bf16.msra.mxu0 %v2625_v62  ;;  %1816 = vmatpush3.bf16.msra.mxu1 %v2237_v26  ;;  %v2645_v26 = vld [vmem:[%s2878_s1 + $0x4] ss:$12 sps:$4 sm:$0xff]  }
 0x434   :  { %988 = vmatprep.subr.bf16.mxu0 %v2632_v21  ;;  %1817 = vmatprep.subr.bf16.mxu1 %v2052_v1 }
 0x437   :  { %989 = vmatpush1.bf16.msra.mxu0 %v2224_v24  ;;  %1818 = vmatpush3.bf16.msra.mxu1 %v2253_v29  ;;  %v1593_v24 = vld [vmem:[%s2880_s0 + $0x60] sm:$0xff] }
 0x438   :  { %990 = vmatprep.subr.bf16.mxu0 %v2231_v25  ;;  %1819 = vmatprep.subr.bf16.mxu1 %v2052_v1  ;;  %v1595_v25 = vld [vmem:[%s2880_s0 + $0x6c] sm:$0xff]  ;;  %v906_v29 = vunpack.c.l.bf16 %v1593_v24 }
 0x439   :  { %v907_v47 = vunpack.c.l.bf16 %v1595_v25 }
 0x43b   :  { %991 = vmatpush1.bf16.msra.mxu0 %v2245_v28  ;;  %1820 = vmatpush3.bf16.msra.mxu1 %v2263_v31  ;;  %v920_v28 = vrot.slane %v1593_v24, 4  ;;  %v921_v31 = vrot.slane %v1595_v25, 4 }
 0x43c   :  { %1130 = vmatprep.subr.bf16.mxu0 %v2645_v26  ;;  %1825 = vmatprep.subr.bf16.mxu1 %v2052_v1 }
 0x43d   :  { %v924_v44 = vunpack.c.l.bf16 %v920_v28  ;;  %v925_v56 = vunpack.c.l.bf16 %v921_v31 }
 0x4f1   :  { %v856_v48 = vpop.f32.mrb[16].mxu0  ;;  %v899_v49 = vpop.f32.mrb[16].mxu1 }
 0x4f2   :  { %v908_v50 = vadd.f32 %v906_v29, %v856_v48  ;;  %v858_v52 = vpop.f32.mrb[17].mxu0  ;;  %v1803_v54 = vpop.f32.mrb[17].mxu1  ;;  %v936_v34 = vadd.f32 %v2336_v30, %v899_v49 }
 0x4f3   :  { %v860_v17 = vpop.f32.mrb[18].mxu0  ;;  %v902_v55 = vpop.f32.mrb[18].mxu1  ;;  %v926_v61 = vadd.f32 %v924_v44, %v858_v52 }
 0x4f4   :  { %v910_v57 = vmul.f32 0.5, %v908_v50  ;;  %v909_v58 = vadd.f32 %v907_v47, %v860_v17  ;;  %v862_v59 = vpop.f32.mrb[19].mxu0  ;;  %v1804_v60 = vpop.f32.mrb[19].mxu1  ;;  %v937_v37 = vadd.f32 %v2336_v30, %v902_v55 }
 0x4f5   :  { %v927_v23 = vadd.f32 %v925_v56, %v862_v59  ;;  %v928_v27 = vmul.f32 0.5, %v926_v61  ;;  %v962_v54 = vpop.permute.xlu0 %961  ;;  %v965_v17 = vpop.permute.xlu1 %964  ;;  %v2710_v59 = vld [vmem:[%s2878_s1 + $0x90] ss:$12 sps:$4 sm:$0xff]   ;;  %v2716_v60 = vld [vmem:[%s2878_s1 + $0x98] ss:$12 sps:$4 sm:$0xff]  }
 0x4f6   :  { %1979 = vtanh.f32 %v910_v57  ;;  %v911_v22 = vmul.f32 0.5, %v909_v58  ;;  %vm966_vm11 = vcmp.eq.s32.totalorder %v962_v54, 1  ;;  %vm967_vm12 = vcmp.eq.s32.totalorder %v965_v17, 1  ;;  %v2722_v61 = vld [vmem:[%s2878_s1 + $0xac] ss:$12 sps:$4 sm:$0xff]  }
 0x4f7   :  { %v929_v32 = vmul.f32 0.5, %v927_v23  ;;  %v2735_v23 = vld [vmem:[%s2878_s1 + $0xb0] ss:$12 sps:$4 sm:$0xff]  }
 0x4f8   :  { %1981 = vtanh.f32 %v911_v22  ;;  %v2729_v22 = vld [vmem:[%s2878_s1 + $0xa8] ss:$12 sps:$4 sm:$0xff]  }
 0x4f9   :  { %1983 = vtanh.f32 %v928_v27  ;;  %v1597_v27 = vld [vmem:[%s2880_s0 + $0x78] sm:$0xff] }
 0x4fa   :  { %1985 = vtanh.f32 %v929_v32  ;;  %v1599_v32 = vld [vmem:[%s2880_s0 + $0x84] sm:$0xff]  ;;  %v1060_v33 = vunpack.c.l.bf16 %v1597_v27 }
 0x500   :  { %v1980_v19 = vpop.eup %1979 }
 0x501   :  { %v914_v35 = vmul.f32 0.5, %v1980_v19  ;;  %v1074_v19 = vrot.slane %v1597_v27, 4 }
 0x502   :  { %v1982_v36 = vpop.eup %1981 }
 0x503   :  { %v916_v38 = vadd.f32 0.5, %v914_v35  ;;  %v915_v40 = vmul.f32 0.5, %v1982_v36  ;;  %v1984_v3 = vpop.eup %1983  ;;  %v1075_v35 = vrot.slane %v1599_v32, 4  ;;  %v1061_v36 = vunpack.c.l.bf16 %v1599_v32 }
 0x504   :  { %v1986_v6 = vpop.eup %1985  ;;  %v932_v10 = vmul.f32 0.5, %v1984_v3 }
 0x505   :  { %v938_v41 = vmul.f32 %v936_v34, %v916_v38  ;;  %v917_v42 = vadd.f32 0.5, %v915_v40  ;;  %v933_v24 = vmul.f32 0.5, %v1986_v6 }
 0x506   :  { %v934_v25 = vadd.f32 0.5, %v932_v10 }
 0x507   :  { %v942_v4 = vadd.f32 %v940_v39, %v938_v41  ;;  %v939_v5 = vmul.f32 %v937_v37, %v917_v42  ;;  %v935_v28 = vadd.f32 0.5, %v933_v24  ;;  %v1078_v39 = vunpack.c.l.bf16 %v1074_v19 }
 0x508   :  { %v946_v29 = vsub.f32 1.0, %v934_v25  ;;  %v950_v48 = vmul.f32 %v934_v25, %v2522_v8 }
 0x509   :  { %1987 = vtanh.f32 %v942_v4  ;;  %v943_v7 = vadd.f32 %v941_v46, %v939_v5  ;;  %v947_v49 = vsub.f32 1.0, %v935_v28  ;;  %v951_v52 = vmul.f32 %v935_v28, %v2525_v9 }
 0x50a   :  { %v1079_v46 = vunpack.c.l.bf16 %v1075_v35 }
 0x50b   :  { %1989 = vtanh.f32 %v943_v7 }
 0x513   :  { %v1988_v31 = vpop.eup %1987 }
 0x514   :  { %v948_v47 = vmul.f32 %v1988_v31, %v946_v29  ;;  %v1598_v31 = vld [vmem:[%s2880_s0 + $0x80] ss:$12 sps:$4 sm:$0xff]  }
 0x515   :  { %v1990_v44 = vpop.eup %1989 }
 0x516   :  { %v952_v30 = vadd.f32 %v950_v48, %v948_v47  ;;  %v949_v50 = vmul.f32 %v1990_v44, %v947_v49  ;;  %v2752_v44 = vld [vmem:[%s2881_s2] ss:$0 sm:$0xff] }
 0x518   :  { %v953_v55 = vadd.f32 %v951_v52, %v949_v50  ;;  %v2663_v56 = vsel %vm966_vm11, %v952_v30, %v2522_v8  ;;  %v2693_v8 = vld [vmem:[%s2878_s1 + $0x68] ss:$12 sps:$4 sm:$0xff]   ;;  %v1094_v50 = vunpack.c.l.bf16 %v1598_v31 }
 0x51a   :  { %v2666_v57 = vsel %vm967_vm12, %v953_v55, %v2525_v9  ;;  %v2702_v9 = vld [vmem:[%s2878_s1 + $0x80] ss:$12 sps:$4 sm:$0xff]  }
 0x51b   :  { %v975_v58 = vpack.c.bf16 %v2666_v57, %v2663_v56 }
 0x51d   :  { %1009 = vmatmul.mubr.bf16.vlgmr.msra.gmra.mrb[20].mxu0 %v975_v58  ;;  %1822 = vmatmul.mubr.bf16.vlgmr.msra.gmra.mrb[20].mxu1 %v975_v58  ;;  %v1095_v58 = vunpack.c.h.bf16 %v1598_v31 }
 0x51e   :  { %1131 = vmatpush1.bf16.msra.mxu0 %v2532_v11  ;;  %1826 = vmatpush3.bf16.msra.mxu1 %v2538_v43 }
 0x51f   :  { %1132 = vmatprep.subr.bf16.mxu0 %v2544_v45  ;;  %1827 = vmatprep.subr.bf16.mxu1 %v2052_v1 }
 0x520   :  { %1162 = vmatprep.mubr.bf16.mxu0 %v2053_v2  ;;  %1841 = vmatprep.mubr.msk.bf16.mxu1 %vm2054_vm0, %v2052_v1 }
 0x522   :  { %1133 = vmatpush1.bf16.msra.mxu0 %v2554_v12  ;;  %1828 = vmatpush3.bf16.msra.mxu1 %v2560_v13 }
 0x523   :  { %1134 = vmatprep.subr.bf16.mxu0 %v2566_v0  ;;  %1829 = vmatprep.subr.bf16.mxu1 %v2052_v1 }
 0x526   :  { %1135 = vmatpush1.bf16.msra.mxu0 %v2573_v14  ;;  %1830 = vmatpush3.bf16.msra.mxu1 %v2579_v15 }
 0x527   :  { %1136 = vmatprep.subr.bf16.mxu0 %v2585_v16  ;;  %1831 = vmatprep.subr.bf16.mxu1 %v2052_v1 }
 0x52a   :  { %1137 = vmatpush1.bf16.msra.mxu0 %v2592_v18  ;;  %1832 = vmatpush3.bf16.msra.mxu1 %v2598_v20 }
 0x52b   :  { %1138 = vmatprep.subr.bf16.mxu0 %v2604_v51  ;;  %1833 = vmatprep.subr.bf16.mxu1 %v2052_v1 }
 0x52e   :  { %1139 = vmatpush1.bf16.msra.mxu0 %v2611_v63  ;;  %1834 = vmatpush3.bf16.msra.mxu1 %v2693_v8 }
 0x52f   :  { %1140 = vmatprep.subr.bf16.mxu0 %v2618_v53  ;;  %1835 = vmatprep.subr.bf16.mxu1 %v2052_v1 }
 0x532   :  { %1141 = vmatpush1.bf16.msra.mxu0 %v2625_v62  ;;  %1836 = vmatpush3.bf16.msra.mxu1 %v2702_v9 }
 0x533   :  { %1142 = vmatprep.subr.bf16.mxu0 %v2632_v21  ;;  %1837 = vmatprep.subr.bf16.mxu1 %v2052_v1 }
 0x536   :  { %1143 = vmatpush1.bf16.msra.mxu0 %v2710_v59  ;;  %1838 = vmatpush3.bf16.msra.mxu1 %v2716_v60 }
 0x537   :  { %1144 = vmatprep.subr.bf16.mxu0 %v2722_v61  ;;  %1839 = vmatprep.subr.bf16.mxu1 %v2052_v1 }
 0x53a   :  { %1145 = vmatpush1.bf16.msra.mxu0 %v2729_v22  ;;  %1840 = vmatpush3.bf16.msra.mxu1 %v2735_v23 }
 0x53b   :  { %1284 = vmatprep.subr.bf16.mxu0 %v2645_v26  ;;  %1845 = vmatprep.subr.bf16.mxu1 %v2052_v1 }
 0x5f0   :  { %v1010_v38 = vpop.f32.mrb[20].mxu0  ;;  %v1053_v34 = vpop.f32.mrb[20].mxu1 }
 0x5f1   :  { %v1062_v40 = vadd.f32 %v1060_v33, %v1010_v38  ;;  %v1012_v41 = vpop.f32.mrb[21].mxu0  ;;  %v1823_v26 = vpop.f32.mrb[21].mxu1  ;;  %v1090_v30 = vadd.f32 %v2752_v44, %v1053_v34 }
 0x5f2   :  { %v1014_v42 = vpop.f32.mrb[22].mxu0  ;;  %v1056_v37 = vpop.f32.mrb[22].mxu1  ;;  %v1080_v7 = vadd.f32 %v1078_v39, %v1012_v41 }
 0x5f3   :  { %v1064_v3 = vmul.f32 0.5, %v1062_v40  ;;  %v1063_v4 = vadd.f32 %v1061_v36, %v1014_v42  ;;  %v1016_v5 = vpop.f32.mrb[23].mxu0  ;;  %v1824_v6 = vpop.f32.mrb[23].mxu1  ;;  %v1091_v55 = vadd.f32 %v2752_v44, %v1056_v37 }
 0x5f4   :  { %v1081_v24 = vadd.f32 %v1079_v46, %v1016_v5  ;;  %v1082_v25 = vmul.f32 0.5, %v1080_v7  ;;  %v1116_v6 = vpop.permute.xlu0 %1115  ;;  %v1119_v7 = vpop.permute.xlu1 %1118 }
 0x5f5   :  { %1991 = vtanh.f32 %v1064_v3  ;;  %v1065_v10 = vmul.f32 0.5, %v1063_v4  ;;  %vm1120_vm13 = vcmp.eq.s32.totalorder %v1116_v6, 1  ;;  %vm1121_vm14 = vcmp.eq.s32.totalorder %v1119_v7, 1 }
 0x5f6   :  { %v1083_v28 = vmul.f32 0.5, %v1081_v24 }
 0x5f7   :  { %1993 = vtanh.f32 %v1065_v10 }
 0x5f8   :  { %1995 = vtanh.f32 %v1082_v25 }
 0x5f9   :  { %1997 = vtanh.f32 %v1083_v28 }
 0x5ff   :  { %v1992_v29 = vpop.eup %1991 }
 0x600   :  { %v1068_v47 = vmul.f32 0.5, %v1992_v29 }
 0x601   :  { %v1994_v48 = vpop.eup %1993 }
 0x602   :  { %v1070_v49 = vadd.f32 0.5, %v1068_v47  ;;  %v1069_v52 = vmul.f32 0.5, %v1994_v48  ;;  %v1996_v27 = vpop.eup %1995 }
 0x603   :  { %v1998_v33 = vpop.eup %1997  ;;  %v1086_v36 = vmul.f32 0.5, %v1996_v27 }
 0x604   :  { %v1092_v54 = vmul.f32 %v1090_v30, %v1070_v49  ;;  %v1071_v17 = vadd.f32 0.5, %v1069_v52  ;;  %v1087_v38 = vmul.f32 0.5, %v1998_v33 }
 0x605   :  { %v1088_v39 = vadd.f32 0.5, %v1086_v36 }
 0x606   :  { %v1096_v32 = vadd.f32 %v1094_v50, %v1092_v54  ;;  %v1093_v19 = vmul.f32 %v1091_v55, %v1071_v17  ;;  %v1089_v40 = vadd.f32 0.5, %v1087_v38 }
 0x607   :  { %v1100_v41 = vsub.f32 1.0, %v1088_v39  ;;  %v1104_v42 = vmul.f32 %v1088_v39, %v2663_v56 }
 0x608   :  { %1999 = vtanh.f32 %v1096_v32  ;;  %v1097_v35 = vadd.f32 %v1095_v58, %v1093_v19  ;;  %v1101_v46 = vsub.f32 1.0, %v1089_v40  ;;  %v1105_v5 = vmul.f32 %v1089_v40, %v2666_v57 }
 0x60a   :  { %2001 = vtanh.f32 %v1097_v35 }
 0x612   :  { %v2000_v34 = vpop.eup %1999 }
 0x613   :  { %v1102_v26 = vmul.f32 %v2000_v34, %v1100_v41 }
 0x614   :  { %v2002_v3 = vpop.eup %2001 }
 0x615   :  { %v1106_v37 = vadd.f32 %v1104_v42, %v1102_v26  ;;  %v1103_v4 = vmul.f32 %v2002_v3, %v1101_v46 }
 0x617   :  { %v1107_v10 = vadd.f32 %v1105_v5, %v1103_v4  ;;  %v2759_v24 = vsel %vm1120_vm13, %v1106_v37, %v2663_v56  ;;  %v1270_v4 = vpop.permute.xlu0 %1269  ;;  %v1273_v5 = vpop.permute.xlu1 %1272 }
 0x618   :  { %vm1274_vm15 = vcmp.eq.s32.totalorder %v1270_v4, 1  ;;  %vm1275_vm1 = vcmp.eq.s32.totalorder %v1273_v5, 1 }
 0x619   :  { %v2762_v25 = vsel %vm1121_vm14, %v1107_v10, %v2666_v57 }
 0x61a   :  { %v1129_v28 = vpack.c.bf16 %v2762_v25, %v2759_v24 }
 0x61c   :  { %1163 = vmatmul.mubr.bf16.vlgmr.msra.gmra.mrb[24].mxu0 %v1129_v28  ;;  %1842 = vmatmul.mubr.bf16.vlgmr.msra.gmra.mrb[24].mxu1 %v1129_v28 }
 0x61d   :  { %1285 = vmatpush1.bf16.msra.mxu0 %v2532_v11  ;;  %1846 = vmatpush3.bf16.msra.mxu1 %v2538_v43  ;;  %v1603_v11 = vld [vmem:[%s2880_s0 + $0x9c] sm:$0xff] }
 0x61e   :  { %1286 = vmatprep.subr.bf16.mxu0 %v2544_v45  ;;  %1847 = vmatprep.subr.bf16.mxu1 %v2052_v1 }
 0x61f   :  { %1316 = vmatprep.mubr.bf16.mxu0 %v2053_v2  ;;  %1861 = vmatprep.mubr.msk.bf16.mxu1 %vm2054_vm0, %v2052_v1  ;;  %v1601_v2 = vld [vmem:[%s2880_s0 + $0x90] sm:$0xff] }
 0x620   :  { %v1228_v43 = vrot.slane %v1601_v2, 4  ;;  %v1214_v45 = vunpack.c.l.bf16 %v1601_v2  ;;  %v1923_v2 = vld [vmem:[%s2882_s4] sm:$0xff]  }
 0x621   :  { %1287 = vmatpush1.bf16.msra.mxu0 %v2554_v12  ;;  %1848 = vmatpush3.bf16.msra.mxu1 %v2560_v13  ;;  %v1229_v12 = vrot.slane %v1603_v11, 4  ;;  %v1215_v13 = vunpack.c.l.bf16 %v1603_v11  ;;  %v1926_v11 = vld [vmem:[%s2882_s4 + $0x18] sm:$0xff]  }
 0x622   :  { %1288 = vmatprep.subr.bf16.mxu0 %v2566_v0  ;;  %1849 = vmatprep.subr.bf16.mxu1 %v2052_v1 }
 0x625   :  { %1289 = vmatpush1.bf16.msra.mxu0 %v2573_v14  ;;  %1850 = vmatpush3.bf16.msra.mxu1 %v2579_v15  ;;  %v1232_v15 = vunpack.c.l.bf16 %v1228_v43  ;;  %v1927_v43 = vld [vmem:[%s2882_s4 + $0x20] sm:$0xff]  }
 0x626   :  { %1290 = vmatprep.subr.bf16.mxu0 %v2585_v16  ;;  %1851 = vmatprep.subr.bf16.mxu1 %v2052_v1 }
 0x629   :  { %1291 = vmatpush1.bf16.msra.mxu0 %v2592_v18  ;;  %1852 = vmatpush3.bf16.msra.mxu1 %v2598_v20 }
 0x62a   :  { %1292 = vmatprep.subr.bf16.mxu0 %v2604_v51  ;;  %1853 = vmatprep.subr.bf16.mxu1 %v2052_v1 }
 0x62d   :  { %1293 = vmatpush1.bf16.msra.mxu0 %v2611_v63  ;;  %1854 = vmatpush3.bf16.msra.mxu1 %v2693_v8 }
 0x62e   :  { %1294 = vmatprep.subr.bf16.mxu0 %v2618_v53  ;;  %1855 = vmatprep.subr.bf16.mxu1 %v2052_v1  ;;  %v1233_v53 = vunpack.c.l.bf16 %v1229_v12  ;;  %v1929_v12 = vld [vmem:[%s2882_s4 + $0x30] sm:$0xff]  }
 0x631   :  { %1295 = vmatpush1.bf16.msra.mxu0 %v2625_v62  ;;  %1856 = vmatpush3.bf16.msra.mxu1 %v2702_v9 }
 0x632   :  { %1296 = vmatprep.subr.bf16.mxu0 %v2632_v21  ;;  %1857 = vmatprep.subr.bf16.mxu1 %v2052_v1 }
 0x635   :  { %1297 = vmatpush1.bf16.msra.mxu0 %v2710_v59  ;;  %1858 = vmatpush3.bf16.msra.mxu1 %v2716_v60 }
 0x636   :  { %1298 = vmatprep.subr.bf16.mxu0 %v2722_v61  ;;  %1859 = vmatprep.subr.bf16.mxu1 %v2052_v1 }
 0x639   :  { %1299 = vmatpush1.bf16.msra.mxu0 %v2729_v22  ;;  %1860 = vmatpush3.bf16.msra.mxu1 %v2735_v23  ;;  %v1602_v23 = vld [vmem:[%s2880_s0 + $0x98] ss:$12 sps:$4 sm:$0xff]  }
 0x63a   :  { %1865 = vmatprep.subr.bf16.mxu0 %v2052_v1  ;;  %v1248_v49 = vunpack.c.l.bf16 %v1602_v23  ;;  %v1249_v17 = vunpack.c.h.bf16 %v1602_v23 }
 0x6ef   :  { %v1164_v0 = vpop.f32.mrb[24].mxu0  ;;  %v1207_v14 = vpop.f32.mrb[24].mxu1 }
 0x6f0   :  { %v1216_v16 = vadd.f32 %v1214_v45, %v1164_v0  ;;  %v1166_v18 = vpop.f32.mrb[25].mxu0  ;;  %v1843_v20 = vpop.f32.mrb[25].mxu1  ;;  %v1244_v48 = vadd.f32 %v2752_v44, %v1207_v14  ;;  %v1928_v45 = vld [vmem:[%s2882_s4 + $0x28] sm:$0xff]   ;;  %v1607_v14 = vld [vmem:[%s2880_s0 + $0xb4] sm:$0xff] }
 0x6f1   :  { %v1168_v51 = vpop.f32.mrb[26].mxu0  ;;  %v1210_v63 = vpop.f32.mrb[26].mxu1  ;;  %v1234_v8 = vadd.f32 %v1232_v15, %v1166_v18  ;;  %v1605_v0 = vld [vmem:[%s2880_s0 + $0xa8] sm:$0xff]  ;;  %v1383_v18 = vrot.slane %v1607_v14, 4  ;;  %v1369_v20 = vunpack.c.l.bf16 %v1607_v14 }
 0x6f2   :  { %v1218_v62 = vmul.f32 0.5, %v1216_v16  ;;  %v1217_v21 = vadd.f32 %v1215_v13, %v1168_v51  ;;  %v1170_v56 = vpop.f32.mrb[27].mxu0  ;;  %v1844_v57 = vpop.f32.mrb[27].mxu1  ;;  %v1245_v54 = vadd.f32 %v2752_v44, %v1210_v63  ;;  %v1930_v13 = vld [vmem:[%s2882_s4 + $0x38] sm:$0xff]   ;;  %v1382_v15 = vrot.slane %v1605_v0, 4 }
 0x6f3   :  { %v1235_v59 = vadd.f32 %v1233_v53, %v1170_v56  ;;  %v1236_v60 = vmul.f32 0.5, %v1234_v8  ;;  %v1368_v16 = vunpack.c.l.bf16 %v1605_v0  ;;  %v1387_v8 = vunpack.c.l.bf16 %v1383_v18 }
 0x6f4   :  { %2003 = vtanh.f32 %v1218_v62  ;;  %v1219_v9 = vmul.f32 0.5, %v1217_v21 }
 0x6f5   :  { %v1237_v61 = vmul.f32 0.5, %v1235_v59 }
 0x6f6   :  { %2005 = vtanh.f32 %v1219_v9 }
 0x6f7   :  { %2007 = vtanh.f32 %v1236_v60 }
 0x6f8   :  { %2009 = vtanh.f32 %v1237_v61 }
 0x6fe   :  { %v2004_v22 = vpop.eup %2003 }
 0x6ff   :  { %v1222_v29 = vmul.f32 0.5, %v2004_v22 }
 0x700   :  { %v2006_v31 = vpop.eup %2005 }
 0x701   :  { %v1224_v47 = vadd.f32 0.5, %v1222_v29  ;;  %v1223_v30 = vmul.f32 0.5, %v2006_v31  ;;  %v2008_v55 = vpop.eup %2007 }
 0x702   :  { %v2010_v32 = vpop.eup %2009  ;;  %v1240_v33 = vmul.f32 0.5, %v2008_v55 }
 0x703   :  { %v1246_v50 = vmul.f32 %v1244_v48, %v1224_v47  ;;  %v1225_v52 = vadd.f32 0.5, %v1223_v30  ;;  %v1241_v35 = vmul.f32 0.5, %v2010_v32 }
 0x704   :  { %v1242_v36 = vadd.f32 0.5, %v1240_v33 }
 0x705   :  { %v1250_v58 = vadd.f32 %v1248_v49, %v1246_v50  ;;  %v1247_v27 = vmul.f32 %v1245_v54, %v1225_v52  ;;  %v1243_v38 = vadd.f32 0.5, %v1241_v35  ;;  %v1606_v49 = vld [vmem:[%s2880_s0 + $0xb0] ss:$12 sps:$4 sm:$0xff]  }
 0x706   :  { %v1254_v39 = vsub.f32 1.0, %v1242_v36  ;;  %v1258_v34 = vmul.f32 %v1242_v36, %v2759_v24 }
 0x707   :  { %2011 = vtanh.f32 %v1250_v58  ;;  %v1251_v19 = vadd.f32 %v1249_v17, %v1247_v27  ;;  %v1255_v26 = vsub.f32 1.0, %v1243_v38  ;;  %v1259_v37 = vmul.f32 %v1243_v38, %v2762_v25 }
 0x708   :  { %v1402_v17 = vunpack.c.l.bf16 %v1606_v49 }
 0x709   :  { %2013 = vtanh.f32 %v1251_v19  ;;  %v1403_v19 = vunpack.c.h.bf16 %v1606_v49 }
 0x711   :  { %v2012_v40 = vpop.eup %2011 }
 0x712   :  { %v1256_v41 = vmul.f32 %v2012_v40, %v1254_v39 }
 0x713   :  { %v2014_v42 = vpop.eup %2013 }
 0x714   :  { %v1260_v46 = vadd.f32 %v1258_v34, %v1256_v41  ;;  %v1257_v3 = vmul.f32 %v2014_v42, %v1255_v26 }
 0x716   :  { %v1261_v6 = vadd.f32 %v1259_v37, %v1257_v3  ;;  %v2814_v7 = vsel %vm1274_vm15, %v1260_v46, %v2759_v24  ;;  %v1924_v24 = vld [vmem:[%s2882_s4 + $0x8] sm:$0xff]  }
 0x718   :  { %v2817_v10 = vsel %vm1275_vm1, %v1261_v6, %v2762_v25  ;;  %v1925_v25 = vld [vmem:[%s2882_s4 + $0x10] sm:$0xff]   ;;  %v1427_v6 = vpop.permute.xlu1 %1426 }
 0x719   :  { %v1283_v28 = vpack.c.bf16 %v2817_v10, %v2814_v7  ;;  %vm1429_vm2 = vcmp.eq.s32.totalorder %v1427_v6, 1 }
 0x71b   :  { %1317 = vmatmul.mubr.bf16.vlgmr.msra.gmra.mrb[28].mxu0 %v1283_v28  ;;  %1862 = vmatmul.mubr.bf16.vlgmr.msra.gmra.mrb[28].mxu1 %v1283_v28 }
 0x71c   :  { %1881 = vmatprep.mubr.msk.bf16.mxu0 %vm2054_vm0, %v2052_v1  ;;  %1866 = vmatpush3.bf16.msra.mxu0 %v1923_v2 }
 0x71d   :  { %1867 = vmatprep.subr.bf16.mxu0 %v2052_v1 }
 0x720   :  { %1868 = vmatpush3.bf16.msra.mxu0 %v1924_v24 }
 0x721   :  { %1869 = vmatprep.subr.bf16.mxu0 %v2052_v1 }
 0x724   :  { %1870 = vmatpush3.bf16.msra.mxu0 %v1925_v25 }
 0x725   :  { %1871 = vmatprep.subr.bf16.mxu0 %v2052_v1 }
 0x728   :  { %1872 = vmatpush3.bf16.msra.mxu0 %v1926_v11 }
 0x729   :  { %1873 = vmatprep.subr.bf16.mxu0 %v2052_v1 }
 0x72c   :  { %1874 = vmatpush3.bf16.msra.mxu0 %v1927_v43 }
 0x72d   :  { %1875 = vmatprep.subr.bf16.mxu0 %v2052_v1 }
 0x730   :  { %1876 = vmatpush3.bf16.msra.mxu0 %v1928_v45 }
 0x731   :  { %1877 = vmatprep.subr.bf16.mxu0 %v2052_v1 }
 0x734   :  { %1878 = vmatpush3.bf16.msra.mxu0 %v1929_v12  ;;  %v1609_v12 = vld [vmem:[%s2883_s5] ss:$0 sm:$0xff] }
 0x735   :  { %1879 = vmatprep.subr.bf16.mxu0 %v2052_v1  ;;  %v1386_v1 = vunpack.c.l.bf16 %v1382_v15 }
 0x738   :  { %1880 = vmatpush3.bf16.msra.mxu0 %v1930_v13 }
 0x7ee   :  { %v1318_v51 = vpop.f32.mrb[28].mxu0  ;;  %v1361_v63 = vpop.f32.mrb[28].mxu1 }
 0x7ef   :  { %v1370_v53 = vadd.f32 %v1368_v16, %v1318_v51  ;;  %v1320_v62 = vpop.f32.mrb[29].mxu0  ;;  %v1863_v21 = vpop.f32.mrb[29].mxu1  ;;  %v1398_v54 = vadd.f32 %v2752_v44, %v1361_v63 }
 0x7f0   :  { %v1322_v56 = vpop.f32.mrb[30].mxu0  ;;  %v1364_v57 = vpop.f32.mrb[30].mxu1  ;;  %v1388_v22 = vadd.f32 %v1386_v1, %v1320_v62 }
 0x7f1   :  { %v1372_v9 = vmul.f32 0.5, %v1370_v53  ;;  %v1371_v59 = vadd.f32 %v1369_v20, %v1322_v56  ;;  %v1324_v60 = vpop.f32.mrb[31].mxu0  ;;  %v1864_v61 = vpop.f32.mrb[31].mxu1  ;;  %v1399_v32 = vadd.f32 %v2752_v44, %v1364_v57 }
 0x7f2   :  { %v1389_v29 = vadd.f32 %v1387_v8, %v1324_v60  ;;  %v1390_v31 = vmul.f32 0.5, %v1388_v22  ;;  %v1424_v44 = vpop.permute.xlu0 %1423 }
 0x7f3   :  { %2015 = vtanh.f32 %v1372_v9  ;;  %v1373_v23 = vmul.f32 0.5, %v1371_v59  ;;  %vm1428_vm0 = vcmp.eq.s32.totalorder %v1424_v44, 1 }
 0x7f4   :  { %v1391_v47 = vmul.f32 0.5, %v1389_v29 }
 0x7f5   :  { %2017 = vtanh.f32 %v1373_v23 }
 0x7f6   :  { %2019 = vtanh.f32 %v1390_v31 }
 0x7f7   :  { %2021 = vtanh.f32 %v1391_v47 }
 0x7fd   :  { %v2016_v48 = vpop.eup %2015 }
 0x7fe   :  { %v1376_v30 = vmul.f32 0.5, %v2016_v48 }
 0x7ff   :  { %v2018_v50 = vpop.eup %2017 }
 0x800   :  { %v1378_v52 = vadd.f32 0.5, %v1376_v30  ;;  %v1377_v55 = vmul.f32 0.5, %v2018_v50  ;;  %v2020_v33 = vpop.eup %2019 }
 0x801   :  { %v2022_v38 = vpop.eup %2021  ;;  %v1394_v40 = vmul.f32 0.5, %v2020_v33 }
 0x802   :  { %v1400_v58 = vmul.f32 %v1398_v54, %v1378_v52  ;;  %v1379_v27 = vadd.f32 0.5, %v1377_v55  ;;  %v1395_v41 = vmul.f32 0.5, %v2022_v38 }
 0x803   :  { %v1396_v34 = vadd.f32 0.5, %v1394_v40 }
 0x804   :  { %v1404_v35 = vadd.f32 %v1402_v17, %v1400_v58  ;;  %v1401_v36 = vmul.f32 %v1399_v32, %v1379_v27  ;;  %v1397_v26 = vadd.f32 0.5, %v1395_v41 }
 0x805   :  { %v1408_v42 = vsub.f32 1.0, %v1396_v34  ;;  %v1412_v37 = vmul.f32 %v1396_v34, %v2814_v7 }
 0x806   :  { %2023 = vtanh.f32 %v1404_v35  ;;  %v1405_v39 = vadd.f32 %v1403_v19, %v1401_v36  ;;  %v1409_v4 = vsub.f32 1.0, %v1397_v26  ;;  %v1413_v24 = vmul.f32 %v1397_v26, %v2817_v10 }
 0x808   :  { %2025 = vtanh.f32 %v1405_v39 }
 0x810   :  { %v2024_v46 = vpop.eup %2023 }
 0x811   :  { %v1410_v3 = vmul.f32 %v2024_v46, %v1408_v42 }
 0x812   :  { %v2026_v5 = vpop.eup %2025 }
 0x813   :  { %v1414_v28 = vadd.f32 %v1412_v37, %v1410_v3  ;;  %v1411_v2 = vmul.f32 %v2026_v5, %v1409_v4 }
 0x815   :  { %v1415_v25 = vadd.f32 %v1413_v24, %v1411_v2  ;;  %v1430_v11 = vsel %vm1428_vm0, %v1414_v28, %v2814_v7 }
 0x817   :  { %v1431_v43 = vsel %vm1429_vm2, %v1415_v25, %v2817_v10 }
 0x818   :  { %v1437_v45 = vpack.c.bf16 %v1431_v43, %v1430_v11 }
 0x81a   :  { %1882 = vmatmul.mubr.bf16.vlgmr.msra.gmra.mrb[32].mxu0 %v1437_v45 }
 0x8ed   :  { %v1543_v13 = vpop.f32.mrb[32].mxu0 }
 0x8ee   :  { %v1544_v0 = vadd.f32 %v1609_v12, %v1543_v13  ;;  %v1883_v14 = vpop.f32.mrb[33].mxu0 }
 0x8ef   :  { %v1546_v15 = vpop.f32.mrb[34].mxu0 }
 0x8f0   :  { %1550 = vst [vmem:[%s2884_s6] sm:$0xff] %v1544_v0  ;;  %v1547_v16 = vadd.f32 %v1609_v12, %v1546_v15  ;;  %v1884_v18 = vpop.f32.mrb[35].mxu0 }
 0x8f2   :  { %1551 = vst [vmem:[%s2884_s6 + $0x8] sm:$0xff] %v1547_v16 }

</bundles_post_ra>
